<compile_context>
chip_gen: v5e
topology: v5e:2x2
jax: 0.10.0
libtpu: 0.0.40
codegen_flags: <defaults>
</compile_context>

<pallas_src>
import math
import functools

import numpy as np
import jax
import jax.numpy as jnp
from jax.experimental import pallas as pl
from jax.experimental.pallas import tpu as pltpu


# ----------------------------------------------------------------------------
# In-kernel building blocks (operate on VMEM values, shapes are static)
# ----------------------------------------------------------------------------
def _pconv(x, m, w_ref, b_ref, s_ref, slide_winsize, use_bf16, apply_relu=True):
    """PartialConv1d (multi_channel=False) + optional ReLU.

    x: (Cin, Lin) f32    m: (1, Lin) f32
    w_ref: (K, Cout, Cin)  b_ref: (Cout, 1)
    s_ref: (K, Lin, Lout)  one-hot tap-selection matrices (encode pad/stride/dil)
    """
    K, cout, _ = w_ref.shape
    lin, lout = s_ref.shape[1], s_ref.shape[2]
    xm = x * m
    acc = jnp.zeros((cout, lout), jnp.float32)
    ssum = jnp.zeros((lin, lout), jnp.float32)
    for k in range(K):                       # K in {3,4,5} -> fully unrolled
        sk = s_ref[k]                        # (Lin, Lout) one-hot gather
        a = jnp.dot(xm, sk, preferred_element_type=jnp.float32)   # exact gather
        wk = w_ref[k]
        if use_bf16:
            a = a.astype(jnp.bfloat16)
            wk = wk.astype(jnp.bfloat16)
        acc = acc + jnp.dot(wk, a, preferred_element_type=jnp.float32)
        ssum = ssum + sk
    # mask "conv": msum[j] = sum_k m_padded[j*stride + k*dil]  (exact in f32)
    msum = jnp.dot(m, ssum, preferred_element_type=jnp.float32)   # (1, Lout)
    update = jnp.clip(msum, 0.0, 1.0)
    ratio = slide_winsize * pl.reciprocal(msum + 1e-8, approx=True) * update
    out = acc * ratio + b_ref[...] * update
    if apply_relu:
        out = jnp.maximum(out, 0.0)
    return out, update


def _pconv_split(xa, xb, m, wa_ref, wb_ref, b_ref, s_ref, slide_winsize, use_bf16):
    """PartialConv1d over the channel-concat [xa; xb] WITHOUT materializing the
    concat (weight pre-split along Cin in the wrapper)."""
    K, cout, _ = wa_ref.shape
    lin, lout = s_ref.shape[1], s_ref.shape[2]
    xam = xa * m
    xbm = xb * m
    acc = jnp.zeros((cout, lout), jnp.float32)
    ssum = jnp.zeros((lin, lout), jnp.float32)
    for k in range(K):
        sk = s_ref[k]
        aa = jnp.dot(xam, sk, preferred_element_type=jnp.float32)
        ab = jnp.dot(xbm, sk, preferred_element_type=jnp.float32)
        wak = wa_ref[k]
        wbk = wb_ref[k]
        if use_bf16:
            aa = aa.astype(jnp.bfloat16)
            ab = ab.astype(jnp.bfloat16)
            wak = wak.astype(jnp.bfloat16)
            wbk = wbk.astype(jnp.bfloat16)
        acc = acc + jnp.dot(wak, aa, preferred_element_type=jnp.float32)
        acc = acc + jnp.dot(wbk, ab, preferred_element_type=jnp.float32)
        ssum = ssum + sk
    msum = jnp.dot(m, ssum, preferred_element_type=jnp.float32)
    update = jnp.clip(msum, 0.0, 1.0)
    ratio = slide_winsize * pl.reciprocal(msum + 1e-8, approx=True) * update
    out = jnp.maximum(acc * ratio + b_ref[...] * update, 0.0)
    return out, update


# ----------------------------------------------------------------------------
# The single fused kernel: one batch element per grid step, all layers inside.
# ----------------------------------------------------------------------------
def _unet_kernel(*refs, use_bf16):
    (x_ref, m_ref,
     w1, b1, s1, w2, b2, s2, w3, b3, s3, w4, b4, s4, w5, b5, s5,
     w6, b6, s6, w7, b7, s7, w8a, w8b, b8, s8, w9, b9, s9,
     out_ref) = refs

    x = x_ref[0]          # (Cin_pad, Le)
    m = m_ref[0]          # (1, Le)

    o, mk = _pconv(x, m, w1, b1, s1, 5.0, use_bf16)
    o_saved, mk_saved = _pconv(o, mk, w2, b2, s2, 3.0, use_bf16)
    o, mk = _pconv(o_saved, mk_saved, w3, b3, s3, 3.0, use_bf16)   # stride 2 (direct)
    o, mk = _pconv(o, mk, w4, b4, s4, 3.0, use_bf16)
    o, mk = _pconv(o, mk, w5, b5, s5, 3.0, use_bf16)               # dil 2
    o, mk = _pconv(o, mk, w6, b6, s6, 3.0, use_bf16)               # dil 4
    # TODO(synk): PartialConvTranspose1d source not available; assumed NVIDIA-style
    # semantics = zero-stuffed regular partial conv with slide_winsize = K = 4.
    o, mk = _pconv(o, mk, w7, b7, s7, 4.0, use_bf16)               # transpose conv
    # Skip connection: channel-concat of (o, o_saved) handled via split weights.
    # TODO(synk): PyTorch concatenates two 1-channel masks into a 2-channel mask,
    # inconsistent with PartialConv1d(multi_channel=False); merged with max here.
    mk = jnp.maximum(mk, mk_saved)
    o, mk = _pconv_split(o, o_saved, mk, w8a, w8b, b8, s8, 3.0, use_bf16)
    o, _ = _pconv(o, mk, w9, b9, s9, 5.0, use_bf16)                # bias=0, +ReLU

    out_ref[0] = o.astype(out_ref.dtype)


# ----------------------------------------------------------------------------
# Trace-time helpers (pure numpy / XLA glue outside the kernel)
# ----------------------------------------------------------------------------
def _sel_matrix(K, lin, lout, stride, pad, dil, transpose):
    """(K, Lin, Lout) one-hot tap-selection matrices encoding pad/stride/dilation
    (and, for the transpose conv, the zero-stuffing)."""
    i = np.arange(lin)[None, :, None]
    j = np.arange(lout)[None, None, :]
    k = np.arange(K)[:, None, None]
    if transpose:
        # equivalent zero-stuffed conv with flipped taps: output j, tap k reads
        # stuffed index j + k - (K-1-pad); it is real sample i iff it == i*stride.
        sel = (i * stride == j + k - (K - 1 - pad))
    else:
        sel = (i == j * stride + k * dil - pad)
    return jnp.asarray(sel.astype(np.float32))


def _conv_out_len(lin, K, stride, pad, dil):
    return (lin + 2 * pad - dil * (K - 1) - 1) // stride + 1


def unet_forward(params, x, mask_in, *, use_bf16=True):
    B, C, L = x.shape
    pad_bottom = L % 2
    if pad_bottom:
        x = jnp.pad(x, ((0, 0), (0, 0), (0, pad_bottom)))
        mask_in = jnp.pad(mask_in, ((0, 0), (0, 0), (0, pad_bottom)))
    Le = L + pad_bottom
    Lh = _conv_out_len(Le, 3, 2, 1, 1)         # after the stride-2 conv3

    # Pad Cin (7 -> 8) once so the first layer is sublane-aligned.
    Cpad = ((C + 7) // 8) * 8
    if Cpad != C:
        x = jnp.pad(x, ((0, 0), (0, Cpad - C), (0, 0)))

    f32 = jnp.float32

    def tapmajor(w):                           # (Cout, Cin, K) -> (K, Cout, Cin)
        return jnp.transpose(w.astype(f32), (2, 0, 1))

    def bias_col(name):
        return params[name].astype(f32).reshape(-1, 1)

    w1 = params["w1"].astype(f32)
    if Cpad != C:
        w1 = jnp.pad(w1, ((0, 0), (0, Cpad - C), (0, 0)))

    # ConvTranspose1d weight (Cin, Cout, K) -> equivalent regular conv (Cout, Cin, K)
    w7 = jnp.transpose(jnp.flip(params["w7"].astype(f32), axis=2), (1, 0, 2))

    # Split conv8's weight along Cin: first block acts on conv7 output, second on
    # the saved conv2 output (removes the in-kernel channel concat).
    n7 = params["w7"].shape[1]
    w8 = params["w8"].astype(f32)
    w8a, w8b = w8[:, :n7, :], w8[:, n7:, :]

    cout_last = params["w9"].shape[0]

    inputs = [x.astype(f32), mask_in.astype(f32)]
    specs = [pl.BlockSpec((1, Cpad, Le), lambda b: (b, 0, 0)),
             pl.BlockSpec((1, 1, Le), lambda b: (b, 0, 0))]

    def add(arr):
        arr = jnp.asarray(arr, f32)
        nd = arr.ndim
        inputs.append(arr)
        specs.append(pl.BlockSpec(arr.shape, lambda b, _nd=nd: (0,) * _nd))

    # (tap-major weight, bias, selection) per layer, in kernel-unpack order.
    add(tapmajor(w1));            add(bias_col("b1")); add(_sel_matrix(5, Le, Le, 1, 2, 1, False))
    add(tapmajor(params["w2"]));  add(bias_col("b2")); add(_sel_matrix(3, Le, Le, 1, 1, 1, False))
    add(tapmajor(params["w3"]));  add(bias_col("b3")); add(_sel_matrix(3, Le, Lh, 2, 1, 1, False))
    add(tapmajor(params["w4"]));  add(bias_col("b4")); add(_sel_matrix(3, Lh, Lh, 1, 1, 1, False))
    add(tapmajor(params["w5"]));  add(bias_col("b5")); add(_sel_matrix(3, Lh, Lh, 1, 2, 2, False))
    add(tapmajor(params["w6"]));  add(bias_col("b6")); add(_sel_matrix(3, Lh, Lh, 1, 4, 4, False))
    add(tapmajor(w7));            add(bias_col("b7")); add(_sel_matrix(4, Lh, Le, 2, 1, 1, True))
    add(tapmajor(w8a)); add(tapmajor(w8b)); add(bias_col("b8")); add(_sel_matrix(3, Le, Le, 1, 1, 1, False))
    add(tapmajor(params["w9"]));  add(bias_col("b9")); add(_sel_matrix(5, Le, Le, 1, 2, 1, False))

    out = pl.pallas_call(
        functools.partial(_unet_kernel, use_bf16=use_bf16),
        out_shape=jax.ShapeDtypeStruct((B, cout_last, Le), f32),
        grid=(B,),
        in_specs=specs,
        out_specs=pl.BlockSpec((1, cout_last, Le), lambda b: (b, 0, 0)),
        compiler_params=pltpu.CompilerParams(
            dimension_semantics=("parallel",)),   # batch shards across v7x's 2 TCs
    )(*inputs)

    if pad_bottom:
        out = out[:, :, :Le - pad_bottom]
    return out


# ----------------------------------------------------------------------------
# Deterministic parameter init (shapes from UNet.__init__), bias=True.
# ----------------------------------------------------------------------------
def init_params(key, in_channels=7, out_channels=3):
    keys = jax.random.split(key, 32)
    ki = iter(range(32))

    def conv_w(cout, cin, k):
        bound = 1.0 / math.sqrt(cin * k)
        return jax.random.uniform(keys[next(ki)], (cout, cin, k),
                                  jnp.float32, -bound, bound)

    def bias_v(cout, cin, k):
        bound = 1.0 / math.sqrt(cin * k)
        return jax.random.uniform(keys[next(ki)], (cout,),
                                  jnp.float32, -bound, bound)

    p = {}
    p["w1"], p["b1"] = conv_w(32, in_channels, 5), bias_v(32, in_channels, 5)
    p["w2"], p["b2"] = conv_w(32, 32, 3), bias_v(32, 32, 3)
    p["w3"], p["b3"] = conv_w(64, 32, 3), bias_v(64, 32, 3)
    p["w4"], p["b4"] = conv_w(64, 64, 3), bias_v(64, 64, 3)
    p["w5"], p["b5"] = conv_w(64, 64, 3), bias_v(64, 64, 3)
    p["w6"], p["b6"] = conv_w(64, 64, 3), bias_v(64, 64, 3)
    bound = 1.0 / math.sqrt(64 * 4)
    p["w7"] = jax.random.uniform(keys[next(ki)], (64, 64, 4), jnp.float32,
                                 -bound, bound)          # ConvTranspose1d layout
    p["b7"] = jax.random.uniform(keys[next(ki)], (64,), jnp.float32,
                                 -bound, bound)
    p["w8"], p["b8"] = conv_w(32, 96, 3), bias_v(32, 96, 3)
    p["w9"] = conv_w(out_channels, 32, 5)                # conv9 has bias=False
    p["b9"] = jnp.zeros((out_channels,), jnp.float32)
    return p


if __name__ == "__main__":
    key = jax.random.PRNGKey(0)
    k_param, k_x, k_m = jax.random.split(key, 3)

    B, CIN, L = 2, 7, 16
    params = init_params(k_param, in_channels=CIN, out_channels=3)
    x = jax.random.normal(k_x, (B, CIN, L), jnp.float32)
    mask_in = (jax.random.uniform(k_m, (B, 1, L)) > 0.2).astype(jnp.float32)

    out = jax.jit(unet_forward)(params, x, mask_in)
    out = jax.block_until_ready(out)
    assert out.shape == (B, 3, L), out.shape
    assert bool(jnp.all(jnp.isfinite(out)))
    print("KERNEL_OK")
</pallas_src>

<mosaic_0001>
module attributes {stable_mosaic.version = 11 : i64} {
  func.func @_unet_kernel(%arg0: i32, %arg1: memref<1x8x16xf32, #tpu.memory_space<vmem>>, %arg2: memref<1x1x16xf32, #tpu.memory_space<vmem>>, %arg3: memref<5x32x8xf32, #tpu.memory_space<vmem>>, %arg4: memref<32x1xf32, #tpu.memory_space<vmem>>, %arg5: memref<5x16x16xf32, #tpu.memory_space<vmem>>, %arg6: memref<3x32x32xf32, #tpu.memory_space<vmem>>, %arg7: memref<32x1xf32, #tpu.memory_space<vmem>>, %arg8: memref<3x16x16xf32, #tpu.memory_space<vmem>>, %arg9: memref<3x64x32xf32, #tpu.memory_space<vmem>>, %arg10: memref<64x1xf32, #tpu.memory_space<vmem>>, %arg11: memref<3x16x8xf32, #tpu.memory_space<vmem>>, %arg12: memref<3x64x64xf32, #tpu.memory_space<vmem>>, %arg13: memref<64x1xf32, #tpu.memory_space<vmem>>, %arg14: memref<3x8x8xf32, #tpu.memory_space<vmem>>, %arg15: memref<3x64x64xf32, #tpu.memory_space<vmem>>, %arg16: memref<64x1xf32, #tpu.memory_space<vmem>>, %arg17: memref<3x8x8xf32, #tpu.memory_space<vmem>>, %arg18: memref<3x64x64xf32, #tpu.memory_space<vmem>>, %arg19: memref<64x1xf32, #tpu.memory_space<vmem>>, %arg20: memref<3x8x8xf32, #tpu.memory_space<vmem>>, %arg21: memref<4x64x64xf32, #tpu.memory_space<vmem>>, %arg22: memref<64x1xf32, #tpu.memory_space<vmem>>, %arg23: memref<4x8x16xf32, #tpu.memory_space<vmem>>, %arg24: memref<3x32x64xf32, #tpu.memory_space<vmem>>, %arg25: memref<3x32x32xf32, #tpu.memory_space<vmem>>, %arg26: memref<32x1xf32, #tpu.memory_space<vmem>>, %arg27: memref<3x16x16xf32, #tpu.memory_space<vmem>>, %arg28: memref<5x3x32xf32, #tpu.memory_space<vmem>>, %arg29: memref<3x1xf32, #tpu.memory_space<vmem>>, %arg30: memref<5x16x16xf32, #tpu.memory_space<vmem>>, %arg31: memref<1x3x16xf32, #tpu.memory_space<vmem>>) attributes {dimension_semantics = [#tpu.dimension_semantics<parallel>], iteration_bounds = array<i64: 2>, scalar_prefetch = 0 : i64, scratch_operands = 0 : i64, tpu.core_type = #tpu.core_type<tc>, window_params = [{transform_indices = @transform_0, window_bounds = array<i64: 1, 8, 16>}, {transform_indices = @transform_1, window_bounds = array<i64: 1, 1, 16>}, {pipeline_mode = #tpu.pipeline_mode<synchronous>, transform_indices = @transform_2, window_bounds = array<i64: 5, 32, 8>}, {pipeline_mode = #tpu.pipeline_mode<synchronous>, transform_indices = @transform_3, window_bounds = array<i64: 32, 1>}, {pipeline_mode = #tpu.pipeline_mode<synchronous>, transform_indices = @transform_4, window_bounds = array<i64: 5, 16, 16>}, {pipeline_mode = #tpu.pipeline_mode<synchronous>, transform_indices = @transform_5, window_bounds = array<i64: 3, 32, 32>}, {pipeline_mode = #tpu.pipeline_mode<synchronous>, transform_indices = @transform_6, window_bounds = array<i64: 32, 1>}, {pipeline_mode = #tpu.pipeline_mode<synchronous>, transform_indices = @transform_7, window_bounds = array<i64: 3, 16, 16>}, {pipeline_mode = #tpu.pipeline_mode<synchronous>, transform_indices = @transform_8, window_bounds = array<i64: 3, 64, 32>}, {pipeline_mode = #tpu.pipeline_mode<synchronous>, transform_indices = @transform_9, window_bounds = array<i64: 64, 1>}, {pipeline_mode = #tpu.pipeline_mode<synchronous>, transform_indices = @transform_10, window_bounds = array<i64: 3, 16, 8>}, {pipeline_mode = #tpu.pipeline_mode<synchronous>, transform_indices = @transform_11, window_bounds = array<i64: 3, 64, 64>}, {pipeline_mode = #tpu.pipeline_mode<synchronous>, transform_indices = @transform_12, window_bounds = array<i64: 64, 1>}, {pipeline_mode = #tpu.pipeline_mode<synchronous>, transform_indices = @transform_13, window_bounds = array<i64: 3, 8, 8>}, {pipeline_mode = #tpu.pipeline_mode<synchronous>, transform_indices = @transform_14, window_bounds = array<i64: 3, 64, 64>}, {pipeline_mode = #tpu.pipeline_mode<synchronous>, transform_indices = @transform_15, window_bounds = array<i64: 64, 1>}, {pipeline_mode = #tpu.pipeline_mode<synchronous>, transform_indices = @transform_16, window_bounds = array<i64: 3, 8, 8>}, {pipeline_mode = #tpu.pipeline_mode<synchronous>, transform_indices = @transform_17, window_bounds = array<i64: 3, 64, 64>}, {pipeline_mode = #tpu.pipeline_mode<synchronous>, transform_indices = @transform_18, window_bounds = array<i64: 64, 1>}, {pipeline_mode = #tpu.pipeline_mode<synchronous>, transform_indices = @transform_19, window_bounds = array<i64: 3, 8, 8>}, {pipeline_mode = #tpu.pipeline_mode<synchronous>, transform_indices = @transform_20, window_bounds = array<i64: 4, 64, 64>}, {pipeline_mode = #tpu.pipeline_mode<synchronous>, transform_indices = @transform_21, window_bounds = array<i64: 64, 1>}, {pipeline_mode = #tpu.pipeline_mode<synchronous>, transform_indices = @transform_22, window_bounds = array<i64: 4, 8, 16>}, {pipeline_mode = #tpu.pipeline_mode<synchronous>, transform_indices = @transform_23, window_bounds = array<i64: 3, 32, 64>}, {pipeline_mode = #tpu.pipeline_mode<synchronous>, transform_indices = @transform_24, window_bounds = array<i64: 3, 32, 32>}, {pipeline_mode = #tpu.pipeline_mode<synchronous>, transform_indices = @transform_25, window_bounds = array<i64: 32, 1>}, {pipeline_mode = #tpu.pipeline_mode<synchronous>, transform_indices = @transform_26, window_bounds = array<i64: 3, 16, 16>}, {pipeline_mode = #tpu.pipeline_mode<synchronous>, transform_indices = @transform_27, window_bounds = array<i64: 5, 3, 32>}, {pipeline_mode = #tpu.pipeline_mode<synchronous>, transform_indices = @transform_28, window_bounds = array<i64: 3, 1>}, {pipeline_mode = #tpu.pipeline_mode<synchronous>, transform_indices = @transform_29, window_bounds = array<i64: 5, 16, 16>}, {transform_indices = @transform_30, window_bounds = array<i64: 1, 3, 16>}]} {
    %c0 = arith.constant 0 : index
    %c0_0 = arith.constant 0 : index
    %c0_1 = arith.constant 0 : index
    %0 = vector.load %arg1[%c0, %c0_0, %c0_1] : memref<1x8x16xf32, #tpu.memory_space<vmem>>, vector<1x8x16xf32>
    %1 = vector.shape_cast %0 : vector<1x8x16xf32> to vector<8x16xf32>
    %c0_2 = arith.constant 0 : index
    %c0_3 = arith.constant 0 : index
    %c0_4 = arith.constant 0 : index
    %2 = vector.load %arg2[%c0_2, %c0_3, %c0_4] : memref<1x1x16xf32, #tpu.memory_space<vmem>>, vector<1x1x16xf32>
    %3 = vector.shape_cast %2 : vector<1x1x16xf32> to vector<1x16xf32>
    %4 = vector.broadcast %3 : vector<1x16xf32> to vector<8x16xf32>
    %5 = arith.mulf %1, %4 : vector<8x16xf32>
    %cst = arith.constant 0.000000e+00 : f32
    %6 = vector.broadcast %cst : f32 to vector<32x16xf32>
    %cst_5 = arith.constant 0.000000e+00 : f32
    %7 = vector.broadcast %cst_5 : f32 to vector<16x16xf32>
    %c0_6 = arith.constant 0 : index
    %c0_7 = arith.constant 0 : index
    %c0_8 = arith.constant 0 : index
    %8 = vector.load %arg5[%c0_6, %c0_7, %c0_8] : memref<5x16x16xf32, #tpu.memory_space<vmem>>, vector<1x16x16xf32>
    %9 = vector.shape_cast %8 : vector<1x16x16xf32> to vector<16x16xf32>
    %cst_9 = arith.constant dense<0.000000e+00> : vector<8x16xf32>
    %10 = tpu.matmul %5, %9, %cst_9 {dimension_numbers = #tpu.dot_dimension_numbers<[1], [0], [0], [1], [0, 0, 1, 1], [], []>} : vector<8x16xf32>, vector<16x16xf32>, vector<8x16xf32> -> vector<8x16xf32>
    %c0_10 = arith.constant 0 : index
    %c0_11 = arith.constant 0 : index
    %c0_12 = arith.constant 0 : index
    %11 = vector.load %arg3[%c0_10, %c0_11, %c0_12] : memref<5x32x8xf32, #tpu.memory_space<vmem>>, vector<1x32x8xf32>
    %12 = vector.shape_cast %11 : vector<1x32x8xf32> to vector<32x8xf32>
    %13 = arith.truncf %10 : vector<8x16xf32> to vector<8x16xbf16>
    %14 = arith.truncf %12 : vector<32x8xf32> to vector<32x8xbf16>
    %cst_13 = arith.constant dense<0.000000e+00> : vector<32x16xf32>
    %15 = tpu.matmul %14, %13, %cst_13 {dimension_numbers = #tpu.dot_dimension_numbers<[1], [0], [0], [1], [0, 0, 1, 1], [], []>} : vector<32x8xbf16>, vector<8x16xbf16>, vector<32x16xf32> -> vector<32x16xf32>
    %16 = arith.addf %6, %15 : vector<32x16xf32>
    %17 = arith.addf %7, %9 : vector<16x16xf32>
    %c1 = arith.constant 1 : index
    %c0_14 = arith.constant 0 : index
    %c0_15 = arith.constant 0 : index
    %18 = vector.load %arg5[%c1, %c0_14, %c0_15] : memref<5x16x16xf32, #tpu.memory_space<vmem>>, vector<1x16x16xf32>
    %19 = vector.shape_cast %18 : vector<1x16x16xf32> to vector<16x16xf32>
    %cst_16 = arith.constant dense<0.000000e+00> : vector<8x16xf32>
    %20 = tpu.matmul %5, %19, %cst_16 {dimension_numbers = #tpu.dot_dimension_numbers<[1], [0], [0], [1], [0, 0, 1, 1], [], []>} : vector<8x16xf32>, vector<16x16xf32>, vector<8x16xf32> -> vector<8x16xf32>
    %c1_17 = arith.constant 1 : index
    %c0_18 = arith.constant 0 : index
    %c0_19 = arith.constant 0 : index
    %21 = vector.load %arg3[%c1_17, %c0_18, %c0_19] : memref<5x32x8xf32, #tpu.memory_space<vmem>>, vector<1x32x8xf32>
    %22 = vector.shape_cast %21 : vector<1x32x8xf32> to vector<32x8xf32>
    %23 = arith.truncf %20 : vector<8x16xf32> to vector<8x16xbf16>
    %24 = arith.truncf %22 : vector<32x8xf32> to vector<32x8xbf16>
    %cst_20 = arith.constant dense<0.000000e+00> : vector<32x16xf32>
    %25 = tpu.matmul %24, %23, %cst_20 {dimension_numbers = #tpu.dot_dimension_numbers<[1], [0], [0], [1], [0, 0, 1, 1], [], []>} : vector<32x8xbf16>, vector<8x16xbf16>, vector<32x16xf32> -> vector<32x16xf32>
    %26 = arith.addf %16, %25 : vector<32x16xf32>
    %27 = arith.addf %17, %19 : vector<16x16xf32>
    %c2 = arith.constant 2 : index
    %c0_21 = arith.constant 0 : index
    %c0_22 = arith.constant 0 : index
    %28 = vector.load %arg5[%c2, %c0_21, %c0_22] : memref<5x16x16xf32, #tpu.memory_space<vmem>>, vector<1x16x16xf32>
    %29 = vector.shape_cast %28 : vector<1x16x16xf32> to vector<16x16xf32>
    %cst_23 = arith.constant dense<0.000000e+00> : vector<8x16xf32>
    %30 = tpu.matmul %5, %29, %cst_23 {dimension_numbers = #tpu.dot_dimension_numbers<[1], [0], [0], [1], [0, 0, 1, 1], [], []>} : vector<8x16xf32>, vector<16x16xf32>, vector<8x16xf32> -> vector<8x16xf32>
    %c2_24 = arith.constant 2 : index
    %c0_25 = arith.constant 0 : index
    %c0_26 = arith.constant 0 : index
    %31 = vector.load %arg3[%c2_24, %c0_25, %c0_26] : memref<5x32x8xf32, #tpu.memory_space<vmem>>, vector<1x32x8xf32>
    %32 = vector.shape_cast %31 : vector<1x32x8xf32> to vector<32x8xf32>
    %33 = arith.truncf %30 : vector<8x16xf32> to vector<8x16xbf16>
    %34 = arith.truncf %32 : vector<32x8xf32> to vector<32x8xbf16>
    %cst_27 = arith.constant dense<0.000000e+00> : vector<32x16xf32>
    %35 = tpu.matmul %34, %33, %cst_27 {dimension_numbers = #tpu.dot_dimension_numbers<[1], [0], [0], [1], [0, 0, 1, 1], [], []>} : vector<32x8xbf16>, vector<8x16xbf16>, vector<32x16xf32> -> vector<32x16xf32>
    %36 = arith.addf %26, %35 : vector<32x16xf32>
    %37 = arith.addf %27, %29 : vector<16x16xf32>
    %c3 = arith.constant 3 : index
    %c0_28 = arith.constant 0 : index
    %c0_29 = arith.constant 0 : index
    %38 = vector.load %arg5[%c3, %c0_28, %c0_29] : memref<5x16x16xf32, #tpu.memory_space<vmem>>, vector<1x16x16xf32>
    %39 = vector.shape_cast %38 : vector<1x16x16xf32> to vector<16x16xf32>
    %cst_30 = arith.constant dense<0.000000e+00> : vector<8x16xf32>
    %40 = tpu.matmul %5, %39, %cst_30 {dimension_numbers = #tpu.dot_dimension_numbers<[1], [0], [0], [1], [0, 0, 1, 1], [], []>} : vector<8x16xf32>, vector<16x16xf32>, vector<8x16xf32> -> vector<8x16xf32>
    %c3_31 = arith.constant 3 : index
    %c0_32 = arith.constant 0 : index
    %c0_33 = arith.constant 0 : index
    %41 = vector.load %arg3[%c3_31, %c0_32, %c0_33] : memref<5x32x8xf32, #tpu.memory_space<vmem>>, vector<1x32x8xf32>
    %42 = vector.shape_cast %41 : vector<1x32x8xf32> to vector<32x8xf32>
    %43 = arith.truncf %40 : vector<8x16xf32> to vector<8x16xbf16>
    %44 = arith.truncf %42 : vector<32x8xf32> to vector<32x8xbf16>
    %cst_34 = arith.constant dense<0.000000e+00> : vector<32x16xf32>
    %45 = tpu.matmul %44, %43, %cst_34 {dimension_numbers = #tpu.dot_dimension_numbers<[1], [0], [0], [1], [0, 0, 1, 1], [], []>} : vector<32x8xbf16>, vector<8x16xbf16>, vector<32x16xf32> -> vector<32x16xf32>
    %46 = arith.addf %36, %45 : vector<32x16xf32>
    %47 = arith.addf %37, %39 : vector<16x16xf32>
    %c4 = arith.constant 4 : index
    %c0_35 = arith.constant 0 : index
    %c0_36 = arith.constant 0 : index
    %48 = vector.load %arg5[%c4, %c0_35, %c0_36] : memref<5x16x16xf32, #tpu.memory_space<vmem>>, vector<1x16x16xf32>
    %49 = vector.shape_cast %48 : vector<1x16x16xf32> to vector<16x16xf32>
    %cst_37 = arith.constant dense<0.000000e+00> : vector<8x16xf32>
    %50 = tpu.matmul %5, %49, %cst_37 {dimension_numbers = #tpu.dot_dimension_numbers<[1], [0], [0], [1], [0, 0, 1, 1], [], []>} : vector<8x16xf32>, vector<16x16xf32>, vector<8x16xf32> -> vector<8x16xf32>
    %c4_38 = arith.constant 4 : index
    %c0_39 = arith.constant 0 : index
    %c0_40 = arith.constant 0 : index
    %51 = vector.load %arg3[%c4_38, %c0_39, %c0_40] : memref<5x32x8xf32, #tpu.memory_space<vmem>>, vector<1x32x8xf32>
    %52 = vector.shape_cast %51 : vector<1x32x8xf32> to vector<32x8xf32>
    %53 = arith.truncf %50 : vector<8x16xf32> to vector<8x16xbf16>
    %54 = arith.truncf %52 : vector<32x8xf32> to vector<32x8xbf16>
    %cst_41 = arith.constant dense<0.000000e+00> : vector<32x16xf32>
    %55 = tpu.matmul %54, %53, %cst_41 {dimension_numbers = #tpu.dot_dimension_numbers<[1], [0], [0], [1], [0, 0, 1, 1], [], []>} : vector<32x8xbf16>, vector<8x16xbf16>, vector<32x16xf32> -> vector<32x16xf32>
    %56 = arith.addf %46, %55 : vector<32x16xf32>
    %57 = arith.addf %47, %49 : vector<16x16xf32>
    %cst_42 = arith.constant dense<0.000000e+00> : vector<1x16xf32>
    %58 = tpu.matmul %3, %57, %cst_42 {dimension_numbers = #tpu.dot_dimension_numbers<[1], [0], [0], [1], [0, 0, 1, 1], [], []>} : vector<1x16xf32>, vector<16x16xf32>, vector<1x16xf32> -> vector<1x16xf32>
    %cst_43 = arith.constant 0.000000e+00 : f32
    %cst_44 = arith.constant 1.000000e+00 : f32
    %59 = vector.broadcast %cst_43 : f32 to vector<1x16xf32>
    %60 = arith.maximumf %59, %58 : vector<1x16xf32>
    %61 = vector.broadcast %cst_44 : f32 to vector<1x16xf32>
    %62 = arith.minimumf %61, %60 : vector<1x16xf32>
    %cst_45 = arith.constant 9.99999993E-9 : f32
    %63 = vector.broadcast %cst_45 : f32 to vector<1x16xf32>
    %64 = arith.addf %58, %63 : vector<1x16xf32>
    %65 = tpu.reciprocal %64 {approx = true} : vector<1x16xf32> -> vector<1x16xf32>
    %cst_46 = arith.constant 5.000000e+00 : f32
    %66 = vector.broadcast %cst_46 : f32 to vector<1x16xf32>
    %67 = arith.mulf %66, %65 : vector<1x16xf32>
    %68 = arith.mulf %67, %62 : vector<1x16xf32>
    %69 = vector.broadcast %68 : vector<1x16xf32> to vector<32x16xf32>
    %70 = arith.mulf %56, %69 : vector<32x16xf32>
    %c0_47 = arith.constant 0 : index
    %c0_48 = arith.constant 0 : index
    %71 = vector.load %arg4[%c0_47, %c0_48] : memref<32x1xf32, #tpu.memory_space<vmem>>, vector<32x1xf32>
    %72 = vector.broadcast %71 : vector<32x1xf32> to vector<32x16xf32>
    %73 = vector.broadcast %62 : vector<1x16xf32> to vector<32x16xf32>
    %74 = arith.mulf %72, %73 : vector<32x16xf32>
    %75 = arith.addf %70, %74 : vector<32x16xf32>
    %cst_49 = arith.constant 0.000000e+00 : f32
    %76 = vector.broadcast %cst_49 : f32 to vector<32x16xf32>
    %77 = arith.maximumf %75, %76 : vector<32x16xf32>
    %78 = vector.broadcast %62 : vector<1x16xf32> to vector<32x16xf32>
    %79 = arith.mulf %77, %78 : vector<32x16xf32>
    %cst_50 = arith.constant 0.000000e+00 : f32
    %80 = vector.broadcast %cst_50 : f32 to vector<32x16xf32>
    %cst_51 = arith.constant 0.000000e+00 : f32
    %81 = vector.broadcast %cst_51 : f32 to vector<16x16xf32>
    %c0_52 = arith.constant 0 : index
    %c0_53 = arith.constant 0 : index
    %c0_54 = arith.constant 0 : index
    %82 = vector.load %arg8[%c0_52, %c0_53, %c0_54] : memref<3x16x16xf32, #tpu.memory_space<vmem>>, vector<1x16x16xf32>
    %83 = vector.shape_cast %82 : vector<1x16x16xf32> to vector<16x16xf32>
    %cst_55 = arith.constant dense<0.000000e+00> : vector<32x16xf32>
    %84 = tpu.matmul %79, %83, %cst_55 {dimension_numbers = #tpu.dot_dimension_numbers<[1], [0], [0], [1], [0, 0, 1, 1], [], []>} : vector<32x16xf32>, vector<16x16xf32>, vector<32x16xf32> -> vector<32x16xf32>
    %c0_56 = arith.constant 0 : index
    %c0_57 = arith.constant 0 : index
    %c0_58 = arith.constant 0 : index
    %85 = vector.load %arg6[%c0_56, %c0_57, %c0_58] : memref<3x32x32xf32, #tpu.memory_space<vmem>>, vector<1x32x32xf32>
    %86 = vector.shape_cast %85 : vector<1x32x32xf32> to vector<32x32xf32>
    %87 = arith.truncf %84 : vector<32x16xf32> to vector<32x16xbf16>
    %88 = arith.truncf %86 : vector<32x32xf32> to vector<32x32xbf16>
    %cst_59 = arith.constant dense<0.000000e+00> : vector<32x16xf32>
    %89 = tpu.matmul %88, %87, %cst_59 {dimension_numbers = #tpu.dot_dimension_numbers<[1], [0], [0], [1], [0, 0, 1, 1], [], []>} : vector<32x32xbf16>, vector<32x16xbf16>, vector<32x16xf32> -> vector<32x16xf32>
    %90 = arith.addf %80, %89 : vector<32x16xf32>
    %91 = arith.addf %81, %83 : vector<16x16xf32>
    %c1_60 = arith.constant 1 : index
    %c0_61 = arith.constant 0 : index
    %c0_62 = arith.constant 0 : index
    %92 = vector.load %arg8[%c1_60, %c0_61, %c0_62] : memref<3x16x16xf32, #tpu.memory_space<vmem>>, vector<1x16x16xf32>
    %93 = vector.shape_cast %92 : vector<1x16x16xf32> to vector<16x16xf32>
    %cst_63 = arith.constant dense<0.000000e+00> : vector<32x16xf32>
    %94 = tpu.matmul %79, %93, %cst_63 {dimension_numbers = #tpu.dot_dimension_numbers<[1], [0], [0], [1], [0, 0, 1, 1], [], []>} : vector<32x16xf32>, vector<16x16xf32>, vector<32x16xf32> -> vector<32x16xf32>
    %c1_64 = arith.constant 1 : index
    %c0_65 = arith.constant 0 : index
    %c0_66 = arith.constant 0 : index
    %95 = vector.load %arg6[%c1_64, %c0_65, %c0_66] : memref<3x32x32xf32, #tpu.memory_space<vmem>>, vector<1x32x32xf32>
    %96 = vector.shape_cast %95 : vector<1x32x32xf32> to vector<32x32xf32>
    %97 = arith.truncf %94 : vector<32x16xf32> to vector<32x16xbf16>
    %98 = arith.truncf %96 : vector<32x32xf32> to vector<32x32xbf16>
    %cst_67 = arith.constant dense<0.000000e+00> : vector<32x16xf32>
    %99 = tpu.matmul %98, %97, %cst_67 {dimension_numbers = #tpu.dot_dimension_numbers<[1], [0], [0], [1], [0, 0, 1, 1], [], []>} : vector<32x32xbf16>, vector<32x16xbf16>, vector<32x16xf32> -> vector<32x16xf32>
    %100 = arith.addf %90, %99 : vector<32x16xf32>
    %101 = arith.addf %91, %93 : vector<16x16xf32>
    %c2_68 = arith.constant 2 : index
    %c0_69 = arith.constant 0 : index
    %c0_70 = arith.constant 0 : index
    %102 = vector.load %arg8[%c2_68, %c0_69, %c0_70] : memref<3x16x16xf32, #tpu.memory_space<vmem>>, vector<1x16x16xf32>
    %103 = vector.shape_cast %102 : vector<1x16x16xf32> to vector<16x16xf32>
    %cst_71 = arith.constant dense<0.000000e+00> : vector<32x16xf32>
    %104 = tpu.matmul %79, %103, %cst_71 {dimension_numbers = #tpu.dot_dimension_numbers<[1], [0], [0], [1], [0, 0, 1, 1], [], []>} : vector<32x16xf32>, vector<16x16xf32>, vector<32x16xf32> -> vector<32x16xf32>
    %c2_72 = arith.constant 2 : index
    %c0_73 = arith.constant 0 : index
    %c0_74 = arith.constant 0 : index
    %105 = vector.load %arg6[%c2_72, %c0_73, %c0_74] : memref<3x32x32xf32, #tpu.memory_space<vmem>>, vector<1x32x32xf32>
    %106 = vector.shape_cast %105 : vector<1x32x32xf32> to vector<32x32xf32>
    %107 = arith.truncf %104 : vector<32x16xf32> to vector<32x16xbf16>
    %108 = arith.truncf %106 : vector<32x32xf32> to vector<32x32xbf16>
    %cst_75 = arith.constant dense<0.000000e+00> : vector<32x16xf32>
    %109 = tpu.matmul %108, %107, %cst_75 {dimension_numbers = #tpu.dot_dimension_numbers<[1], [0], [0], [1], [0, 0, 1, 1], [], []>} : vector<32x32xbf16>, vector<32x16xbf16>, vector<32x16xf32> -> vector<32x16xf32>
    %110 = arith.addf %100, %109 : vector<32x16xf32>
    %111 = arith.addf %101, %103 : vector<16x16xf32>
    %cst_76 = arith.constant dense<0.000000e+00> : vector<1x16xf32>
    %112 = tpu.matmul %62, %111, %cst_76 {dimension_numbers = #tpu.dot_dimension_numbers<[1], [0], [0], [1], [0, 0, 1, 1], [], []>} : vector<1x16xf32>, vector<16x16xf32>, vector<1x16xf32> -> vector<1x16xf32>
    %cst_77 = arith.constant 0.000000e+00 : f32
    %cst_78 = arith.constant 1.000000e+00 : f32
    %113 = vector.broadcast %cst_77 : f32 to vector<1x16xf32>
    %114 = arith.maximumf %113, %112 : vector<1x16xf32>
    %115 = vector.broadcast %cst_78 : f32 to vector<1x16xf32>
    %116 = arith.minimumf %115, %114 : vector<1x16xf32>
    %cst_79 = arith.constant 9.99999993E-9 : f32
    %117 = vector.broadcast %cst_79 : f32 to vector<1x16xf32>
    %118 = arith.addf %112, %117 : vector<1x16xf32>
    %119 = tpu.reciprocal %118 {approx = true} : vector<1x16xf32> -> vector<1x16xf32>
    %cst_80 = arith.constant 3.000000e+00 : f32
    %120 = vector.broadcast %cst_80 : f32 to vector<1x16xf32>
    %121 = arith.mulf %120, %119 : vector<1x16xf32>
    %122 = arith.mulf %121, %116 : vector<1x16xf32>
    %123 = vector.broadcast %122 : vector<1x16xf32> to vector<32x16xf32>
    %124 = arith.mulf %110, %123 : vector<32x16xf32>
    %c0_81 = arith.constant 0 : index
    %c0_82 = arith.constant 0 : index
    %125 = vector.load %arg7[%c0_81, %c0_82] : memref<32x1xf32, #tpu.memory_space<vmem>>, vector<32x1xf32>
    %126 = vector.broadcast %125 : vector<32x1xf32> to vector<32x16xf32>
    %127 = vector.broadcast %116 : vector<1x16xf32> to vector<32x16xf32>
    %128 = arith.mulf %126, %127 : vector<32x16xf32>
    %129 = arith.addf %124, %128 : vector<32x16xf32>
    %cst_83 = arith.constant 0.000000e+00 : f32
    %130 = vector.broadcast %cst_83 : f32 to vector<32x16xf32>
    %131 = arith.maximumf %129, %130 : vector<32x16xf32>
    %132 = vector.broadcast %116 : vector<1x16xf32> to vector<32x16xf32>
    %133 = arith.mulf %131, %132 : vector<32x16xf32>
    %cst_84 = arith.constant 0.000000e+00 : f32
    %134 = vector.broadcast %cst_84 : f32 to vector<64x8xf32>
    %cst_85 = arith.constant 0.000000e+00 : f32
    %135 = vector.broadcast %cst_85 : f32 to vector<16x8xf32>
    %c0_86 = arith.constant 0 : index
    %c0_87 = arith.constant 0 : index
    %c0_88 = arith.constant 0 : index
    %136 = vector.load %arg11[%c0_86, %c0_87, %c0_88] : memref<3x16x8xf32, #tpu.memory_space<vmem>>, vector<1x16x8xf32>
    %137 = vector.shape_cast %136 : vector<1x16x8xf32> to vector<16x8xf32>
    %cst_89 = arith.constant dense<0.000000e+00> : vector<32x8xf32>
    %138 = tpu.matmul %133, %137, %cst_89 {dimension_numbers = #tpu.dot_dimension_numbers<[1], [0], [0], [1], [0, 0, 1, 1], [], []>} : vector<32x16xf32>, vector<16x8xf32>, vector<32x8xf32> -> vector<32x8xf32>
    %c0_90 = arith.constant 0 : index
    %c0_91 = arith.constant 0 : index
    %c0_92 = arith.constant 0 : index
    %139 = vector.load %arg9[%c0_90, %c0_91, %c0_92] : memref<3x64x32xf32, #tpu.memory_space<vmem>>, vector<1x64x32xf32>
    %140 = vector.shape_cast %139 : vector<1x64x32xf32> to vector<64x32xf32>
    %141 = arith.truncf %138 : vector<32x8xf32> to vector<32x8xbf16>
    %142 = arith.truncf %140 : vector<64x32xf32> to vector<64x32xbf16>
    %cst_93 = arith.constant dense<0.000000e+00> : vector<64x8xf32>
    %143 = tpu.matmul %142, %141, %cst_93 {dimension_numbers = #tpu.dot_dimension_numbers<[1], [0], [0], [1], [0, 0, 1, 1], [], []>} : vector<64x32xbf16>, vector<32x8xbf16>, vector<64x8xf32> -> vector<64x8xf32>
    %144 = arith.addf %134, %143 : vector<64x8xf32>
    %145 = arith.addf %135, %137 : vector<16x8xf32>
    %c1_94 = arith.constant 1 : index
    %c0_95 = arith.constant 0 : index
    %c0_96 = arith.constant 0 : index
    %146 = vector.load %arg11[%c1_94, %c0_95, %c0_96] : memref<3x16x8xf32, #tpu.memory_space<vmem>>, vector<1x16x8xf32>
    %147 = vector.shape_cast %146 : vector<1x16x8xf32> to vector<16x8xf32>
    %cst_97 = arith.constant dense<0.000000e+00> : vector<32x8xf32>
    %148 = tpu.matmul %133, %147, %cst_97 {dimension_numbers = #tpu.dot_dimension_numbers<[1], [0], [0], [1], [0, 0, 1, 1], [], []>} : vector<32x16xf32>, vector<16x8xf32>, vector<32x8xf32> -> vector<32x8xf32>
    %c1_98 = arith.constant 1 : index
    %c0_99 = arith.constant 0 : index
    %c0_100 = arith.constant 0 : index
    %149 = vector.load %arg9[%c1_98, %c0_99, %c0_100] : memref<3x64x32xf32, #tpu.memory_space<vmem>>, vector<1x64x32xf32>
    %150 = vector.shape_cast %149 : vector<1x64x32xf32> to vector<64x32xf32>
    %151 = arith.truncf %148 : vector<32x8xf32> to vector<32x8xbf16>
    %152 = arith.truncf %150 : vector<64x32xf32> to vector<64x32xbf16>
    %cst_101 = arith.constant dense<0.000000e+00> : vector<64x8xf32>
    %153 = tpu.matmul %152, %151, %cst_101 {dimension_numbers = #tpu.dot_dimension_numbers<[1], [0], [0], [1], [0, 0, 1, 1], [], []>} : vector<64x32xbf16>, vector<32x8xbf16>, vector<64x8xf32> -> vector<64x8xf32>
    %154 = arith.addf %144, %153 : vector<64x8xf32>
    %155 = arith.addf %145, %147 : vector<16x8xf32>
    %c2_102 = arith.constant 2 : index
    %c0_103 = arith.constant 0 : index
    %c0_104 = arith.constant 0 : index
    %156 = vector.load %arg11[%c2_102, %c0_103, %c0_104] : memref<3x16x8xf32, #tpu.memory_space<vmem>>, vector<1x16x8xf32>
    %157 = vector.shape_cast %156 : vector<1x16x8xf32> to vector<16x8xf32>
    %cst_105 = arith.constant dense<0.000000e+00> : vector<32x8xf32>
    %158 = tpu.matmul %133, %157, %cst_105 {dimension_numbers = #tpu.dot_dimension_numbers<[1], [0], [0], [1], [0, 0, 1, 1], [], []>} : vector<32x16xf32>, vector<16x8xf32>, vector<32x8xf32> -> vector<32x8xf32>
    %c2_106 = arith.constant 2 : index
    %c0_107 = arith.constant 0 : index
    %c0_108 = arith.constant 0 : index
    %159 = vector.load %arg9[%c2_106, %c0_107, %c0_108] : memref<3x64x32xf32, #tpu.memory_space<vmem>>, vector<1x64x32xf32>
    %160 = vector.shape_cast %159 : vector<1x64x32xf32> to vector<64x32xf32>
    %161 = arith.truncf %158 : vector<32x8xf32> to vector<32x8xbf16>
    %162 = arith.truncf %160 : vector<64x32xf32> to vector<64x32xbf16>
    %cst_109 = arith.constant dense<0.000000e+00> : vector<64x8xf32>
    %163 = tpu.matmul %162, %161, %cst_109 {dimension_numbers = #tpu.dot_dimension_numbers<[1], [0], [0], [1], [0, 0, 1, 1], [], []>} : vector<64x32xbf16>, vector<32x8xbf16>, vector<64x8xf32> -> vector<64x8xf32>
    %164 = arith.addf %154, %163 : vector<64x8xf32>
    %165 = arith.addf %155, %157 : vector<16x8xf32>
    %cst_110 = arith.constant dense<0.000000e+00> : vector<1x8xf32>
    %166 = tpu.matmul %116, %165, %cst_110 {dimension_numbers = #tpu.dot_dimension_numbers<[1], [0], [0], [1], [0, 0, 1, 1], [], []>} : vector<1x16xf32>, vector<16x8xf32>, vector<1x8xf32> -> vector<1x8xf32>
    %cst_111 = arith.constant 0.000000e+00 : f32
    %cst_112 = arith.constant 1.000000e+00 : f32
    %167 = vector.broadcast %cst_111 : f32 to vector<1x8xf32>
    %168 = arith.maximumf %167, %166 : vector<1x8xf32>
    %169 = vector.broadcast %cst_112 : f32 to vector<1x8xf32>
    %170 = arith.minimumf %169, %168 : vector<1x8xf32>
    %cst_113 = arith.constant 9.99999993E-9 : f32
    %171 = vector.broadcast %cst_113 : f32 to vector<1x8xf32>
    %172 = arith.addf %166, %171 : vector<1x8xf32>
    %173 = tpu.reciprocal %172 {approx = true} : vector<1x8xf32> -> vector<1x8xf32>
    %cst_114 = arith.constant 3.000000e+00 : f32
    %174 = vector.broadcast %cst_114 : f32 to vector<1x8xf32>
    %175 = arith.mulf %174, %173 : vector<1x8xf32>
    %176 = arith.mulf %175, %170 : vector<1x8xf32>
    %177 = vector.broadcast %176 : vector<1x8xf32> to vector<64x8xf32>
    %178 = arith.mulf %164, %177 : vector<64x8xf32>
    %c0_115 = arith.constant 0 : index
    %c0_116 = arith.constant 0 : index
    %179 = vector.load %arg10[%c0_115, %c0_116] : memref<64x1xf32, #tpu.memory_space<vmem>>, vector<64x1xf32>
    %180 = vector.broadcast %179 : vector<64x1xf32> to vector<64x8xf32>
    %181 = vector.broadcast %170 : vector<1x8xf32> to vector<64x8xf32>
    %182 = arith.mulf %180, %181 : vector<64x8xf32>
    %183 = arith.addf %178, %182 : vector<64x8xf32>
    %cst_117 = arith.constant 0.000000e+00 : f32
    %184 = vector.broadcast %cst_117 : f32 to vector<64x8xf32>
    %185 = arith.maximumf %183, %184 : vector<64x8xf32>
    %186 = vector.broadcast %170 : vector<1x8xf32> to vector<64x8xf32>
    %187 = arith.mulf %185, %186 : vector<64x8xf32>
    %cst_118 = arith.constant 0.000000e+00 : f32
    %188 = vector.broadcast %cst_118 : f32 to vector<64x8xf32>
    %cst_119 = arith.constant 0.000000e+00 : f32
    %189 = vector.broadcast %cst_119 : f32 to vector<8x8xf32>
    %c0_120 = arith.constant 0 : index
    %c0_121 = arith.constant 0 : index
    %c0_122 = arith.constant 0 : index
    %190 = vector.load %arg14[%c0_120, %c0_121, %c0_122] : memref<3x8x8xf32, #tpu.memory_space<vmem>>, vector<1x8x8xf32>
    %191 = vector.shape_cast %190 : vector<1x8x8xf32> to vector<8x8xf32>
    %cst_123 = arith.constant dense<0.000000e+00> : vector<64x8xf32>
    %192 = tpu.matmul %187, %191, %cst_123 {dimension_numbers = #tpu.dot_dimension_numbers<[1], [0], [0], [1], [0, 0, 1, 1], [], []>} : vector<64x8xf32>, vector<8x8xf32>, vector<64x8xf32> -> vector<64x8xf32>
    %c0_124 = arith.constant 0 : index
    %c0_125 = arith.constant 0 : index
    %c0_126 = arith.constant 0 : index
    %193 = vector.load %arg12[%c0_124, %c0_125, %c0_126] : memref<3x64x64xf32, #tpu.memory_space<vmem>>, vector<1x64x64xf32>
    %194 = vector.shape_cast %193 : vector<1x64x64xf32> to vector<64x64xf32>
    %195 = arith.truncf %192 : vector<64x8xf32> to vector<64x8xbf16>
    %196 = arith.truncf %194 : vector<64x64xf32> to vector<64x64xbf16>
    %cst_127 = arith.constant dense<0.000000e+00> : vector<64x8xf32>
    %197 = tpu.matmul %196, %195, %cst_127 {dimension_numbers = #tpu.dot_dimension_numbers<[1], [0], [0], [1], [0, 0, 1, 1], [], []>} : vector<64x64xbf16>, vector<64x8xbf16>, vector<64x8xf32> -> vector<64x8xf32>
    %198 = arith.addf %188, %197 : vector<64x8xf32>
    %199 = arith.addf %189, %191 : vector<8x8xf32>
    %c1_128 = arith.constant 1 : index
    %c0_129 = arith.constant 0 : index
    %c0_130 = arith.constant 0 : index
    %200 = vector.load %arg14[%c1_128, %c0_129, %c0_130] : memref<3x8x8xf32, #tpu.memory_space<vmem>>, vector<1x8x8xf32>
    %201 = vector.shape_cast %200 : vector<1x8x8xf32> to vector<8x8xf32>
    %cst_131 = arith.constant dense<0.000000e+00> : vector<64x8xf32>
    %202 = tpu.matmul %187, %201, %cst_131 {dimension_numbers = #tpu.dot_dimension_numbers<[1], [0], [0], [1], [0, 0, 1, 1], [], []>} : vector<64x8xf32>, vector<8x8xf32>, vector<64x8xf32> -> vector<64x8xf32>
    %c1_132 = arith.constant 1 : index
    %c0_133 = arith.constant 0 : index
    %c0_134 = arith.constant 0 : index
    %203 = vector.load %arg12[%c1_132, %c0_133, %c0_134] : memref<3x64x64xf32, #tpu.memory_space<vmem>>, vector<1x64x64xf32>
    %204 = vector.shape_cast %203 : vector<1x64x64xf32> to vector<64x64xf32>
    %205 = arith.truncf %202 : vector<64x8xf32> to vector<64x8xbf16>
    %206 = arith.truncf %204 : vector<64x64xf32> to vector<64x64xbf16>
    %cst_135 = arith.constant dense<0.000000e+00> : vector<64x8xf32>
    %207 = tpu.matmul %206, %205, %cst_135 {dimension_numbers = #tpu.dot_dimension_numbers<[1], [0], [0], [1], [0, 0, 1, 1], [], []>} : vector<64x64xbf16>, vector<64x8xbf16>, vector<64x8xf32> -> vector<64x8xf32>
    %208 = arith.addf %198, %207 : vector<64x8xf32>
    %209 = arith.addf %199, %201 : vector<8x8xf32>
    %c2_136 = arith.constant 2 : index
    %c0_137 = arith.constant 0 : index
    %c0_138 = arith.constant 0 : index
    %210 = vector.load %arg14[%c2_136, %c0_137, %c0_138] : memref<3x8x8xf32, #tpu.memory_space<vmem>>, vector<1x8x8xf32>
    %211 = vector.shape_cast %210 : vector<1x8x8xf32> to vector<8x8xf32>
    %cst_139 = arith.constant dense<0.000000e+00> : vector<64x8xf32>
    %212 = tpu.matmul %187, %211, %cst_139 {dimension_numbers = #tpu.dot_dimension_numbers<[1], [0], [0], [1], [0, 0, 1, 1], [], []>} : vector<64x8xf32>, vector<8x8xf32>, vector<64x8xf32> -> vector<64x8xf32>
    %c2_140 = arith.constant 2 : index
    %c0_141 = arith.constant 0 : index
    %c0_142 = arith.constant 0 : index
    %213 = vector.load %arg12[%c2_140, %c0_141, %c0_142] : memref<3x64x64xf32, #tpu.memory_space<vmem>>, vector<1x64x64xf32>
    %214 = vector.shape_cast %213 : vector<1x64x64xf32> to vector<64x64xf32>
    %215 = arith.truncf %212 : vector<64x8xf32> to vector<64x8xbf16>
    %216 = arith.truncf %214 : vector<64x64xf32> to vector<64x64xbf16>
    %cst_143 = arith.constant dense<0.000000e+00> : vector<64x8xf32>
    %217 = tpu.matmul %216, %215, %cst_143 {dimension_numbers = #tpu.dot_dimension_numbers<[1], [0], [0], [1], [0, 0, 1, 1], [], []>} : vector<64x64xbf16>, vector<64x8xbf16>, vector<64x8xf32> -> vector<64x8xf32>
    %218 = arith.addf %208, %217 : vector<64x8xf32>
    %219 = arith.addf %209, %211 : vector<8x8xf32>
    %cst_144 = arith.constant dense<0.000000e+00> : vector<1x8xf32>
    %220 = tpu.matmul %170, %219, %cst_144 {dimension_numbers = #tpu.dot_dimension_numbers<[1], [0], [0], [1], [0, 0, 1, 1], [], []>} : vector<1x8xf32>, vector<8x8xf32>, vector<1x8xf32> -> vector<1x8xf32>
    %cst_145 = arith.constant 0.000000e+00 : f32
    %cst_146 = arith.constant 1.000000e+00 : f32
    %221 = vector.broadcast %cst_145 : f32 to vector<1x8xf32>
    %222 = arith.maximumf %221, %220 : vector<1x8xf32>
    %223 = vector.broadcast %cst_146 : f32 to vector<1x8xf32>
    %224 = arith.minimumf %223, %222 : vector<1x8xf32>
    %cst_147 = arith.constant 9.99999993E-9 : f32
    %225 = vector.broadcast %cst_147 : f32 to vector<1x8xf32>
    %226 = arith.addf %220, %225 : vector<1x8xf32>
    %227 = tpu.reciprocal %226 {approx = true} : vector<1x8xf32> -> vector<1x8xf32>
    %cst_148 = arith.constant 3.000000e+00 : f32
    %228 = vector.broadcast %cst_148 : f32 to vector<1x8xf32>
    %229 = arith.mulf %228, %227 : vector<1x8xf32>
    %230 = arith.mulf %229, %224 : vector<1x8xf32>
    %231 = vector.broadcast %230 : vector<1x8xf32> to vector<64x8xf32>
    %232 = arith.mulf %218, %231 : vector<64x8xf32>
    %c0_149 = arith.constant 0 : index
    %c0_150 = arith.constant 0 : index
    %233 = vector.load %arg13[%c0_149, %c0_150] : memref<64x1xf32, #tpu.memory_space<vmem>>, vector<64x1xf32>
    %234 = vector.broadcast %233 : vector<64x1xf32> to vector<64x8xf32>
    %235 = vector.broadcast %224 : vector<1x8xf32> to vector<64x8xf32>
    %236 = arith.mulf %234, %235 : vector<64x8xf32>
    %237 = arith.addf %232, %236 : vector<64x8xf32>
    %cst_151 = arith.constant 0.000000e+00 : f32
    %238 = vector.broadcast %cst_151 : f32 to vector<64x8xf32>
    %239 = arith.maximumf %237, %238 : vector<64x8xf32>
    %240 = vector.broadcast %224 : vector<1x8xf32> to vector<64x8xf32>
    %241 = arith.mulf %239, %240 : vector<64x8xf32>
    %cst_152 = arith.constant 0.000000e+00 : f32
    %242 = vector.broadcast %cst_152 : f32 to vector<64x8xf32>
    %cst_153 = arith.constant 0.000000e+00 : f32
    %243 = vector.broadcast %cst_153 : f32 to vector<8x8xf32>
    %c0_154 = arith.constant 0 : index
    %c0_155 = arith.constant 0 : index
    %c0_156 = arith.constant 0 : index
    %244 = vector.load %arg17[%c0_154, %c0_155, %c0_156] : memref<3x8x8xf32, #tpu.memory_space<vmem>>, vector<1x8x8xf32>
    %245 = vector.shape_cast %244 : vector<1x8x8xf32> to vector<8x8xf32>
    %cst_157 = arith.constant dense<0.000000e+00> : vector<64x8xf32>
    %246 = tpu.matmul %241, %245, %cst_157 {dimension_numbers = #tpu.dot_dimension_numbers<[1], [0], [0], [1], [0, 0, 1, 1], [], []>} : vector<64x8xf32>, vector<8x8xf32>, vector<64x8xf32> -> vector<64x8xf32>
    %c0_158 = arith.constant 0 : index
    %c0_159 = arith.constant 0 : index
    %c0_160 = arith.constant 0 : index
    %247 = vector.load %arg15[%c0_158, %c0_159, %c0_160] : memref<3x64x64xf32, #tpu.memory_space<vmem>>, vector<1x64x64xf32>
    %248 = vector.shape_cast %247 : vector<1x64x64xf32> to vector<64x64xf32>
    %249 = arith.truncf %246 : vector<64x8xf32> to vector<64x8xbf16>
    %250 = arith.truncf %248 : vector<64x64xf32> to vector<64x64xbf16>
    %cst_161 = arith.constant dense<0.000000e+00> : vector<64x8xf32>
    %251 = tpu.matmul %250, %249, %cst_161 {dimension_numbers = #tpu.dot_dimension_numbers<[1], [0], [0], [1], [0, 0, 1, 1], [], []>} : vector<64x64xbf16>, vector<64x8xbf16>, vector<64x8xf32> -> vector<64x8xf32>
    %252 = arith.addf %242, %251 : vector<64x8xf32>
    %253 = arith.addf %243, %245 : vector<8x8xf32>
    %c1_162 = arith.constant 1 : index
    %c0_163 = arith.constant 0 : index
    %c0_164 = arith.constant 0 : index
    %254 = vector.load %arg17[%c1_162, %c0_163, %c0_164] : memref<3x8x8xf32, #tpu.memory_space<vmem>>, vector<1x8x8xf32>
    %255 = vector.shape_cast %254 : vector<1x8x8xf32> to vector<8x8xf32>
    %cst_165 = arith.constant dense<0.000000e+00> : vector<64x8xf32>
    %256 = tpu.matmul %241, %255, %cst_165 {dimension_numbers = #tpu.dot_dimension_numbers<[1], [0], [0], [1], [0, 0, 1, 1], [], []>} : vector<64x8xf32>, vector<8x8xf32>, vector<64x8xf32> -> vector<64x8xf32>
    %c1_166 = arith.constant 1 : index
    %c0_167 = arith.constant 0 : index
    %c0_168 = arith.constant 0 : index
    %257 = vector.load %arg15[%c1_166, %c0_167, %c0_168] : memref<3x64x64xf32, #tpu.memory_space<vmem>>, vector<1x64x64xf32>
    %258 = vector.shape_cast %257 : vector<1x64x64xf32> to vector<64x64xf32>
    %259 = arith.truncf %256 : vector<64x8xf32> to vector<64x8xbf16>
    %260 = arith.truncf %258 : vector<64x64xf32> to vector<64x64xbf16>
    %cst_169 = arith.constant dense<0.000000e+00> : vector<64x8xf32>
    %261 = tpu.matmul %260, %259, %cst_169 {dimension_numbers = #tpu.dot_dimension_numbers<[1], [0], [0], [1], [0, 0, 1, 1], [], []>} : vector<64x64xbf16>, vector<64x8xbf16>, vector<64x8xf32> -> vector<64x8xf32>
    %262 = arith.addf %252, %261 : vector<64x8xf32>
    %263 = arith.addf %253, %255 : vector<8x8xf32>
    %c2_170 = arith.constant 2 : index
    %c0_171 = arith.constant 0 : index
    %c0_172 = arith.constant 0 : index
    %264 = vector.load %arg17[%c2_170, %c0_171, %c0_172] : memref<3x8x8xf32, #tpu.memory_space<vmem>>, vector<1x8x8xf32>
    %265 = vector.shape_cast %264 : vector<1x8x8xf32> to vector<8x8xf32>
    %cst_173 = arith.constant dense<0.000000e+00> : vector<64x8xf32>
    %266 = tpu.matmul %241, %265, %cst_173 {dimension_numbers = #tpu.dot_dimension_numbers<[1], [0], [0], [1], [0, 0, 1, 1], [], []>} : vector<64x8xf32>, vector<8x8xf32>, vector<64x8xf32> -> vector<64x8xf32>
    %c2_174 = arith.constant 2 : index
    %c0_175 = arith.constant 0 : index
    %c0_176 = arith.constant 0 : index
    %267 = vector.load %arg15[%c2_174, %c0_175, %c0_176] : memref<3x64x64xf32, #tpu.memory_space<vmem>>, vector<1x64x64xf32>
    %268 = vector.shape_cast %267 : vector<1x64x64xf32> to vector<64x64xf32>
    %269 = arith.truncf %266 : vector<64x8xf32> to vector<64x8xbf16>
    %270 = arith.truncf %268 : vector<64x64xf32> to vector<64x64xbf16>
    %cst_177 = arith.constant dense<0.000000e+00> : vector<64x8xf32>
    %271 = tpu.matmul %270, %269, %cst_177 {dimension_numbers = #tpu.dot_dimension_numbers<[1], [0], [0], [1], [0, 0, 1, 1], [], []>} : vector<64x64xbf16>, vector<64x8xbf16>, vector<64x8xf32> -> vector<64x8xf32>
    %272 = arith.addf %262, %271 : vector<64x8xf32>
    %273 = arith.addf %263, %265 : vector<8x8xf32>
    %cst_178 = arith.constant dense<0.000000e+00> : vector<1x8xf32>
    %274 = tpu.matmul %224, %273, %cst_178 {dimension_numbers = #tpu.dot_dimension_numbers<[1], [0], [0], [1], [0, 0, 1, 1], [], []>} : vector<1x8xf32>, vector<8x8xf32>, vector<1x8xf32> -> vector<1x8xf32>
    %cst_179 = arith.constant 0.000000e+00 : f32
    %cst_180 = arith.constant 1.000000e+00 : f32
    %275 = vector.broadcast %cst_179 : f32 to vector<1x8xf32>
    %276 = arith.maximumf %275, %274 : vector<1x8xf32>
    %277 = vector.broadcast %cst_180 : f32 to vector<1x8xf32>
    %278 = arith.minimumf %277, %276 : vector<1x8xf32>
    %cst_181 = arith.constant 9.99999993E-9 : f32
    %279 = vector.broadcast %cst_181 : f32 to vector<1x8xf32>
    %280 = arith.addf %274, %279 : vector<1x8xf32>
    %281 = tpu.reciprocal %280 {approx = true} : vector<1x8xf32> -> vector<1x8xf32>
    %cst_182 = arith.constant 3.000000e+00 : f32
    %282 = vector.broadcast %cst_182 : f32 to vector<1x8xf32>
    %283 = arith.mulf %282, %281 : vector<1x8xf32>
    %284 = arith.mulf %283, %278 : vector<1x8xf32>
    %285 = vector.broadcast %284 : vector<1x8xf32> to vector<64x8xf32>
    %286 = arith.mulf %272, %285 : vector<64x8xf32>
    %c0_183 = arith.constant 0 : index
    %c0_184 = arith.constant 0 : index
    %287 = vector.load %arg16[%c0_183, %c0_184] : memref<64x1xf32, #tpu.memory_space<vmem>>, vector<64x1xf32>
    %288 = vector.broadcast %287 : vector<64x1xf32> to vector<64x8xf32>
    %289 = vector.broadcast %278 : vector<1x8xf32> to vector<64x8xf32>
    %290 = arith.mulf %288, %289 : vector<64x8xf32>
    %291 = arith.addf %286, %290 : vector<64x8xf32>
    %cst_185 = arith.constant 0.000000e+00 : f32
    %292 = vector.broadcast %cst_185 : f32 to vector<64x8xf32>
    %293 = arith.maximumf %291, %292 : vector<64x8xf32>
    %294 = vector.broadcast %278 : vector<1x8xf32> to vector<64x8xf32>
    %295 = arith.mulf %293, %294 : vector<64x8xf32>
    %cst_186 = arith.constant 0.000000e+00 : f32
    %296 = vector.broadcast %cst_186 : f32 to vector<64x8xf32>
    %cst_187 = arith.constant 0.000000e+00 : f32
    %297 = vector.broadcast %cst_187 : f32 to vector<8x8xf32>
    %c0_188 = arith.constant 0 : index
    %c0_189 = arith.constant 0 : index
    %c0_190 = arith.constant 0 : index
    %298 = vector.load %arg20[%c0_188, %c0_189, %c0_190] : memref<3x8x8xf32, #tpu.memory_space<vmem>>, vector<1x8x8xf32>
    %299 = vector.shape_cast %298 : vector<1x8x8xf32> to vector<8x8xf32>
    %cst_191 = arith.constant dense<0.000000e+00> : vector<64x8xf32>
    %300 = tpu.matmul %295, %299, %cst_191 {dimension_numbers = #tpu.dot_dimension_numbers<[1], [0], [0], [1], [0, 0, 1, 1], [], []>} : vector<64x8xf32>, vector<8x8xf32>, vector<64x8xf32> -> vector<64x8xf32>
    %c0_192 = arith.constant 0 : index
    %c0_193 = arith.constant 0 : index
    %c0_194 = arith.constant 0 : index
    %301 = vector.load %arg18[%c0_192, %c0_193, %c0_194] : memref<3x64x64xf32, #tpu.memory_space<vmem>>, vector<1x64x64xf32>
    %302 = vector.shape_cast %301 : vector<1x64x64xf32> to vector<64x64xf32>
    %303 = arith.truncf %300 : vector<64x8xf32> to vector<64x8xbf16>
    %304 = arith.truncf %302 : vector<64x64xf32> to vector<64x64xbf16>
    %cst_195 = arith.constant dense<0.000000e+00> : vector<64x8xf32>
    %305 = tpu.matmul %304, %303, %cst_195 {dimension_numbers = #tpu.dot_dimension_numbers<[1], [0], [0], [1], [0, 0, 1, 1], [], []>} : vector<64x64xbf16>, vector<64x8xbf16>, vector<64x8xf32> -> vector<64x8xf32>
    %306 = arith.addf %296, %305 : vector<64x8xf32>
    %307 = arith.addf %297, %299 : vector<8x8xf32>
    %c1_196 = arith.constant 1 : index
    %c0_197 = arith.constant 0 : index
    %c0_198 = arith.constant 0 : index
    %308 = vector.load %arg20[%c1_196, %c0_197, %c0_198] : memref<3x8x8xf32, #tpu.memory_space<vmem>>, vector<1x8x8xf32>
    %309 = vector.shape_cast %308 : vector<1x8x8xf32> to vector<8x8xf32>
    %cst_199 = arith.constant dense<0.000000e+00> : vector<64x8xf32>
    %310 = tpu.matmul %295, %309, %cst_199 {dimension_numbers = #tpu.dot_dimension_numbers<[1], [0], [0], [1], [0, 0, 1, 1], [], []>} : vector<64x8xf32>, vector<8x8xf32>, vector<64x8xf32> -> vector<64x8xf32>
    %c1_200 = arith.constant 1 : index
    %c0_201 = arith.constant 0 : index
    %c0_202 = arith.constant 0 : index
    %311 = vector.load %arg18[%c1_200, %c0_201, %c0_202] : memref<3x64x64xf32, #tpu.memory_space<vmem>>, vector<1x64x64xf32>
    %312 = vector.shape_cast %311 : vector<1x64x64xf32> to vector<64x64xf32>
    %313 = arith.truncf %310 : vector<64x8xf32> to vector<64x8xbf16>
    %314 = arith.truncf %312 : vector<64x64xf32> to vector<64x64xbf16>
    %cst_203 = arith.constant dense<0.000000e+00> : vector<64x8xf32>
    %315 = tpu.matmul %314, %313, %cst_203 {dimension_numbers = #tpu.dot_dimension_numbers<[1], [0], [0], [1], [0, 0, 1, 1], [], []>} : vector<64x64xbf16>, vector<64x8xbf16>, vector<64x8xf32> -> vector<64x8xf32>
    %316 = arith.addf %306, %315 : vector<64x8xf32>
    %317 = arith.addf %307, %309 : vector<8x8xf32>
    %c2_204 = arith.constant 2 : index
    %c0_205 = arith.constant 0 : index
    %c0_206 = arith.constant 0 : index
    %318 = vector.load %arg20[%c2_204, %c0_205, %c0_206] : memref<3x8x8xf32, #tpu.memory_space<vmem>>, vector<1x8x8xf32>
    %319 = vector.shape_cast %318 : vector<1x8x8xf32> to vector<8x8xf32>
    %cst_207 = arith.constant dense<0.000000e+00> : vector<64x8xf32>
    %320 = tpu.matmul %295, %319, %cst_207 {dimension_numbers = #tpu.dot_dimension_numbers<[1], [0], [0], [1], [0, 0, 1, 1], [], []>} : vector<64x8xf32>, vector<8x8xf32>, vector<64x8xf32> -> vector<64x8xf32>
    %c2_208 = arith.constant 2 : index
    %c0_209 = arith.constant 0 : index
    %c0_210 = arith.constant 0 : index
    %321 = vector.load %arg18[%c2_208, %c0_209, %c0_210] : memref<3x64x64xf32, #tpu.memory_space<vmem>>, vector<1x64x64xf32>
    %322 = vector.shape_cast %321 : vector<1x64x64xf32> to vector<64x64xf32>
    %323 = arith.truncf %320 : vector<64x8xf32> to vector<64x8xbf16>
    %324 = arith.truncf %322 : vector<64x64xf32> to vector<64x64xbf16>
    %cst_211 = arith.constant dense<0.000000e+00> : vector<64x8xf32>
    %325 = tpu.matmul %324, %323, %cst_211 {dimension_numbers = #tpu.dot_dimension_numbers<[1], [0], [0], [1], [0, 0, 1, 1], [], []>} : vector<64x64xbf16>, vector<64x8xbf16>, vector<64x8xf32> -> vector<64x8xf32>
    %326 = arith.addf %316, %325 : vector<64x8xf32>
    %327 = arith.addf %317, %319 : vector<8x8xf32>
    %cst_212 = arith.constant dense<0.000000e+00> : vector<1x8xf32>
    %328 = tpu.matmul %278, %327, %cst_212 {dimension_numbers = #tpu.dot_dimension_numbers<[1], [0], [0], [1], [0, 0, 1, 1], [], []>} : vector<1x8xf32>, vector<8x8xf32>, vector<1x8xf32> -> vector<1x8xf32>
    %cst_213 = arith.constant 0.000000e+00 : f32
    %cst_214 = arith.constant 1.000000e+00 : f32
    %329 = vector.broadcast %cst_213 : f32 to vector<1x8xf32>
    %330 = arith.maximumf %329, %328 : vector<1x8xf32>
    %331 = vector.broadcast %cst_214 : f32 to vector<1x8xf32>
    %332 = arith.minimumf %331, %330 : vector<1x8xf32>
    %cst_215 = arith.constant 9.99999993E-9 : f32
    %333 = vector.broadcast %cst_215 : f32 to vector<1x8xf32>
    %334 = arith.addf %328, %333 : vector<1x8xf32>
    %335 = tpu.reciprocal %334 {approx = true} : vector<1x8xf32> -> vector<1x8xf32>
    %cst_216 = arith.constant 3.000000e+00 : f32
    %336 = vector.broadcast %cst_216 : f32 to vector<1x8xf32>
    %337 = arith.mulf %336, %335 : vector<1x8xf32>
    %338 = arith.mulf %337, %332 : vector<1x8xf32>
    %339 = vector.broadcast %338 : vector<1x8xf32> to vector<64x8xf32>
    %340 = arith.mulf %326, %339 : vector<64x8xf32>
    %c0_217 = arith.constant 0 : index
    %c0_218 = arith.constant 0 : index
    %341 = vector.load %arg19[%c0_217, %c0_218] : memref<64x1xf32, #tpu.memory_space<vmem>>, vector<64x1xf32>
    %342 = vector.broadcast %341 : vector<64x1xf32> to vector<64x8xf32>
    %343 = vector.broadcast %332 : vector<1x8xf32> to vector<64x8xf32>
    %344 = arith.mulf %342, %343 : vector<64x8xf32>
    %345 = arith.addf %340, %344 : vector<64x8xf32>
    %cst_219 = arith.constant 0.000000e+00 : f32
    %346 = vector.broadcast %cst_219 : f32 to vector<64x8xf32>
    %347 = arith.maximumf %345, %346 : vector<64x8xf32>
    %348 = vector.broadcast %332 : vector<1x8xf32> to vector<64x8xf32>
    %349 = arith.mulf %347, %348 : vector<64x8xf32>
    %cst_220 = arith.constant 0.000000e+00 : f32
    %350 = vector.broadcast %cst_220 : f32 to vector<64x16xf32>
    %cst_221 = arith.constant 0.000000e+00 : f32
    %351 = vector.broadcast %cst_221 : f32 to vector<8x16xf32>
    %c0_222 = arith.constant 0 : index
    %c0_223 = arith.constant 0 : index
    %c0_224 = arith.constant 0 : index
    %352 = vector.load %arg23[%c0_222, %c0_223, %c0_224] : memref<4x8x16xf32, #tpu.memory_space<vmem>>, vector<1x8x16xf32>
    %353 = vector.shape_cast %352 : vector<1x8x16xf32> to vector<8x16xf32>
    %cst_225 = arith.constant dense<0.000000e+00> : vector<64x16xf32>
    %354 = tpu.matmul %349, %353, %cst_225 {dimension_numbers = #tpu.dot_dimension_numbers<[1], [0], [0], [1], [0, 0, 1, 1], [], []>} : vector<64x8xf32>, vector<8x16xf32>, vector<64x16xf32> -> vector<64x16xf32>
    %c0_226 = arith.constant 0 : index
    %c0_227 = arith.constant 0 : index
    %c0_228 = arith.constant 0 : index
    %355 = vector.load %arg21[%c0_226, %c0_227, %c0_228] : memref<4x64x64xf32, #tpu.memory_space<vmem>>, vector<1x64x64xf32>
    %356 = vector.shape_cast %355 : vector<1x64x64xf32> to vector<64x64xf32>
    %357 = arith.truncf %354 : vector<64x16xf32> to vector<64x16xbf16>
    %358 = arith.truncf %356 : vector<64x64xf32> to vector<64x64xbf16>
    %cst_229 = arith.constant dense<0.000000e+00> : vector<64x16xf32>
    %359 = tpu.matmul %358, %357, %cst_229 {dimension_numbers = #tpu.dot_dimension_numbers<[1], [0], [0], [1], [0, 0, 1, 1], [], []>} : vector<64x64xbf16>, vector<64x16xbf16>, vector<64x16xf32> -> vector<64x16xf32>
    %360 = arith.addf %350, %359 : vector<64x16xf32>
    %361 = arith.addf %351, %353 : vector<8x16xf32>
    %c1_230 = arith.constant 1 : index
    %c0_231 = arith.constant 0 : index
    %c0_232 = arith.constant 0 : index
    %362 = vector.load %arg23[%c1_230, %c0_231, %c0_232] : memref<4x8x16xf32, #tpu.memory_space<vmem>>, vector<1x8x16xf32>
    %363 = vector.shape_cast %362 : vector<1x8x16xf32> to vector<8x16xf32>
    %cst_233 = arith.constant dense<0.000000e+00> : vector<64x16xf32>
    %364 = tpu.matmul %349, %363, %cst_233 {dimension_numbers = #tpu.dot_dimension_numbers<[1], [0], [0], [1], [0, 0, 1, 1], [], []>} : vector<64x8xf32>, vector<8x16xf32>, vector<64x16xf32> -> vector<64x16xf32>
    %c1_234 = arith.constant 1 : index
    %c0_235 = arith.constant 0 : index
    %c0_236 = arith.constant 0 : index
    %365 = vector.load %arg21[%c1_234, %c0_235, %c0_236] : memref<4x64x64xf32, #tpu.memory_space<vmem>>, vector<1x64x64xf32>
    %366 = vector.shape_cast %365 : vector<1x64x64xf32> to vector<64x64xf32>
    %367 = arith.truncf %364 : vector<64x16xf32> to vector<64x16xbf16>
    %368 = arith.truncf %366 : vector<64x64xf32> to vector<64x64xbf16>
    %cst_237 = arith.constant dense<0.000000e+00> : vector<64x16xf32>
    %369 = tpu.matmul %368, %367, %cst_237 {dimension_numbers = #tpu.dot_dimension_numbers<[1], [0], [0], [1], [0, 0, 1, 1], [], []>} : vector<64x64xbf16>, vector<64x16xbf16>, vector<64x16xf32> -> vector<64x16xf32>
    %370 = arith.addf %360, %369 : vector<64x16xf32>
    %371 = arith.addf %361, %363 : vector<8x16xf32>
    %c2_238 = arith.constant 2 : index
    %c0_239 = arith.constant 0 : index
    %c0_240 = arith.constant 0 : index
    %372 = vector.load %arg23[%c2_238, %c0_239, %c0_240] : memref<4x8x16xf32, #tpu.memory_space<vmem>>, vector<1x8x16xf32>
    %373 = vector.shape_cast %372 : vector<1x8x16xf32> to vector<8x16xf32>
    %cst_241 = arith.constant dense<0.000000e+00> : vector<64x16xf32>
    %374 = tpu.matmul %349, %373, %cst_241 {dimension_numbers = #tpu.dot_dimension_numbers<[1], [0], [0], [1], [0, 0, 1, 1], [], []>} : vector<64x8xf32>, vector<8x16xf32>, vector<64x16xf32> -> vector<64x16xf32>
    %c2_242 = arith.constant 2 : index
    %c0_243 = arith.constant 0 : index
    %c0_244 = arith.constant 0 : index
    %375 = vector.load %arg21[%c2_242, %c0_243, %c0_244] : memref<4x64x64xf32, #tpu.memory_space<vmem>>, vector<1x64x64xf32>
    %376 = vector.shape_cast %375 : vector<1x64x64xf32> to vector<64x64xf32>
    %377 = arith.truncf %374 : vector<64x16xf32> to vector<64x16xbf16>
    %378 = arith.truncf %376 : vector<64x64xf32> to vector<64x64xbf16>
    %cst_245 = arith.constant dense<0.000000e+00> : vector<64x16xf32>
    %379 = tpu.matmul %378, %377, %cst_245 {dimension_numbers = #tpu.dot_dimension_numbers<[1], [0], [0], [1], [0, 0, 1, 1], [], []>} : vector<64x64xbf16>, vector<64x16xbf16>, vector<64x16xf32> -> vector<64x16xf32>
    %380 = arith.addf %370, %379 : vector<64x16xf32>
    %381 = arith.addf %371, %373 : vector<8x16xf32>
    %c3_246 = arith.constant 3 : index
    %c0_247 = arith.constant 0 : index
    %c0_248 = arith.constant 0 : index
    %382 = vector.load %arg23[%c3_246, %c0_247, %c0_248] : memref<4x8x16xf32, #tpu.memory_space<vmem>>, vector<1x8x16xf32>
    %383 = vector.shape_cast %382 : vector<1x8x16xf32> to vector<8x16xf32>
    %cst_249 = arith.constant dense<0.000000e+00> : vector<64x16xf32>
    %384 = tpu.matmul %349, %383, %cst_249 {dimension_numbers = #tpu.dot_dimension_numbers<[1], [0], [0], [1], [0, 0, 1, 1], [], []>} : vector<64x8xf32>, vector<8x16xf32>, vector<64x16xf32> -> vector<64x16xf32>
    %c3_250 = arith.constant 3 : index
    %c0_251 = arith.constant 0 : index
    %c0_252 = arith.constant 0 : index
    %385 = vector.load %arg21[%c3_250, %c0_251, %c0_252] : memref<4x64x64xf32, #tpu.memory_space<vmem>>, vector<1x64x64xf32>
    %386 = vector.shape_cast %385 : vector<1x64x64xf32> to vector<64x64xf32>
    %387 = arith.truncf %384 : vector<64x16xf32> to vector<64x16xbf16>
    %388 = arith.truncf %386 : vector<64x64xf32> to vector<64x64xbf16>
    %cst_253 = arith.constant dense<0.000000e+00> : vector<64x16xf32>
    %389 = tpu.matmul %388, %387, %cst_253 {dimension_numbers = #tpu.dot_dimension_numbers<[1], [0], [0], [1], [0, 0, 1, 1], [], []>} : vector<64x64xbf16>, vector<64x16xbf16>, vector<64x16xf32> -> vector<64x16xf32>
    %390 = arith.addf %380, %389 : vector<64x16xf32>
    %391 = arith.addf %381, %383 : vector<8x16xf32>
    %cst_254 = arith.constant dense<0.000000e+00> : vector<1x16xf32>
    %392 = tpu.matmul %332, %391, %cst_254 {dimension_numbers = #tpu.dot_dimension_numbers<[1], [0], [0], [1], [0, 0, 1, 1], [], []>} : vector<1x8xf32>, vector<8x16xf32>, vector<1x16xf32> -> vector<1x16xf32>
    %cst_255 = arith.constant 0.000000e+00 : f32
    %cst_256 = arith.constant 1.000000e+00 : f32
    %393 = vector.broadcast %cst_255 : f32 to vector<1x16xf32>
    %394 = arith.maximumf %393, %392 : vector<1x16xf32>
    %395 = vector.broadcast %cst_256 : f32 to vector<1x16xf32>
    %396 = arith.minimumf %395, %394 : vector<1x16xf32>
    %cst_257 = arith.constant 9.99999993E-9 : f32
    %397 = vector.broadcast %cst_257 : f32 to vector<1x16xf32>
    %398 = arith.addf %392, %397 : vector<1x16xf32>
    %399 = tpu.reciprocal %398 {approx = true} : vector<1x16xf32> -> vector<1x16xf32>
    %cst_258 = arith.constant 4.000000e+00 : f32
    %400 = vector.broadcast %cst_258 : f32 to vector<1x16xf32>
    %401 = arith.mulf %400, %399 : vector<1x16xf32>
    %402 = arith.mulf %401, %396 : vector<1x16xf32>
    %403 = vector.broadcast %402 : vector<1x16xf32> to vector<64x16xf32>
    %404 = arith.mulf %390, %403 : vector<64x16xf32>
    %c0_259 = arith.constant 0 : index
    %c0_260 = arith.constant 0 : index
    %405 = vector.load %arg22[%c0_259, %c0_260] : memref<64x1xf32, #tpu.memory_space<vmem>>, vector<64x1xf32>
    %406 = vector.broadcast %405 : vector<64x1xf32> to vector<64x16xf32>
    %407 = vector.broadcast %396 : vector<1x16xf32> to vector<64x16xf32>
    %408 = arith.mulf %406, %407 : vector<64x16xf32>
    %409 = arith.addf %404, %408 : vector<64x16xf32>
    %cst_261 = arith.constant 0.000000e+00 : f32
    %410 = vector.broadcast %cst_261 : f32 to vector<64x16xf32>
    %411 = arith.maximumf %409, %410 : vector<64x16xf32>
    %412 = arith.maximumf %396, %116 : vector<1x16xf32>
    %413 = vector.broadcast %412 : vector<1x16xf32> to vector<64x16xf32>
    %414 = arith.mulf %411, %413 : vector<64x16xf32>
    %415 = vector.broadcast %412 : vector<1x16xf32> to vector<32x16xf32>
    %416 = arith.mulf %131, %415 : vector<32x16xf32>
    %cst_262 = arith.constant 0.000000e+00 : f32
    %417 = vector.broadcast %cst_262 : f32 to vector<32x16xf32>
    %cst_263 = arith.constant 0.000000e+00 : f32
    %418 = vector.broadcast %cst_263 : f32 to vector<16x16xf32>
    %c0_264 = arith.constant 0 : index
    %c0_265 = arith.constant 0 : index
    %c0_266 = arith.constant 0 : index
    %419 = vector.load %arg27[%c0_264, %c0_265, %c0_266] : memref<3x16x16xf32, #tpu.memory_space<vmem>>, vector<1x16x16xf32>
    %420 = vector.shape_cast %419 : vector<1x16x16xf32> to vector<16x16xf32>
    %cst_267 = arith.constant dense<0.000000e+00> : vector<64x16xf32>
    %421 = tpu.matmul %414, %420, %cst_267 {dimension_numbers = #tpu.dot_dimension_numbers<[1], [0], [0], [1], [0, 0, 1, 1], [], []>} : vector<64x16xf32>, vector<16x16xf32>, vector<64x16xf32> -> vector<64x16xf32>
    %cst_268 = arith.constant dense<0.000000e+00> : vector<32x16xf32>
    %422 = tpu.matmul %416, %420, %cst_268 {dimension_numbers = #tpu.dot_dimension_numbers<[1], [0], [0], [1], [0, 0, 1, 1], [], []>} : vector<32x16xf32>, vector<16x16xf32>, vector<32x16xf32> -> vector<32x16xf32>
    %c0_269 = arith.constant 0 : index
    %c0_270 = arith.constant 0 : index
    %c0_271 = arith.constant 0 : index
    %423 = vector.load %arg24[%c0_269, %c0_270, %c0_271] : memref<3x32x64xf32, #tpu.memory_space<vmem>>, vector<1x32x64xf32>
    %424 = vector.shape_cast %423 : vector<1x32x64xf32> to vector<32x64xf32>
    %c0_272 = arith.constant 0 : index
    %c0_273 = arith.constant 0 : index
    %c0_274 = arith.constant 0 : index
    %425 = vector.load %arg25[%c0_272, %c0_273, %c0_274] : memref<3x32x32xf32, #tpu.memory_space<vmem>>, vector<1x32x32xf32>
    %426 = vector.shape_cast %425 : vector<1x32x32xf32> to vector<32x32xf32>
    %427 = arith.truncf %421 : vector<64x16xf32> to vector<64x16xbf16>
    %428 = arith.truncf %422 : vector<32x16xf32> to vector<32x16xbf16>
    %429 = arith.truncf %424 : vector<32x64xf32> to vector<32x64xbf16>
    %430 = arith.truncf %426 : vector<32x32xf32> to vector<32x32xbf16>
    %cst_275 = arith.constant dense<0.000000e+00> : vector<32x16xf32>
    %431 = tpu.matmul %429, %427, %cst_275 {dimension_numbers = #tpu.dot_dimension_numbers<[1], [0], [0], [1], [0, 0, 1, 1], [], []>} : vector<32x64xbf16>, vector<64x16xbf16>, vector<32x16xf32> -> vector<32x16xf32>
    %432 = arith.addf %417, %431 : vector<32x16xf32>
    %cst_276 = arith.constant dense<0.000000e+00> : vector<32x16xf32>
    %433 = tpu.matmul %430, %428, %cst_276 {dimension_numbers = #tpu.dot_dimension_numbers<[1], [0], [0], [1], [0, 0, 1, 1], [], []>} : vector<32x32xbf16>, vector<32x16xbf16>, vector<32x16xf32> -> vector<32x16xf32>
    %434 = arith.addf %432, %433 : vector<32x16xf32>
    %435 = arith.addf %418, %420 : vector<16x16xf32>
    %c1_277 = arith.constant 1 : index
    %c0_278 = arith.constant 0 : index
    %c0_279 = arith.constant 0 : index
    %436 = vector.load %arg27[%c1_277, %c0_278, %c0_279] : memref<3x16x16xf32, #tpu.memory_space<vmem>>, vector<1x16x16xf32>
    %437 = vector.shape_cast %436 : vector<1x16x16xf32> to vector<16x16xf32>
    %cst_280 = arith.constant dense<0.000000e+00> : vector<64x16xf32>
    %438 = tpu.matmul %414, %437, %cst_280 {dimension_numbers = #tpu.dot_dimension_numbers<[1], [0], [0], [1], [0, 0, 1, 1], [], []>} : vector<64x16xf32>, vector<16x16xf32>, vector<64x16xf32> -> vector<64x16xf32>
    %cst_281 = arith.constant dense<0.000000e+00> : vector<32x16xf32>
    %439 = tpu.matmul %416, %437, %cst_281 {dimension_numbers = #tpu.dot_dimension_numbers<[1], [0], [0], [1], [0, 0, 1, 1], [], []>} : vector<32x16xf32>, vector<16x16xf32>, vector<32x16xf32> -> vector<32x16xf32>
    %c1_282 = arith.constant 1 : index
    %c0_283 = arith.constant 0 : index
    %c0_284 = arith.constant 0 : index
    %440 = vector.load %arg24[%c1_282, %c0_283, %c0_284] : memref<3x32x64xf32, #tpu.memory_space<vmem>>, vector<1x32x64xf32>
    %441 = vector.shape_cast %440 : vector<1x32x64xf32> to vector<32x64xf32>
    %c1_285 = arith.constant 1 : index
    %c0_286 = arith.constant 0 : index
    %c0_287 = arith.constant 0 : index
    %442 = vector.load %arg25[%c1_285, %c0_286, %c0_287] : memref<3x32x32xf32, #tpu.memory_space<vmem>>, vector<1x32x32xf32>
    %443 = vector.shape_cast %442 : vector<1x32x32xf32> to vector<32x32xf32>
    %444 = arith.truncf %438 : vector<64x16xf32> to vector<64x16xbf16>
    %445 = arith.truncf %439 : vector<32x16xf32> to vector<32x16xbf16>
    %446 = arith.truncf %441 : vector<32x64xf32> to vector<32x64xbf16>
    %447 = arith.truncf %443 : vector<32x32xf32> to vector<32x32xbf16>
    %cst_288 = arith.constant dense<0.000000e+00> : vector<32x16xf32>
    %448 = tpu.matmul %446, %444, %cst_288 {dimension_numbers = #tpu.dot_dimension_numbers<[1], [0], [0], [1], [0, 0, 1, 1], [], []>} : vector<32x64xbf16>, vector<64x16xbf16>, vector<32x16xf32> -> vector<32x16xf32>
    %449 = arith.addf %434, %448 : vector<32x16xf32>
    %cst_289 = arith.constant dense<0.000000e+00> : vector<32x16xf32>
    %450 = tpu.matmul %447, %445, %cst_289 {dimension_numbers = #tpu.dot_dimension_numbers<[1], [0], [0], [1], [0, 0, 1, 1], [], []>} : vector<32x32xbf16>, vector<32x16xbf16>, vector<32x16xf32> -> vector<32x16xf32>
    %451 = arith.addf %449, %450 : vector<32x16xf32>
    %452 = arith.addf %435, %437 : vector<16x16xf32>
    %c2_290 = arith.constant 2 : index
    %c0_291 = arith.constant 0 : index
    %c0_292 = arith.constant 0 : index
    %453 = vector.load %arg27[%c2_290, %c0_291, %c0_292] : memref<3x16x16xf32, #tpu.memory_space<vmem>>, vector<1x16x16xf32>
    %454 = vector.shape_cast %453 : vector<1x16x16xf32> to vector<16x16xf32>
    %cst_293 = arith.constant dense<0.000000e+00> : vector<64x16xf32>
    %455 = tpu.matmul %414, %454, %cst_293 {dimension_numbers = #tpu.dot_dimension_numbers<[1], [0], [0], [1], [0, 0, 1, 1], [], []>} : vector<64x16xf32>, vector<16x16xf32>, vector<64x16xf32> -> vector<64x16xf32>
    %cst_294 = arith.constant dense<0.000000e+00> : vector<32x16xf32>
    %456 = tpu.matmul %416, %454, %cst_294 {dimension_numbers = #tpu.dot_dimension_numbers<[1], [0], [0], [1], [0, 0, 1, 1], [], []>} : vector<32x16xf32>, vector<16x16xf32>, vector<32x16xf32> -> vector<32x16xf32>
    %c2_295 = arith.constant 2 : index
    %c0_296 = arith.constant 0 : index
    %c0_297 = arith.constant 0 : index
    %457 = vector.load %arg24[%c2_295, %c0_296, %c0_297] : memref<3x32x64xf32, #tpu.memory_space<vmem>>, vector<1x32x64xf32>
    %458 = vector.shape_cast %457 : vector<1x32x64xf32> to vector<32x64xf32>
    %c2_298 = arith.constant 2 : index
    %c0_299 = arith.constant 0 : index
    %c0_300 = arith.constant 0 : index
    %459 = vector.load %arg25[%c2_298, %c0_299, %c0_300] : memref<3x32x32xf32, #tpu.memory_space<vmem>>, vector<1x32x32xf32>
    %460 = vector.shape_cast %459 : vector<1x32x32xf32> to vector<32x32xf32>
    %461 = arith.truncf %455 : vector<64x16xf32> to vector<64x16xbf16>
    %462 = arith.truncf %456 : vector<32x16xf32> to vector<32x16xbf16>
    %463 = arith.truncf %458 : vector<32x64xf32> to vector<32x64xbf16>
    %464 = arith.truncf %460 : vector<32x32xf32> to vector<32x32xbf16>
    %cst_301 = arith.constant dense<0.000000e+00> : vector<32x16xf32>
    %465 = tpu.matmul %463, %461, %cst_301 {dimension_numbers = #tpu.dot_dimension_numbers<[1], [0], [0], [1], [0, 0, 1, 1], [], []>} : vector<32x64xbf16>, vector<64x16xbf16>, vector<32x16xf32> -> vector<32x16xf32>
    %466 = arith.addf %451, %465 : vector<32x16xf32>
    %cst_302 = arith.constant dense<0.000000e+00> : vector<32x16xf32>
    %467 = tpu.matmul %464, %462, %cst_302 {dimension_numbers = #tpu.dot_dimension_numbers<[1], [0], [0], [1], [0, 0, 1, 1], [], []>} : vector<32x32xbf16>, vector<32x16xbf16>, vector<32x16xf32> -> vector<32x16xf32>
    %468 = arith.addf %466, %467 : vector<32x16xf32>
    %469 = arith.addf %452, %454 : vector<16x16xf32>
    %cst_303 = arith.constant dense<0.000000e+00> : vector<1x16xf32>
    %470 = tpu.matmul %412, %469, %cst_303 {dimension_numbers = #tpu.dot_dimension_numbers<[1], [0], [0], [1], [0, 0, 1, 1], [], []>} : vector<1x16xf32>, vector<16x16xf32>, vector<1x16xf32> -> vector<1x16xf32>
    %cst_304 = arith.constant 0.000000e+00 : f32
    %cst_305 = arith.constant 1.000000e+00 : f32
    %471 = vector.broadcast %cst_304 : f32 to vector<1x16xf32>
    %472 = arith.maximumf %471, %470 : vector<1x16xf32>
    %473 = vector.broadcast %cst_305 : f32 to vector<1x16xf32>
    %474 = arith.minimumf %473, %472 : vector<1x16xf32>
    %cst_306 = arith.constant 9.99999993E-9 : f32
    %475 = vector.broadcast %cst_306 : f32 to vector<1x16xf32>
    %476 = arith.addf %470, %475 : vector<1x16xf32>
    %477 = tpu.reciprocal %476 {approx = true} : vector<1x16xf32> -> vector<1x16xf32>
    %cst_307 = arith.constant 3.000000e+00 : f32
    %478 = vector.broadcast %cst_307 : f32 to vector<1x16xf32>
    %479 = arith.mulf %478, %477 : vector<1x16xf32>
    %480 = arith.mulf %479, %474 : vector<1x16xf32>
    %481 = vector.broadcast %480 : vector<1x16xf32> to vector<32x16xf32>
    %482 = arith.mulf %468, %481 : vector<32x16xf32>
    %c0_308 = arith.constant 0 : index
    %c0_309 = arith.constant 0 : index
    %483 = vector.load %arg26[%c0_308, %c0_309] : memref<32x1xf32, #tpu.memory_space<vmem>>, vector<32x1xf32>
    %484 = vector.broadcast %483 : vector<32x1xf32> to vector<32x16xf32>
    %485 = vector.broadcast %474 : vector<1x16xf32> to vector<32x16xf32>
    %486 = arith.mulf %484, %485 : vector<32x16xf32>
    %487 = arith.addf %482, %486 : vector<32x16xf32>
    %cst_310 = arith.constant 0.000000e+00 : f32
    %488 = vector.broadcast %cst_310 : f32 to vector<32x16xf32>
    %489 = arith.maximumf %487, %488 : vector<32x16xf32>
    %490 = vector.broadcast %474 : vector<1x16xf32> to vector<32x16xf32>
    %491 = arith.mulf %489, %490 : vector<32x16xf32>
    %cst_311 = arith.constant 0.000000e+00 : f32
    %492 = vector.broadcast %cst_311 : f32 to vector<3x16xf32>
    %cst_312 = arith.constant 0.000000e+00 : f32
    %493 = vector.broadcast %cst_312 : f32 to vector<16x16xf32>
    %c0_313 = arith.constant 0 : index
    %c0_314 = arith.constant 0 : index
    %c0_315 = arith.constant 0 : index
    %494 = vector.load %arg30[%c0_313, %c0_314, %c0_315] : memref<5x16x16xf32, #tpu.memory_space<vmem>>, vector<1x16x16xf32>
    %495 = vector.shape_cast %494 : vector<1x16x16xf32> to vector<16x16xf32>
    %cst_316 = arith.constant dense<0.000000e+00> : vector<32x16xf32>
    %496 = tpu.matmul %491, %495, %cst_316 {dimension_numbers = #tpu.dot_dimension_numbers<[1], [0], [0], [1], [0, 0, 1, 1], [], []>} : vector<32x16xf32>, vector<16x16xf32>, vector<32x16xf32> -> vector<32x16xf32>
    %c0_317 = arith.constant 0 : index
    %c0_318 = arith.constant 0 : index
    %c0_319 = arith.constant 0 : index
    %497 = vector.load %arg28[%c0_317, %c0_318, %c0_319] : memref<5x3x32xf32, #tpu.memory_space<vmem>>, vector<1x3x32xf32>
    %498 = vector.shape_cast %497 : vector<1x3x32xf32> to vector<3x32xf32>
    %499 = arith.truncf %496 : vector<32x16xf32> to vector<32x16xbf16>
    %500 = arith.truncf %498 : vector<3x32xf32> to vector<3x32xbf16>
    %cst_320 = arith.constant dense<0.000000e+00> : vector<3x16xf32>
    %501 = tpu.matmul %500, %499, %cst_320 {dimension_numbers = #tpu.dot_dimension_numbers<[1], [0], [0], [1], [0, 0, 1, 1], [], []>} : vector<3x32xbf16>, vector<32x16xbf16>, vector<3x16xf32> -> vector<3x16xf32>
    %502 = arith.addf %492, %501 : vector<3x16xf32>
    %503 = arith.addf %493, %495 : vector<16x16xf32>
    %c1_321 = arith.constant 1 : index
    %c0_322 = arith.constant 0 : index
    %c0_323 = arith.constant 0 : index
    %504 = vector.load %arg30[%c1_321, %c0_322, %c0_323] : memref<5x16x16xf32, #tpu.memory_space<vmem>>, vector<1x16x16xf32>
    %505 = vector.shape_cast %504 : vector<1x16x16xf32> to vector<16x16xf32>
    %cst_324 = arith.constant dense<0.000000e+00> : vector<32x16xf32>
    %506 = tpu.matmul %491, %505, %cst_324 {dimension_numbers = #tpu.dot_dimension_numbers<[1], [0], [0], [1], [0, 0, 1, 1], [], []>} : vector<32x16xf32>, vector<16x16xf32>, vector<32x16xf32> -> vector<32x16xf32>
    %c1_325 = arith.constant 1 : index
    %c0_326 = arith.constant 0 : index
    %c0_327 = arith.constant 0 : index
    %507 = vector.load %arg28[%c1_325, %c0_326, %c0_327] : memref<5x3x32xf32, #tpu.memory_space<vmem>>, vector<1x3x32xf32>
    %508 = vector.shape_cast %507 : vector<1x3x32xf32> to vector<3x32xf32>
    %509 = arith.truncf %506 : vector<32x16xf32> to vector<32x16xbf16>
    %510 = arith.truncf %508 : vector<3x32xf32> to vector<3x32xbf16>
    %cst_328 = arith.constant dense<0.000000e+00> : vector<3x16xf32>
    %511 = tpu.matmul %510, %509, %cst_328 {dimension_numbers = #tpu.dot_dimension_numbers<[1], [0], [0], [1], [0, 0, 1, 1], [], []>} : vector<3x32xbf16>, vector<32x16xbf16>, vector<3x16xf32> -> vector<3x16xf32>
    %512 = arith.addf %502, %511 : vector<3x16xf32>
    %513 = arith.addf %503, %505 : vector<16x16xf32>
    %c2_329 = arith.constant 2 : index
    %c0_330 = arith.constant 0 : index
    %c0_331 = arith.constant 0 : index
    %514 = vector.load %arg30[%c2_329, %c0_330, %c0_331] : memref<5x16x16xf32, #tpu.memory_space<vmem>>, vector<1x16x16xf32>
    %515 = vector.shape_cast %514 : vector<1x16x16xf32> to vector<16x16xf32>
    %cst_332 = arith.constant dense<0.000000e+00> : vector<32x16xf32>
    %516 = tpu.matmul %491, %515, %cst_332 {dimension_numbers = #tpu.dot_dimension_numbers<[1], [0], [0], [1], [0, 0, 1, 1], [], []>} : vector<32x16xf32>, vector<16x16xf32>, vector<32x16xf32> -> vector<32x16xf32>
    %c2_333 = arith.constant 2 : index
    %c0_334 = arith.constant 0 : index
    %c0_335 = arith.constant 0 : index
    %517 = vector.load %arg28[%c2_333, %c0_334, %c0_335] : memref<5x3x32xf32, #tpu.memory_space<vmem>>, vector<1x3x32xf32>
    %518 = vector.shape_cast %517 : vector<1x3x32xf32> to vector<3x32xf32>
    %519 = arith.truncf %516 : vector<32x16xf32> to vector<32x16xbf16>
    %520 = arith.truncf %518 : vector<3x32xf32> to vector<3x32xbf16>
    %cst_336 = arith.constant dense<0.000000e+00> : vector<3x16xf32>
    %521 = tpu.matmul %520, %519, %cst_336 {dimension_numbers = #tpu.dot_dimension_numbers<[1], [0], [0], [1], [0, 0, 1, 1], [], []>} : vector<3x32xbf16>, vector<32x16xbf16>, vector<3x16xf32> -> vector<3x16xf32>
    %522 = arith.addf %512, %521 : vector<3x16xf32>
    %523 = arith.addf %513, %515 : vector<16x16xf32>
    %c3_337 = arith.constant 3 : index
    %c0_338 = arith.constant 0 : index
    %c0_339 = arith.constant 0 : index
    %524 = vector.load %arg30[%c3_337, %c0_338, %c0_339] : memref<5x16x16xf32, #tpu.memory_space<vmem>>, vector<1x16x16xf32>
    %525 = vector.shape_cast %524 : vector<1x16x16xf32> to vector<16x16xf32>
    %cst_340 = arith.constant dense<0.000000e+00> : vector<32x16xf32>
    %526 = tpu.matmul %491, %525, %cst_340 {dimension_numbers = #tpu.dot_dimension_numbers<[1], [0], [0], [1], [0, 0, 1, 1], [], []>} : vector<32x16xf32>, vector<16x16xf32>, vector<32x16xf32> -> vector<32x16xf32>
    %c3_341 = arith.constant 3 : index
    %c0_342 = arith.constant 0 : index
    %c0_343 = arith.constant 0 : index
    %527 = vector.load %arg28[%c3_341, %c0_342, %c0_343] : memref<5x3x32xf32, #tpu.memory_space<vmem>>, vector<1x3x32xf32>
    %528 = vector.shape_cast %527 : vector<1x3x32xf32> to vector<3x32xf32>
    %529 = arith.truncf %526 : vector<32x16xf32> to vector<32x16xbf16>
    %530 = arith.truncf %528 : vector<3x32xf32> to vector<3x32xbf16>
    %cst_344 = arith.constant dense<0.000000e+00> : vector<3x16xf32>
    %531 = tpu.matmul %530, %529, %cst_344 {dimension_numbers = #tpu.dot_dimension_numbers<[1], [0], [0], [1], [0, 0, 1, 1], [], []>} : vector<3x32xbf16>, vector<32x16xbf16>, vector<3x16xf32> -> vector<3x16xf32>
    %532 = arith.addf %522, %531 : vector<3x16xf32>
    %533 = arith.addf %523, %525 : vector<16x16xf32>
    %c4_345 = arith.constant 4 : index
    %c0_346 = arith.constant 0 : index
    %c0_347 = arith.constant 0 : index
    %534 = vector.load %arg30[%c4_345, %c0_346, %c0_347] : memref<5x16x16xf32, #tpu.memory_space<vmem>>, vector<1x16x16xf32>
    %535 = vector.shape_cast %534 : vector<1x16x16xf32> to vector<16x16xf32>
    %cst_348 = arith.constant dense<0.000000e+00> : vector<32x16xf32>
    %536 = tpu.matmul %491, %535, %cst_348 {dimension_numbers = #tpu.dot_dimension_numbers<[1], [0], [0], [1], [0, 0, 1, 1], [], []>} : vector<32x16xf32>, vector<16x16xf32>, vector<32x16xf32> -> vector<32x16xf32>
    %c4_349 = arith.constant 4 : index
    %c0_350 = arith.constant 0 : index
    %c0_351 = arith.constant 0 : index
    %537 = vector.load %arg28[%c4_349, %c0_350, %c0_351] : memref<5x3x32xf32, #tpu.memory_space<vmem>>, vector<1x3x32xf32>
    %538 = vector.shape_cast %537 : vector<1x3x32xf32> to vector<3x32xf32>
    %539 = arith.truncf %536 : vector<32x16xf32> to vector<32x16xbf16>
    %540 = arith.truncf %538 : vector<3x32xf32> to vector<3x32xbf16>
    %cst_352 = arith.constant dense<0.000000e+00> : vector<3x16xf32>
    %541 = tpu.matmul %540, %539, %cst_352 {dimension_numbers = #tpu.dot_dimension_numbers<[1], [0], [0], [1], [0, 0, 1, 1], [], []>} : vector<3x32xbf16>, vector<32x16xbf16>, vector<3x16xf32> -> vector<3x16xf32>
    %542 = arith.addf %532, %541 : vector<3x16xf32>
    %543 = arith.addf %533, %535 : vector<16x16xf32>
    %cst_353 = arith.constant dense<0.000000e+00> : vector<1x16xf32>
    %544 = tpu.matmul %474, %543, %cst_353 {dimension_numbers = #tpu.dot_dimension_numbers<[1], [0], [0], [1], [0, 0, 1, 1], [], []>} : vector<1x16xf32>, vector<16x16xf32>, vector<1x16xf32> -> vector<1x16xf32>
    %cst_354 = arith.constant 0.000000e+00 : f32
    %cst_355 = arith.constant 1.000000e+00 : f32
    %545 = vector.broadcast %cst_354 : f32 to vector<1x16xf32>
    %546 = arith.maximumf %545, %544 : vector<1x16xf32>
    %547 = vector.broadcast %cst_355 : f32 to vector<1x16xf32>
    %548 = arith.minimumf %547, %546 : vector<1x16xf32>
    %cst_356 = arith.constant 9.99999993E-9 : f32
    %549 = vector.broadcast %cst_356 : f32 to vector<1x16xf32>
    %550 = arith.addf %544, %549 : vector<1x16xf32>
    %551 = tpu.reciprocal %550 {approx = true} : vector<1x16xf32> -> vector<1x16xf32>
    %cst_357 = arith.constant 5.000000e+00 : f32
    %552 = vector.broadcast %cst_357 : f32 to vector<1x16xf32>
    %553 = arith.mulf %552, %551 : vector<1x16xf32>
    %554 = arith.mulf %553, %548 : vector<1x16xf32>
    %555 = vector.broadcast %554 : vector<1x16xf32> to vector<3x16xf32>
    %556 = arith.mulf %542, %555 : vector<3x16xf32>
    %c0_358 = arith.constant 0 : index
    %c0_359 = arith.constant 0 : index
    %557 = vector.load %arg29[%c0_358, %c0_359] : memref<3x1xf32, #tpu.memory_space<vmem>>, vector<3x1xf32>
    %558 = vector.broadcast %557 : vector<3x1xf32> to vector<3x16xf32>
    %559 = vector.broadcast %548 : vector<1x16xf32> to vector<3x16xf32>
    %560 = arith.mulf %558, %559 : vector<3x16xf32>
    %561 = arith.addf %556, %560 : vector<3x16xf32>
    %cst_360 = arith.constant 0.000000e+00 : f32
    %562 = vector.broadcast %cst_360 : f32 to vector<3x16xf32>
    %563 = arith.maximumf %561, %562 : vector<3x16xf32>
    %c0_361 = arith.constant 0 : index
    %c0_362 = arith.constant 0 : index
    %c0_363 = arith.constant 0 : index
    %564 = vector.load %arg31[%c0_361, %c0_362, %c0_363] : memref<1x3x16xf32, #tpu.memory_space<vmem>>, vector<1x3x16xf32>
    %565 = vector.shape_cast %564 : vector<1x3x16xf32> to vector<3x16xf32>
    %566 = vector.shape_cast %563 : vector<3x16xf32> to vector<1x3x16xf32>
    tpu.vector_store %arg31[%c0_361, %c0_362, %c0_363], %566 {strides = array<i32>} : memref<1x3x16xf32, #tpu.memory_space<vmem>>, vector<1x3x16xf32>,
    return
  }
  func.func @transform_0(%arg0: i32) -> (i32, i32, i32) {
    %c0_i32 = arith.constant 0 : i32
    %c0_i32_0 = arith.constant 0 : i32
    %c0_i32_1 = arith.constant 0 : i32
    return %arg0, %c0_i32, %c0_i32_0 : i32, i32, i32
  }
  func.func @transform_1(%arg0: i32) -> (i32, i32, i32) {
    %c0_i32 = arith.constant 0 : i32
    %c0_i32_0 = arith.constant 0 : i32
    %c0_i32_1 = arith.constant 0 : i32
    return %arg0, %c0_i32, %c0_i32_0 : i32, i32, i32
  }
  func.func @transform_2(%arg0: i32) -> (i32, i32, i32) {
    %c0_i32 = arith.constant 0 : i32
    %c0_i32_0 = arith.constant 0 : i32
    %c0_i32_1 = arith.constant 0 : i32
    %c0_i32_2 = arith.constant 0 : i32
    return %c0_i32, %c0_i32_0, %c0_i32_1 : i32, i32, i32
  }
  func.func @transform_3(%arg0: i32) -> (i32, i32) {
    %c0_i32 = arith.constant 0 : i32
    %c0_i32_0 = arith.constant 0 : i32
    %c0_i32_1 = arith.constant 0 : i32
    return %c0_i32, %c0_i32_0 : i32, i32
  }
  func.func @transform_4(%arg0: i32) -> (i32, i32, i32) {
    %c0_i32 = arith.constant 0 : i32
    %c0_i32_0 = arith.constant 0 : i32
    %c0_i32_1 = arith.constant 0 : i32
    %c0_i32_2 = arith.constant 0 : i32
    return %c0_i32, %c0_i32_0, %c0_i32_1 : i32, i32, i32
  }
  func.func @transform_5(%arg0: i32) -> (i32, i32, i32) {
    %c0_i32 = arith.constant 0 : i32
    %c0_i32_0 = arith.constant 0 : i32
    %c0_i32_1 = arith.constant 0 : i32
    %c0_i32_2 = arith.constant 0 : i32
    return %c0_i32, %c0_i32_0, %c0_i32_1 : i32, i32, i32
  }
  func.func @transform_6(%arg0: i32) -> (i32, i32) {
    %c0_i32 = arith.constant 0 : i32
    %c0_i32_0 = arith.constant 0 : i32
    %c0_i32_1 = arith.constant 0 : i32
    return %c0_i32, %c0_i32_0 : i32, i32
  }
  func.func @transform_7(%arg0: i32) -> (i32, i32, i32) {
    %c0_i32 = arith.constant 0 : i32
    %c0_i32_0 = arith.constant 0 : i32
    %c0_i32_1 = arith.constant 0 : i32
    %c0_i32_2 = arith.constant 0 : i32
    return %c0_i32, %c0_i32_0, %c0_i32_1 : i32, i32, i32
  }
  func.func @transform_8(%arg0: i32) -> (i32, i32, i32) {
    %c0_i32 = arith.constant 0 : i32
    %c0_i32_0 = arith.constant 0 : i32
    %c0_i32_1 = arith.constant 0 : i32
    %c0_i32_2 = arith.constant 0 : i32
    return %c0_i32, %c0_i32_0, %c0_i32_1 : i32, i32, i32
  }
  func.func @transform_9(%arg0: i32) -> (i32, i32) {
    %c0_i32 = arith.constant 0 : i32
    %c0_i32_0 = arith.constant 0 : i32
    %c0_i32_1 = arith.constant 0 : i32
    return %c0_i32, %c0_i32_0 : i32, i32
  }
  func.func @transform_10(%arg0: i32) -> (i32, i32, i32) {
    %c0_i32 = arith.constant 0 : i32
    %c0_i32_0 = arith.constant 0 : i32
    %c0_i32_1 = arith.constant 0 : i32
    %c0_i32_2 = arith.constant 0 : i32
    return %c0_i32, %c0_i32_0, %c0_i32_1 : i32, i32, i32
  }
  func.func @transform_11(%arg0: i32) -> (i32, i32, i32) {
    %c0_i32 = arith.constant 0 : i32
    %c0_i32_0 = arith.constant 0 : i32
    %c0_i32_1 = arith.constant 0 : i32
    %c0_i32_2 = arith.constant 0 : i32
    return %c0_i32, %c0_i32_0, %c0_i32_1 : i32, i32, i32
  }
  func.func @transform_12(%arg0: i32) -> (i32, i32) {
    %c0_i32 = arith.constant 0 : i32
    %c0_i32_0 = arith.constant 0 : i32
    %c0_i32_1 = arith.constant 0 : i32
    return %c0_i32, %c0_i32_0 : i32, i32
  }
  func.func @transform_13(%arg0: i32) -> (i32, i32, i32) {
    %c0_i32 = arith.constant 0 : i32
    %c0_i32_0 = arith.constant 0 : i32
    %c0_i32_1 = arith.constant 0 : i32
    %c0_i32_2 = arith.constant 0 : i32
    return %c0_i32, %c0_i32_0, %c0_i32_1 : i32, i32, i32
  }
  func.func @transform_14(%arg0: i32) -> (i32, i32, i32) {
    %c0_i32 = arith.constant 0 : i32
    %c0_i32_0 = arith.constant 0 : i32
    %c0_i32_1 = arith.constant 0 : i32
    %c0_i32_2 = arith.constant 0 : i32
    return %c0_i32, %c0_i32_0, %c0_i32_1 : i32, i32, i32
  }
  func.func @transform_15(%arg0: i32) -> (i32, i32) {
    %c0_i32 = arith.constant 0 : i32
    %c0_i32_0 = arith.constant 0 : i32
    %c0_i32_1 = arith.constant 0 : i32
    return %c0_i32, %c0_i32_0 : i32, i32
  }
  func.func @transform_16(%arg0: i32) -> (i32, i32, i32) {
    %c0_i32 = arith.constant 0 : i32
    %c0_i32_0 = arith.constant 0 : i32
    %c0_i32_1 = arith.constant 0 : i32
    %c0_i32_2 = arith.constant 0 : i32
    return %c0_i32, %c0_i32_0, %c0_i32_1 : i32, i32, i32
  }
  func.func @transform_17(%arg0: i32) -> (i32, i32, i32) {
    %c0_i32 = arith.constant 0 : i32
    %c0_i32_0 = arith.constant 0 : i32
    %c0_i32_1 = arith.constant 0 : i32
    %c0_i32_2 = arith.constant 0 : i32
    return %c0_i32, %c0_i32_0, %c0_i32_1 : i32, i32, i32
  }
  func.func @transform_18(%arg0: i32) -> (i32, i32) {
    %c0_i32 = arith.constant 0 : i32
    %c0_i32_0 = arith.constant 0 : i32
    %c0_i32_1 = arith.constant 0 : i32
    return %c0_i32, %c0_i32_0 : i32, i32
  }
  func.func @transform_19(%arg0: i32) -> (i32, i32, i32) {
    %c0_i32 = arith.constant 0 : i32
    %c0_i32_0 = arith.constant 0 : i32
    %c0_i32_1 = arith.constant 0 : i32
    %c0_i32_2 = arith.constant 0 : i32
    return %c0_i32, %c0_i32_0, %c0_i32_1 : i32, i32, i32
  }
  func.func @transform_20(%arg0: i32) -> (i32, i32, i32) {
    %c0_i32 = arith.constant 0 : i32
    %c0_i32_0 = arith.constant 0 : i32
    %c0_i32_1 = arith.constant 0 : i32
    %c0_i32_2 = arith.constant 0 : i32
    return %c0_i32, %c0_i32_0, %c0_i32_1 : i32, i32, i32
  }
  func.func @transform_21(%arg0: i32) -> (i32, i32) {
    %c0_i32 = arith.constant 0 : i32
    %c0_i32_0 = arith.constant 0 : i32
    %c0_i32_1 = arith.constant 0 : i32
    return %c0_i32, %c0_i32_0 : i32, i32
  }
  func.func @transform_22(%arg0: i32) -> (i32, i32, i32) {
    %c0_i32 = arith.constant 0 : i32
    %c0_i32_0 = arith.constant 0 : i32
    %c0_i32_1 = arith.constant 0 : i32
    %c0_i32_2 = arith.constant 0 : i32
    return %c0_i32, %c0_i32_0, %c0_i32_1 : i32, i32, i32
  }
  func.func @transform_23(%arg0: i32) -> (i32, i32, i32) {
    %c0_i32 = arith.constant 0 : i32
    %c0_i32_0 = arith.constant 0 : i32
    %c0_i32_1 = arith.constant 0 : i32
    %c0_i32_2 = arith.constant 0 : i32
    return %c0_i32, %c0_i32_0, %c0_i32_1 : i32, i32, i32
  }
  func.func @transform_24(%arg0: i32) -> (i32, i32, i32) {
    %c0_i32 = arith.constant 0 : i32
    %c0_i32_0 = arith.constant 0 : i32
    %c0_i32_1 = arith.constant 0 : i32
    %c0_i32_2 = arith.constant 0 : i32
    return %c0_i32, %c0_i32_0, %c0_i32_1 : i32, i32, i32
  }
  func.func @transform_25(%arg0: i32) -> (i32, i32) {
    %c0_i32 = arith.constant 0 : i32
    %c0_i32_0 = arith.constant 0 : i32
    %c0_i32_1 = arith.constant 0 : i32
    return %c0_i32, %c0_i32_0 : i32, i32
  }
  func.func @transform_26(%arg0: i32) -> (i32, i32, i32) {
    %c0_i32 = arith.constant 0 : i32
    %c0_i32_0 = arith.constant 0 : i32
    %c0_i32_1 = arith.constant 0 : i32
    %c0_i32_2 = arith.constant 0 : i32
    return %c0_i32, %c0_i32_0, %c0_i32_1 : i32, i32, i32
  }
  func.func @transform_27(%arg0: i32) -> (i32, i32, i32) {
    %c0_i32 = arith.constant 0 : i32
    %c0_i32_0 = arith.constant 0 : i32
    %c0_i32_1 = arith.constant 0 : i32
    %c0_i32_2 = arith.constant 0 : i32
    return %c0_i32, %c0_i32_0, %c0_i32_1 : i32, i32, i32
  }
  func.func @transform_28(%arg0: i32) -> (i32, i32) {
    %c0_i32 = arith.constant 0 : i32
    %c0_i32_0 = arith.constant 0 : i32
    %c0_i32_1 = arith.constant 0 : i32
    return %c0_i32, %c0_i32_0 : i32, i32
  }
  func.func @transform_29(%arg0: i32) -> (i32, i32, i32) {
    %c0_i32 = arith.constant 0 : i32
    %c0_i32_0 = arith.constant 0 : i32
    %c0_i32_1 = arith.constant 0 : i32
    %c0_i32_2 = arith.constant 0 : i32
    return %c0_i32, %c0_i32_0, %c0_i32_1 : i32, i32, i32
  }
  func.func @transform_30(%arg0: i32) -> (i32, i32, i32) {
    %c0_i32 = arith.constant 0 : i32
    %c0_i32_0 = arith.constant 0 : i32
    %c0_i32_1 = arith.constant 0 : i32
    return %arg0, %c0_i32, %c0_i32_0 : i32, i32, i32
  }
}

</mosaic_0001>

<bundles_post_ra>
// kernel: unet_forward.1
= control target key start
LH: loop header
LB: loop body
LE: loop exit
PB: predicated region body
PF: predicated region fallthrough
CT: control target
= control target key end

     0   :  { %s5504_s6 = smov 1   ;;  %s5505_s10 = smov 2   ;;  %s6867_s0 = inlined_call_operand.smem [shape: u32[31], index: -1, kind: input, shape index: {}] }
   0x1   :  { %s5543_s5 = sld [smem:[%s6867_s0]]   ;;  %s5506_s14 = smov 3  }
   0x2   :  { %s5548_s9 = sld [smem:[%s6867_s0 + %s5504_s6]]   ;;  %s5507_s18 = smov 4  }
   0x3   :  { %s5553_s13 = sld [smem:[%s6867_s0 + %s5505_s10]]   ;;  %s5508_s22 = smov 5  }
   0x4   :  { %s5558_s17 = sld [smem:[%s6867_s0 + %s5506_s14]]   ;;  %s5509_s26 = smov 6  }
   0x5   :  { %s5563_s21 = sld [smem:[%s6867_s0 + %s5507_s18]]   ;;  %s5510_s30 = smov 7  }
   0x6   :  { %s5568_s25 = sld [smem:[%s6867_s0 + %s5508_s22]]   ;;  %s5511_s4 = smov 8  }
   0x7   :  { %s5573_s29 = sld [smem:[%s6867_s0 + %s5509_s26]]   ;;  %s5512_s10 = smov 9  }
   0x8   :  { %s5578_s3 = sld [smem:[%s6867_s0 + %s5510_s30]]   ;;  %s5513_s15 = smov 10  }
   0x9   :  { %s5583_s8 = sld [smem:[%s6867_s0 + %s5511_s4]]   ;;  %s5514_s20 = smov 11  }
   0xa   :  { %s5588_s14 = sld [smem:[%s6867_s0 + %s5512_s10]]   ;;  %s5515_s26 = smov 12  }
   0xb   :  { %s5593_s19 = sld [smem:[%s6867_s0 + %s5513_s15]]   ;;  %s5516_s1 = smov 13  }
   0xc   :  { %s5598_s24 = sld [smem:[%s6867_s0 + %s5514_s20]]   ;;  %s5517_s7 = smov 14  }
   0xd   :  { %s5603_s30 = sld [smem:[%s6867_s0 + %s5515_s26]]   ;;  %s5518_s15 = smov 15  }
   0xe   :  { %s5608_s6 = sld [smem:[%s6867_s0 + %s5516_s1]]   ;;  %s5519_s22 = smov 16  }
   0xf   :  { %6885 = sst [smem:[#allocation2_spill]] %s5583_s8  ;;  %s5520_s28 = smov 17  }
  0x10   :  { %s5613_s12 = sld [smem:[%s6867_s0 + %s5517_s7]]   ;;  %s5521_s7 = smov 18  }
  0x11   :  { %6886 = sst [smem:[#allocation3_spill]] %s5593_s19 }
  0x12   :  { %6887 = sst [smem:[#allocation4_spill]] %s5598_s24 }
  0x13   :  { %s5618_s20 = sld [smem:[%s6867_s0 + %s5518_s15]]   ;;  %s5522_s15 = smov 19  }
  0x14   :  { %6888 = sst [smem:[#allocation5_spill]] %s5608_s6 }
  0x15   :  { %s5623_s27 = sld [smem:[%s6867_s0 + %s5519_s22]]   ;;  %s5523_s22 = smov 20  }
  0x16   :  { %6889 = sst [smem:[#allocation6_spill]] %s5613_s12 }
  0x17   :  { %s5628_s4 = sld [smem:[%s6867_s0 + %s5520_s28]]   ;;  %s5524_s28 = smov 21  }
  0x18   :  { %s5633_s12 = sld [smem:[%s6867_s0 + %s5521_s7]]   ;;  %s5525_s7 = smov 22  }
  0x19   :  { %s5638_s24 = sld [smem:[%s6867_s0 + %s5522_s15]]   ;;  %s5526_s15 = smov 23  }
  0x1a   :  { %s5653_s6 = sld [smem:[%s6867_s0 + %s5525_s7]]   ;;  %s5529_s7 = smov 26  }
  0x1b   :  { %6890 = sst [smem:[#allocation7_spill]] %s5623_s27 }
  0x1c   :  { %s5643_s27 = sld [smem:[%s6867_s0 + %s5523_s22]]   ;;  %s5527_s22 = smov 24  }
  0x1d   :  { %6891 = sst [smem:[#allocation8_spill]] %s5628_s4 }
  0x1e   :  { %s5648_s4 = sld [smem:[%s6867_s0 + %s5524_s28]]   ;;  %s5528_s28 = smov 25  }
  0x1f   :  { %6892 = sst [smem:[#allocation9_spill]] %s5638_s24 }
  0x20   :  { %6894 = sst [smem:[#allocation11_spill]] %s5653_s6 }
  0x21   :  { %s5658_s24 = sld [smem:[%s6867_s0 + %s5526_s15]]   ;;  %s5530_s15 = smov 27  }
  0x22   :  { %6893 = sst [smem:[#allocation10_spill]] %s5643_s27 }
  0x23   :  { %s5663_s27 = sld [smem:[%s6867_s0 + %s5527_s22]]   ;;  %s5531_s22 = smov 28  }
  0x24   :  { %s5668_s8 = sld [smem:[%s6867_s0 + %s5528_s28]]   ;;  %s5532_s28 = smov 29  }
  0x25   :  { %s5673_s6 = sld [smem:[%s6867_s0 + %s5529_s7]]   ;;  %s5533_s7 = smov 30  }
  0x26   :  { %s5688_s19 = sld [smem:[%s6867_s0 + %s5532_s28]]  }
  0x27   :  { %6895 = sst [smem:[#allocation12_spill]] %s5658_s24 }
  0x28   :  { %s5678_s24 = sld [smem:[%s6867_s0 + %s5530_s15]]   ;;  %s5695_s15 = smov 0  }
  0x29   :  { %6896 = sst [smem:[#allocation13_spill]] %s5663_s27 }
  0x2a   :  { %s5683_s27 = sld [smem:[%s6867_s0 + %s5531_s22]]  }
  0x2b   :  { %6897 = sst [smem:[#allocation14_spill]] %s5673_s6 }
  0x2c   :  { %s5693_s6 = sld [smem:[%s6867_s0 + %s5533_s7]]  }
  0x2d LB: > { %s4962_s16 = sadd.s32 4294967295, %s5502_s15   ;;  %p4966_p0 = scmp.ge.s32.totalorder %s5502_s15, 1  ;;  %s5502_s15 = sphi %s5695_s15, %s71_s15  }
  0x2e   : > { %p850_p1 = scmp.lt.s32.totalorder %s5502_s15, 3 }
  0x30   : > { %p851_p2 = pnand %p4966_p0, %p850_p1 }
  0x31   : > { %p929_p3 = scmp.lt.s32.totalorder (!%p851_p2), %s4962_s16, 1  ;;  %s6898_s23 = sld [smem:[#allocation3_spill]] (!%p851_p2) }
  0x32   : > { %854 = sbr.rel (%p851_p2) target bundleno = 4044 (0xfcc), region = 140  ;;  %s6899_s26 = sld [smem:[#allocation2_spill]] (!%p851_p2) }
  0x33   : > { %s6900_s28 = sld [smem:[#allocation5_spill]] (!%p851_p2) }
  0x34   : > { %s6901_s1 = sld [smem:[#allocation4_spill]] (!%p851_p2) }
  0x35   : > { %s6902_s2 = sld [smem:[#allocation7_spill]] (!%p851_p2) }
  0x36   : > { %s6903_s7 = sld [smem:[#allocation6_spill]] (!%p851_p2) }
  0x37   : > { %v948_v0 = vld [vmem:[%s5563_s21 + $0x8] sm:$0xff]  ;;  %v4971_v1 = vld [vmem:[%s5563_s21 + $0x18] sm:$0xff]  ;;  %v947_v2 = vld [vmem:[%s5563_s21] sm:$0xff]  ;;  %s6912_s16 = smov (!%p929_p3, %s4962_s16), 1  ;;  %vm949_vm0 = vcmask 130048   ;;  %vm1020_vm1 = vcmask 1043456  }
  0x38   : > { %967 = vmatpush.msra.mxu0 %v948_v0  ;;  %999 = vmatpush.msra.mxu1 %v4971_v1  ;;  %v1072_v3 = vadd.f32 %v4971_v1, %v948_v0  ;;  %v4970_v4 = vld [vmem:[%s5563_s21 + $0x10] sm:$0xff]  ;;  %v4982_v5 = vld [vmem:[%s5563_s21 + $0x28] sm:$0xff]  ;;  %v4981_v8 = vld [vmem:[%s5563_s21 + $0x20] sm:$0xff]  ;;  %s4967_s0 = sshll.u32 %s6912_s16, 3  ;;  %s5714_s18 = scalar_lea.vmem %s5548_s9, %s6912_s16  ;;  %vm1013_vm2 = vcmask 64512   ;;  %v5534_v38 = vmov 0  }
  0x39   : > { %v1071_v6 = vadd.f32 %v4970_v4, %v947_v2  ;;  %s932_s22 = scalar_lea.vmem %s5543_s5, %s4967_s0  ;;  %v5477_v10 = vld [vmem:[%s5714_s18] ss:$0 sm:$0xff]  ;;  %v4990_v11 = vld [vmem:[%s5563_s21 + $0x30] sm:$0xff]  ;;  %v4991_v15 = vld [vmem:[%s5563_s21 + $0x38] sm:$0xff]  ;;  %5474 = vset.pattern.permute.xlu0 %v5534_v38  ;;  %5475 = vset.pattern.permute.xlu1 %v5534_v38  ;;  %vm1436_vm3 = vcmask 261120   ;;  %vm2186_vm4 = vcmask 523264  }
  0x3a   : > { %968 = vmatpush.msra.mxu0 %v947_v2  ;;  %1000 = vmatpush.msra.mxu1 %v4970_v4  ;;  %v1137_v7 = vadd.f32 %v4982_v5, %v1072_v3  ;;  %v941_v12 = vld [vmem:[%s932_s22] sm:$0xff]  ;;  %v4974_v19 = vld [vmem:[%s5553_s13 + $0x28] sm:$0xff]  ;;  %v1303_v35 = vld [vmem:[%s5558_s17 + $0x10] sm:$0xff]  ;;  %s6904_s10 = sld [smem:[#allocation9_spill]]  ;;  %vm4868_vm5 = vcmask 124928  }
  0x3b   : > { %v1136_v9 = vadd.f32 %v4981_v8, %v1071_v6  ;;  %v5719_v14 = vmul.f32 %v5477_v10, %v941_v12  ;;  %v4973_v16 = vld [vmem:[%s5553_s13 + $0x20] sm:$0xff]  ;;  %v974_v21 = vld [vmem:[%s5553_s13 + $0x8] sm:$0xff]  ;;  %1317 = vperm.xlu1 %5475, %v1303_v35   ;;  %5476 = vset.pattern.permute.xlu2 %v5534_v38  ;;  %v4975_v42 = vld [vmem:[%s5553_s13 + $0x30] sm:$0xff]  ;;  %s6905_s11 = sld [smem:[#allocation8_spill]] }
  0x3c   : > { %1090 = vmatpush.msrb.mxu0 %v4982_v5  ;;  %v973_v20 = vld [vmem:[%s5553_s13] sm:$0xff]  ;;  %v5000_v24 = vld [vmem:[%s5563_s21 + $0x48] sm:$0xff]  ;;  %v1011_v27 = vpack.c.bf16 %v4974_v19, %v4973_v16  ;;  %v1202_v29 = vadd.f32 %v4991_v15, %v1137_v7  ;;  %v1304_v44 = vld [vmem:[%s5558_s17 + $0x18] sm:$0xff]  ;;  %s6906_s0 = sld [smem:[#allocation11_spill]] }
  0x3d   : > { %v1201_v13 = vadd.f32 %v4990_v11, %v1136_v9  ;;  %4969 = vmatmul.msk.f32.vlgmr.msra.gmra.mxu0 %vm949_vm0, %v5719_v14  ;;  %4972 = vmatmul.msk.f32.vlgmr.msra.gmra.mxu1 %vm949_vm0, %v5719_v14  ;;  %v978_v28 = vpack.c.bf16 %v974_v21, %v973_v20  ;;  %v4999_v30 = vld [vmem:[%s5563_s21 + $0x40] sm:$0xff]  ;;  %v4985_v33 = vld [vmem:[%s5553_s13 + $0x48] sm:$0xff]  ;;  %v4976_v46 = vld [vmem:[%s5553_s13 + $0x38] sm:$0xff]  ;;  %s6908_s22 = sld [smem:[#allocation14_spill]] }
  0x3e   : > { %1091 = vmatpush.msrb.mxu0 %v4981_v8  ;;  %v4984_v31 = vld [vmem:[%s5553_s13 + $0x40] sm:$0xff]  ;;  %v1267_v37 = vadd.f32 %v5000_v24, %v1202_v29  ;;  %v1302_v43 = vld [vmem:[%s5558_s17 + $0x8] sm:$0xff]  ;;  %v975_v47 = vld [vmem:[%s5553_s13 + $0x10] sm:$0xff]  ;;  %v1012_v53 = vpack.c.bf16 %v4976_v46, %v4975_v42 }
  0x3f   : > { %v1301_v34 = vld [vmem:[%s5558_s17] sm:$0xff]  ;;  %v1102_v40 = vpack.c.bf16 %v4985_v33, %v4984_v31  ;;  %v1266_v41 = vadd.f32 %v4999_v30, %v1201_v13  ;;  %v976_v48 = vld [vmem:[%s5553_s13 + $0x18] sm:$0xff]  ;;  %v4994_v51 = vld [vmem:[%s5553_s13 + $0x68] sm:$0xff] }
  0x40   : > { %1155 = vmatpush.msra.mxu0 %v4991_v15  ;;  %1307 = vperm.xlu0 %5474, %v1301_v34   ;;  %v4993_v50 = vld [vmem:[%s5553_s13 + $0x60] sm:$0xff]  ;;  %v979_v54 = vpack.c.bf16 %v976_v48, %v975_v47  ;;  %v1597_v56 = vld [vmem:[%s5573_s29 + $0x10] sm:$0xff]  ;;  %v1598_v57 = vld [vmem:[%s5573_s29 + $0x18] sm:$0xff] }
  0x41   : > { %v1167_v55 = vpack.c.bf16 %v4994_v51, %v4993_v50  ;;  %v4986_v58 = vld [vmem:[%s5553_s13 + $0x50] sm:$0xff]  ;;  %v4987_v59 = vld [vmem:[%s5553_s13 + $0x58] sm:$0xff]  ;;  %v1963_v61 = vld [vmem:[%s5588_s14 + $0x8] sm:$0xff] }
  0x42   : > { %1156 = vmatpush.msra.mxu0 %v4990_v11  ;;  %v1103_v60 = vpack.c.bf16 %v4987_v59, %v4986_v58  ;;  %v1964_v62 = vld [vmem:[%s5588_s14 + $0x10] sm:$0xff]  ;;  %v4996_v0 = vld [vmem:[%s5553_s13 + $0x78] sm:$0xff]  ;;  %v1966_v2 = vld [vmem:[%s5588_s14 + $0x20] sm:$0xff] }
  0x43   : > { %1322 = vperm.xlu1 %5475, %v1304_v44   ;;  %v4995_v63 = vld [vmem:[%s5553_s13 + $0x70] sm:$0xff]  ;;  %v1967_v3 = vld [vmem:[%s5588_s14 + $0x28] sm:$0xff]  ;;  %v942_v4 = vld [vmem:[%s5714_s18] sm:$0x1]  ;;  %s6907_s18 = sld [smem:[#allocation10_spill]] }
  0x44   : > { %v1168_v1 = vpack.c.bf16 %v4996_v0, %v4995_v63  ;;  %v1969_v5 = vld [vmem:[%s5588_s14 + $0x38] sm:$0xff]  ;;  %v2418_v6 = vld [vmem:[%s5603_s30] sm:$0xff]  ;;  %v2420_v7 = vld [vmem:[%s5603_s30 + $0x10] sm:$0xff] }
  0x45   : > { %4983 = vmatmul.msk.f32.vlgmr.msrb.gmra.mxu0 %vm949_vm0, %v5719_v14  ;;  %v2421_v8 = vld [vmem:[%s5603_s30 + $0x18] sm:$0xff]  ;;  %v2423_v9 = vld [vmem:[%s5603_s30 + $0x28] sm:$0xff]  ;;  %v2424_v10 = vld [vmem:[%s5603_s30 + $0x30] sm:$0xff] }
  0x46   : > { %v2873_v11 = vld [vmem:[%s5618_s20] sm:$0xff]  ;;  %v2876_v12 = vld [vmem:[%s5618_s20 + $0x18] sm:$0xff]  ;;  %v2874_v13 = vld [vmem:[%s5618_s20 + $0x8] sm:$0xff] }
  0x47   : > { %v2877_v15 = vld [vmem:[%s5618_s20 + $0x20] sm:$0xff]  ;;  %v3329_v16 = vld [vmem:[%s5633_s12 + $0x8] sm:$0xff]  ;;  %v3330_v19 = vld [vmem:[%s5633_s12 + $0x10] sm:$0xff] }
  0x48   : > { %1312 = vperm.xlu0 %5474, %v1302_v43   ;;  %v3335_v20 = vld [vmem:[%s5633_s12 + $0x38] sm:$0xff]  ;;  %v4499_v33 = vld [vmem:[%s5668_s8 + $0x8] sm:$0xff]  ;;  %v5002_v35 = vld [vmem:[%s5553_s13 + $0x80] sm:$0xff] }
  0x49   : > { %v4501_v31 = vld [vmem:[%s5668_s8 + $0x18] sm:$0xff]  ;;  %v1343_v48 = vld [vmem:[%s5578_s3 + $0x8] sm:$0xff]  ;;  %v1342_v51 = vld [vmem:[%s5578_s3] sm:$0xff] }
  0x4a   : > { %v5005_v42 = vld [vmem:[%s5553_s13 + $0x98] sm:$0xff] }
  0x4b   : > { %1616 = vperm.xlu1 %5475, %v1598_v57  }
  0x4d   : > { %4992 = vmatmul.msk.f32.vlgmr.msra.gmra.mxu0 %vm949_vm0, %v5719_v14 }
  0x50   : > { %1611 = vperm.xlu0 %5474, %v1597_v56  }
  0x53   : > { %1982 = vperm.xlu1 %5475, %v1964_v62  }
  0x58   : > { %1977 = vperm.xlu0 %5474, %v1963_v61  }
  0x5b   : > { %1997 = vperm.xlu1 %5475, %v1967_v3  }
  0x60   : > { %1992 = vperm.xlu0 %5474, %v1966_v2  }
  0x63   : > { %2428 = vperm.xlu1 %5475, %v2418_v6  }
  0x68   : > { %2007 = vperm.xlu0 %5474, %v1969_v5  }
  0x6b   : > { %2443 = vperm.xlu1 %5475, %v2421_v8  }
  0x70   : > { %2438 = vperm.xlu0 %5474, %v2420_v7  }
  0x73   : > { %2458 = vperm.xlu1 %5475, %v2424_v10  }
  0x78   : > { %2453 = vperm.xlu0 %5474, %v2423_v9  }
  0x7b   : > { %2888 = vperm.xlu1 %5475, %v2874_v13  }
  0x80   : > { %2883 = vperm.xlu0 %5474, %v2873_v11  }
  0x83   : > { %2903 = vperm.xlu1 %5475, %v2877_v15  }
  0x88   : > { %2898 = vperm.xlu0 %5474, %v2876_v12  }
  0xb2   : > { %v1308_v5 = vpop.permute.xlu0 %1307 }
  0xba   : > { %v970_v17 = vpop.f32.mrf.mxu0  ;;  %v1002_v18 = vpop.f32.mrf.mxu1 }
  0xbb   : > { %v1010_v22 = vpack.c.bf16 %v1002_v18, %v1002_v18  ;;  %v977_v23 = vpack.c.bf16 %v970_v17, %v970_v17  ;;  %v2880_v17 = vld [vmem:[%s5618_s20 + $0x38] sm:$0xff]  ;;  %v3332_v18 = vld [vmem:[%s5633_s12 + $0x20] sm:$0xff] }
  0xbc   : > { %2918 = vperm.xlu1 %5475, %v2880_v17  }
  0xbd   : > { %v1022_v25 = vsel %vm1020_vm1, %v1010_v22, 0  ;;  %v1050_v26 = vsel %vm1020_vm1, %v977_v23, 0  ;;  %v3333_v22 = vld [vmem:[%s5633_s12 + $0x28] sm:$0xff]  ;;  %v3895_v23 = vld [vmem:[%s5648_s4 + $0x10] sm:$0xff] }
  0xbe   : > { %1031 = vmatpush.bf16.msra.mxu2 %v1022_v25  ;;  %1059 = vmatpush.bf16.msra.mxu3 %v1050_v26  ;;  %v3898_v25 = vld [vmem:[%s5648_s4 + $0x28] sm:$0xff] }
  0xc1   : > { %4977 = vmatmul.msk.bf16.vlgmr.msra.gmra.mxu2 %vm1013_vm2, %v1011_v27  ;;  %4979 = vmatmul.msk.bf16.vlgmr.msra.gmra.mxu3 %vm1013_vm2, %v978_v28  ;;  %v3896_v27 = vld [vmem:[%s5648_s4 + $0x18] sm:$0xff]  ;;  %v4498_v28 = vld [vmem:[%s5668_s8] sm:$0xff] }
  0xc2   : > { %1220 = vmatpush.msrb.mxu3 %v5000_v24  ;;  %v1093_v32 = vpop.f32.mrf.mxu0  ;;  %v3893_v24 = vld [vmem:[%s5648_s4] sm:$0xff]  ;;  %1370 = vmatpush.msrb.mxu2 %v1343_v48 }
  0xc3   : > { %v1101_v36 = vpack.c.bf16 %v1093_v32, %v1093_v32 }
  0xc4   : > { %1221 = vmatpush.msrb.mxu3 %v4999_v30  ;;  %3348 = vperm.xlu1 %5475, %v3330_v19   ;;  %v3899_v30 = vld [vmem:[%s5648_s4 + $0x30] sm:$0xff] }
  0xc5   : > { %v1111_v39 = vsel %vm1020_vm1, %v1101_v36, 0  ;;  %v5003_v36 = vld [vmem:[%s5553_s13 + $0x88] sm:$0xff]  ;;  %1371 = vmatpush.msrb.mxu2 %v1342_v51 }
  0xc6   : > { %1120 = vmatpush.bf16.msrb.mxu1 %v1111_v39  ;;  %v1232_v39 = vpack.c.bf16 %v5003_v36, %v5002_v35  ;;  %v1318_v36 = vpop.permute.xlu1 %1317 }
  0xc9   : > { %4988 = vmatmul.msk.bf16.vlgmr.msrb.gmra.mxu1 %vm1013_vm2, %v1102_v40  ;;  %v4858_v40 = vld [vmem:[%s5683_s27] sm:$0x7] }
  0xca   : > { %1284 = vmatpush.msra.mxu1 %v1267_v37  ;;  %v1158_v45 = vpop.f32.mrf.mxu0 }
  0xcb   : > { %v1166_v49 = vpack.c.bf16 %v1158_v45, %v1158_v45 }
  0xcc   : > { %1285 = vmatpush.msra.mxu1 %v1266_v41  ;;  %3363 = vperm.xlu1 %5475, %v3333_v22   ;;  %v5004_v41 = vld [vmem:[%s5553_s13 + $0x90] sm:$0xff] }
  0xcd   : > { %v1176_v52 = vsel %vm1020_vm1, %v1166_v49, 0  ;;  %v1233_v43 = vpack.c.bf16 %v5005_v42, %v5004_v41  ;;  %v5014_v49 = vld [vmem:[%s5578_s3 + $0x18] sm:$0xff] }
  0xce   : > { %1185 = vmatpush.bf16.msrb.mxu0 %v1176_v52  ;;  %1412 = vmatpush.msrb.mxu1 %v5014_v49  ;;  %v5013_v52 = vld [vmem:[%s5578_s3 + $0x10] sm:$0xff] }
  0xcf   : > { %v1487_v56 = vadd.f32 %v5013_v52, %v1342_v51 }
  0xd0   : > { %1413 = vmatpush.msrb.mxu1 %v5013_v52 }
  0xd1   : > { %4978 = vmatmul.msk.bf16.gmra.mxu2 %vm1013_vm2, %v1012_v53  ;;  %4980 = vmatmul.msk.bf16.gmra.mxu3 %vm1013_vm2, %v979_v54  ;;  %v1488_v54 = vadd.f32 %v5014_v49, %v1343_v48 }
  0xd2   : > { %4997 = vmatmul.msk.bf16.vlgmr.msrb.gmra.mxu0 %vm1013_vm2, %v1167_v55  ;;  %v5028_v55 = vld [vmem:[%s5578_s3 + $0x28] sm:$0xff] }
  0xd3   : > { %1506 = vmatpush.msra.mxu2 %v5028_v55  ;;  %v5820_v57 = vadd.f32 %v5028_v55, %v1488_v54  ;;  %v1595_v55 = vld [vmem:[%s5573_s29] sm:$0xff] }
  0xd4   : > { %3903 = vperm.xlu1 %5475, %v3893_v24   ;;  %1601 = vperm.xlu2 %5476, %v1595_v55  }
  0xd9   : > { %4989 = vmatmul.msk.bf16.gmra.mxu1 %vm1013_vm2, %v1103_v60 }
  0xdc   : > { %3918 = vperm.xlu1 %5475, %v3896_v27  }
  0xe1   : > { %5001 = vmatmul.msk.f32.vlgmr.msrb.gmra.mxu3 %vm949_vm0, %v5719_v14  ;;  %v2879_v14 = vld [vmem:[%s5618_s20 + $0x30] sm:$0xff] }
  0xe2   : > { %4998 = vmatmul.msk.bf16.gmra.mxu0 %vm1013_vm2, %v1168_v1  ;;  %2913 = vperm.xlu0 %5474, %v2879_v14   ;;  %v5027_v14 = vld [vmem:[%s5578_s3 + $0x20] sm:$0xff] }
  0xe3   : > { %1507 = vmatpush.msra.mxu2 %v5027_v14 }
  0xe4   : > { %3933 = vperm.xlu1 %5475, %v3899_v30  }
  0xe9   : > { %5008 = vmatmul.msk.f32.vlgmr.msra.gmra.mxu1 %vm949_vm0, %v942_v4 }
  0xea   : > { %3343 = vperm.xlu0 %5474, %v3329_v16   ;;  %v5828_v16 = vadd.f32 %v5027_v14, %v1487_v56  ;;  %v1596_v56 = vld [vmem:[%s5573_s29 + $0x8] sm:$0xff] }
  0xeb   : > { %1606 = vperm.xlu2 %5476, %v1596_v56  }
  0xec   : > { %4509 = vperm.xlu1 %5475, %v4499_v33  }
  0xf2   : > { %3358 = vperm.xlu0 %5474, %v3332_v18  }
  0xf4   : > { %4861 = vperm.xlu1 %5475, %v4858_v40  }
  0xfa   : > { %3373 = vperm.xlu0 %5474, %v3335_v20  }
 0x102   : > { %3913 = vperm.xlu0 %5474, %v3895_v23  }
 0x10a   : > { %3928 = vperm.xlu0 %5474, %v3898_v25  }
 0x112   : > { %4504 = vperm.xlu0 %5474, %v4498_v28  }
 0x11a   : > { %4519 = vperm.xlu0 %5474, %v4501_v31  }
 0x144   : > { %v1061_v21 = vpop.f32.mrf.mxu3  ;;  %v1033_v58 = vpop.f32.mrf.mxu2 }
 0x145   : > { %v1062_v62 = vadd.f32 %v1061_v21, %v1033_v58  ;;  %v1962_v58 = vld [vmem:[%s5588_s14] sm:$0xff] }
 0x146   : > { %v1122_v44 = vpop.f32.mrf.mxu1  ;;  %1972 = vperm.xlu2 %5476, %v1962_v58  }
 0x147   : > { %v1132_v2 = vadd.f32 %v1122_v44, %v1062_v62 }
 0x14c   : > { %v5794_v26 = vpop.f32.mrf.mxu3  ;;  %v1035_v1 = vpop.f32.mrf.mxu2 }
 0x14d   : > { %v1064_v9 = vadd.f32 %v5794_v26, %v1035_v1  ;;  %v1313_v26 = vpop.permute.xlu0 %1312 }
 0x14e   : > { %v1124_v45 = vpop.f32.mrf.mxu1 }
 0x14f   : > { %v1187_v61 = vpop.f32.mrf.mxu0  ;;  %v1133_v17 = vadd.f32 %v1124_v45, %v1064_v9 }
 0x150   : > { %v1197_v4 = vadd.f32 %v1187_v61, %v1132_v2  ;;  %v2419_v61 = vld [vmem:[%s5603_s30 + $0x8] sm:$0xff] }
 0x154   : > { %v5798_v29 = vpop.f32.mrf.mxu3  ;;  %v1038_v15 = vpop.f32.mrf.mxu2 }
 0x155   : > { %v1067_v22 = vadd.f32 %v5798_v29, %v1038_v15 }
 0x156   : > { %v1127_v46 = vpop.f32.mrf.mxu1 }
 0x157   : > { %v1189_v7 = vpop.f32.mrf.mxu0  ;;  %v1134_v30 = vadd.f32 %v1127_v46, %v1067_v22 }
 0x158   : > { %v1198_v19 = vadd.f32 %v1189_v7, %v1133_v17 }
 0x15c   : > { %v5802_v32 = vpop.f32.mrf.mxu3  ;;  %v1040_v33 = vpop.f32.mrf.mxu2 }
 0x15e   : > { %v5813_v47 = vpop.f32.mrf.mxu1 }
 0x15f   : > { %v1192_v25 = vpop.f32.mrf.mxu0 }
 0x164   : > { %v1223_v34 = vpop.f32.mrf.mxu3 }
 0x165   : > { %v1231_v37 = vpack.c.bf16 %v1223_v34, %v1223_v34  ;;  %v1199_v34 = vadd.f32 %v1192_v25, %v1134_v30  ;;  %v5022_v25 = vld [vmem:[%s5568_s25 + $0x38] sm:$0xff] }
 0x166   : > { %v1287_v50 = vpop.f32.mrf.mxu1  ;;  %v1388_v30 = vld [vmem:[%s5568_s25 + $0x18] sm:$0xff] }
 0x167   : > { %v1241_v38 = vsel %vm1020_vm1, %v1231_v37, 0  ;;  %v1292_v53 = vadd.f32 1e-08, %v1287_v50  ;;  %v1290_v59 = vmax.f32 %v1287_v50, 0.0  ;;  %v1194_v42 = vpop.f32.mrf.mxu0 }
 0x168   : > { %1250 = vmatpush.bf16.msra.mxu3 %v1241_v38  ;;  %v1069_v38 = vadd.f32 %v5802_v32, %v1040_v33  ;;  %v1323_v32 = vpop.permute.xlu1 %1322 }
 0x169   : > { %5478 = vrcp.f32 %v1292_v53  ;;  %v5822_v63 = vmin.f32 %v1290_v59, 1.0  ;;  %v1965_v59 = vld [vmem:[%s5588_s14 + $0x18] sm:$0xff] }
 0x16a   : > { %1987 = vperm.xlu2 %5476, %v1965_v59  }
 0x16b   : > { %5006 = vmatmul.msk.bf16.vlgmr.msra.gmra.mxu3 %vm1013_vm2, %v1232_v39  ;;  %v1325_v6 = vperm.slane %v5822_v63, 0 }
 0x16d   : > { %v1326_v13 = vmul.f32 %v1325_v6, %v1308_v5  ;;  %v1327_v28 = vmul.f32 %v1325_v6, %v1313_v26  ;;  %v1328_v41 = vmul.f32 %v1325_v6, %v1318_v36  ;;  %v1329_v52 = vmul.f32 %v1325_v6, %v1323_v32  ;;  %v1636_v32 = vld [vmem:[%s6898_s23] sm:$0xff] }
 0x16f   : > { %v5479_v60 = vpop.eup %5478 }
 0x170   : > { %v1294_v0 = vmul.f32 5.0, %v5479_v60  ;;  %v1968_v60 = vld [vmem:[%s5588_s14 + $0x30] sm:$0xff] }
 0x172   : > { %v1295_v3 = vmul.f32 %v1294_v0, %v5822_v63  ;;  %2002 = vperm.xlu2 %5476, %v1968_v60   ;;  %v2422_v0 = vld [vmem:[%s5603_s30 + $0x20] sm:$0xff] }
 0x174   : > { %v1296_v10 = vperm.slane %v1295_v3, 0  ;;  %v2425_v3 = vld [vmem:[%s5603_s30 + $0x38] sm:$0xff] }
 0x17a   : > { %2433 = vperm.xlu2 %5476, %v2419_v61   ;;  %v1602_v61 = vpop.permute.xlu2 %1601 }
 0x17b   : > { %5007 = vmatmul.msk.bf16.gmra.mxu3 %vm1013_vm2, %v1233_v43  ;;  %v1135_v43 = vadd.f32 %v5813_v47, %v1069_v38  ;;  %v5034_v38 = vld [vmem:[%s5568_s25 + $0x48] sm:$0xff] }
 0x17d   : > { %v1200_v45 = vadd.f32 %v1194_v42, %v1135_v43  ;;  %v5035_v42 = vld [vmem:[%s5568_s25 + $0x50] sm:$0xff]  ;;  %v5036_v43 = vld [vmem:[%s5568_s25 + $0x58] sm:$0xff] }
 0x182   : > { %2448 = vperm.xlu2 %5476, %v2422_v0  }
 0x18a   : > { %2463 = vperm.xlu2 %5476, %v2425_v3  }
 0x1ee   : > { %v1252_v8 = vpop.f32.mrf.mxu3 }
 0x1ef   : > { %v1262_v11 = vadd.f32 %v1252_v8, %v1197_v4 }
 0x1f1   : > { %v1297_v12 = vmul.f32 %v1296_v10, %v1262_v11  ;;  %v5019_v11 = vld [vmem:[%s5568_s25 + $0x20] sm:$0xff] }
 0x1f3   : > { %v1330_v18 = vadd.f32 %v1326_v13, %v1297_v12  ;;  %v5020_v12 = vld [vmem:[%s5568_s25 + $0x28] sm:$0xff] }
 0x1f4   : > { %v1434_v15 = vpack.c.bf16 %v5020_v12, %v5019_v11  ;;  %v5067_v11 = vld [vmem:[%s6898_s23 + $0x28] sm:$0xff]  ;;  %v5066_v12 = vld [vmem:[%s6898_s23 + $0x20] sm:$0xff] }
 0x1f5   : > { %v1334_v20 = vmax.f32 %v1330_v18, 0.0  ;;  %v1385_v18 = vld [vmem:[%s5568_s25] sm:$0xff] }
 0x1f6   : > { %v1254_v21 = vpop.f32.mrf.mxu3 }
 0x1f7   : > { %v1338_v23 = vmul.f32 %v1334_v20, %v1325_v6  ;;  %v1263_v24 = vadd.f32 %v1254_v21, %v1198_v19  ;;  %v1386_v19 = vld [vmem:[%s5568_s25 + $0x8] sm:$0xff]  ;;  %v3328_v20 = vld [vmem:[%s5633_s12] sm:$0xff] }
 0x1f8   : > { %v1391_v22 = vpack.c.bf16 %v1386_v19, %v1385_v18 }
 0x1f9   : > { %v1298_v27 = vmul.f32 %v1296_v10, %v1263_v24  ;;  %5009 = vmatmul.msk.f32.vlgmr.msrb.gmra.mxu2 %vm949_vm0, %v1338_v23  ;;  %5015 = vmatmul.msk.f32.vlgmr.msrb.gmra.mxu1 %vm949_vm0, %v1338_v23  ;;  %v5021_v24 = vld [vmem:[%s5568_s25 + $0x30] sm:$0xff] }
 0x1fb   : > { %v1331_v31 = vadd.f32 %v1327_v28, %v1298_v27  ;;  %v1435_v27 = vpack.c.bf16 %v5022_v25, %v5021_v24  ;;  %v1387_v28 = vld [vmem:[%s5568_s25 + $0x10] sm:$0xff] }
 0x1fd   : > { %v1335_v35 = vmax.f32 %v1331_v31, 0.0  ;;  %v3334_v31 = vld [vmem:[%s5633_s12 + $0x30] sm:$0xff] }
 0x1fe   : > { %v1257_v37 = vpop.f32.mrf.mxu3 }
 0x1ff   : > { %v1264_v29 = vadd.f32 %v1257_v37, %v1199_v34  ;;  %v1339_v39 = vmul.f32 %v1335_v35, %v1325_v6  ;;  %v3894_v34 = vld [vmem:[%s5648_s4 + $0x8] sm:$0xff]  ;;  %v5033_v37 = vld [vmem:[%s5568_s25 + $0x40] sm:$0xff] }
 0x201   : > { %v1299_v40 = vmul.f32 %v1296_v10, %v1264_v29  ;;  %5010 = vmatmul.msk.f32.gmra.mxu2 %vm949_vm0, %v1339_v39  ;;  %5016 = vmatmul.msk.f32.gmra.mxu1 %vm949_vm0, %v1339_v39  ;;  %v3897_v29 = vld [vmem:[%s5648_s4 + $0x20] sm:$0xff] }
 0x203   : > { %v1332_v44 = vadd.f32 %v1328_v41, %v1299_v40  ;;  %v1528_v40 = vpack.c.bf16 %v5034_v38, %v5033_v37  ;;  %v3900_v41 = vld [vmem:[%s5648_s4 + $0x38] sm:$0xff] }
 0x205   : > { %v1336_v46 = vmax.f32 %v1332_v44, 0.0  ;;  %v4500_v44 = vld [vmem:[%s5668_s8 + $0x10] sm:$0xff] }
 0x206   : > { %v1259_v48 = vpop.f32.mrf.mxu3 }
 0x207   : > { %v1265_v49 = vadd.f32 %v1259_v48, %v1200_v45  ;;  %v1340_v50 = vmul.f32 %v1336_v46, %v1325_v6  ;;  %v1529_v45 = vpack.c.bf16 %v5036_v43, %v5035_v42 }
 0x209   : > { %v1300_v51 = vmul.f32 %v1296_v10, %v1265_v49  ;;  %5011 = vmatmul.msk.f32.gmra.mxu2 %vm949_vm0, %v1340_v50  ;;  %5017 = vmatmul.msk.f32.gmra.mxu1 %vm949_vm0, %v1340_v50  ;;  %v2878_v10 = vld [vmem:[%s5618_s20 + $0x28] sm:$0xff] }
 0x20a   : > { %v1637_v49 = vld [vmem:[%s6898_s23 + $0x8] sm:$0xff] }
 0x20b   : > { %v1333_v53 = vadd.f32 %v1329_v52, %v1300_v51  ;;  %v5044_v51 = vld [vmem:[%s6898_s23 + $0x10] sm:$0xff] }
 0x20c   : > { %v1824_v18 = vadd.f32 %v5044_v51, %v1636_v32 }
 0x20d   : > { %v1337_v54 = vmax.f32 %v1333_v53, 0.0 }
 0x20f   : > { %v1341_v47 = vmul.f32 %v1337_v54, %v1325_v6  ;;  %v2875_v6 = vld [vmem:[%s5618_s20 + $0x10] sm:$0xff] }
 0x210   : > { %2893 = vperm.xlu2 %5476, %v2875_v6  }
 0x211   : > { %5012 = vmatmul.msk.f32.gmra.mxu2 %vm949_vm0, %v1341_v47  ;;  %5018 = vmatmul.msk.f32.gmra.mxu1 %vm949_vm0, %v1341_v47 }
 0x218   : > { %2908 = vperm.xlu2 %5476, %v2878_v10  }
 0x219   : > { %5029 = vmatmul.msk.f32.vlgmr.msra.gmra.mxu2 %vm949_vm0, %v1338_v23 }
 0x220   : > { %3338 = vperm.xlu2 %5476, %v3328_v20  }
 0x221   : > { %5030 = vmatmul.msk.f32.gmra.mxu2 %vm949_vm0, %v1339_v39 }
 0x229   : > { %5031 = vmatmul.msk.f32.gmra.mxu2 %vm949_vm0, %v1340_v50  ;;  %v5045_v50 = vld [vmem:[%s6898_s23 + $0x18] sm:$0xff] }
 0x231   : > { %5032 = vmatmul.msk.f32.gmra.mxu2 %vm949_vm0, %v1341_v47 }
 0x276   : > { %v1415_v62 = vpop.f32.mrf.mxu1 }
 0x27c   : > { %v1373_v1 = vpop.f32.mrf.mxu2 }
 0x27e   : > { %v1418_v2 = vpop.f32.mrf.mxu1 }
 0x27f   : > { %v1432_v13 = vpack.c.bf16 %v1418_v2, %v1415_v62 }
 0x284   : > { %v1376_v4 = vpop.f32.mrf.mxu2 }
 0x285   : > { %v1389_v21 = vpack.c.bf16 %v1376_v4, %v1373_v1 }
 0x286   : > { %v1421_v5 = vpop.f32.mrf.mxu1 }
 0x28c   : > { %v1379_v7 = vpop.f32.mrf.mxu2 }
 0x28e   : > { %v1424_v8 = vpop.f32.mrf.mxu1 }
 0x28f   : > { %v1433_v9 = vpack.c.bf16 %v1424_v8, %v1421_v5 }
 0x291   : > { %1449 = vmatpush.bf16.msra.mxu0 %v1433_v9 }
 0x294   : > { %v1382_v14 = vpop.f32.mrf.mxu2 }
 0x295   : > { %v1390_v17 = vpack.c.bf16 %v1382_v14, %v1379_v7  ;;  %1450 = vmatpush.bf16.msra.mxu0 %v1432_v13  ;;  %v1825_v13 = vadd.f32 %v5045_v50, %v1637_v49 }
 0x297   : > { %1474 = vmatpush.bf16.msrb.mxu3 %v1390_v17  ;;  %v1607_v17 = vpop.permute.xlu2 %1606 }
 0x298   : > { %5023 = vmatmul.msk.bf16.vlgmr.msra.gmra.mxu0 %vm1436_vm3, %v1434_v15 }
 0x299   : > { %1578 = vmatpush.msrb.mxu0 %v5820_v57  ;;  %v3331_v57 = vld [vmem:[%s5633_s12 + $0x18] sm:$0xff] }
 0x29a   : > { %3353 = vperm.xlu2 %5476, %v3331_v57  }
 0x29b   : > { %1579 = vmatpush.msrb.mxu0 %v5828_v16  ;;  %1475 = vmatpush.bf16.msrb.mxu3 %v1389_v21  ;;  %v1392_v16 = vpack.c.bf16 %v1388_v30, %v1387_v28 }
 0x29c   : > { %v1509_v23 = vpop.f32.mrf.mxu2 }
 0x29d   : > { %1664 = vmatpush.msra.mxu0 %v1637_v49 }
 0x29e   : > { %5025 = vmatmul.msk.bf16.vlgmr.msrb.gmra.mxu3 %vm1436_vm3, %v1391_v22  ;;  %v1923_v22 = vadd.f32 %v5067_v11, %v1825_v13  ;;  %v1683_v13 = vld [vmem:[%s6899_s26 + $0x20] sm:$0xff] }
 0x29f   : > { %1712 = vmatpush.msra.mxu3 %v5045_v50  ;;  %1665 = vmatpush.msra.mxu0 %v1636_v32 }
 0x2a1   : > { %1713 = vmatpush.msra.mxu3 %v5044_v51 }
 0x2a2   : > { %3368 = vperm.xlu2 %5476, %v3334_v31   ;;  %v1612_v31 = vpop.permute.xlu0 %1611 }
 0x2a4   : > { %v1512_v26 = vpop.f32.mrf.mxu2 }
 0x2a5   : > { %v1526_v39 = vpack.c.bf16 %v1512_v26, %v1509_v23  ;;  %v1922_v26 = vadd.f32 %v5066_v12, %v1824_v18 }
 0x2a8   : > { %5024 = vmatmul.msk.bf16.gmra.mxu0 %vm1436_vm3, %v1435_v27 }
 0x2aa   : > { %3908 = vperm.xlu2 %5476, %v3894_v34  }
 0x2ac   : > { %v1515_v33 = vpop.f32.mrf.mxu2 }
 0x2ae   : > { %5026 = vmatmul.msk.bf16.gmra.mxu3 %vm1436_vm3, %v1392_v16 }
 0x2b2   : > { %3923 = vperm.xlu2 %5476, %v3897_v29  }
 0x2b4   : > { %v1518_v35 = vpop.f32.mrf.mxu2 }
 0x2b5   : > { %v1527_v36 = vpack.c.bf16 %v1518_v35, %v1515_v33 }
 0x2b7   : > { %1542 = vmatpush.bf16.msra.mxu1 %v1527_v36 }
 0x2b8   : > { %5039 = vmatmul.msk.f32.vlgmr.msrb.gmra.mxu0 %vm949_vm0, %v5822_v63 }
 0x2b9   : > { %1843 = vmatpush.msrb.mxu0 %v5067_v11  ;;  %v5072_v11 = vld [vmem:[%s6899_s26 + $0x80] sm:$0xff] }
 0x2ba   : > { %3938 = vperm.xlu2 %5476, %v3900_v41  }
 0x2bb   : > { %1543 = vmatpush.bf16.msra.mxu1 %v1526_v39  ;;  %1844 = vmatpush.msrb.mxu0 %v5066_v12  ;;  %v1617_v39 = vpop.permute.xlu1 %1616  ;;  %v5073_v12 = vld [vmem:[%s6899_s26 + $0x88] sm:$0xff] }
 0x2bc   : > { %v1869_v18 = vpack.c.bf16 %v5073_v12, %v5072_v11  ;;  %v1978_v11 = vpop.permute.xlu0 %1977 }
 0x2be   : > { %5037 = vmatmul.msk.bf16.vlgmr.msra.gmra.mxu1 %vm1436_vm3, %v1528_v40 }
 0x2c2   : > { %4514 = vperm.xlu2 %5476, %v4500_v44  }
 0x2ce   : > { %5038 = vmatmul.msk.bf16.gmra.mxu1 %vm1436_vm3, %v1529_v45 }
 0x315   : > { %v1452_v63 = vpop.f32.mrf.mxu0 }
 0x31d   : > { %v1454_v46 = vpop.f32.mrf.mxu0 }
 0x321   : > { %v1477_v53 = vpop.f32.mrf.mxu3 }
 0x322   : > { %v1478_v0 = vadd.f32 %v1477_v53, %v1452_v63  ;;  %v1680_v53 = vld [vmem:[%s6899_s26 + $0x8] sm:$0xff] }
 0x325   : > { %v1457_v48 = vpop.f32.mrf.mxu0 }
 0x329   : > { %v1479_v56 = vpop.f32.mrf.mxu3 }
 0x32a   : > { %v1480_v3 = vadd.f32 %v1479_v56, %v1454_v46 }
 0x32d   : > { %v1459_v52 = vpop.f32.mrf.mxu0 }
 0x331   : > { %v1482_v8 = vpop.f32.mrf.mxu3 }
 0x332   : > { %v1483_v21 = vadd.f32 %v1482_v8, %v1457_v48 }
 0x335   : > { %v1581_v54 = vpop.f32.mrf.mxu0 }
 0x336   : > { %v1586_v47 = vadd.f32 1e-08, %v1581_v54  ;;  %v1584_v55 = vmax.f32 %v1581_v54, 0.0 }
 0x338   : > { %5480 = vrcp.f32 %v1586_v47  ;;  %v5888_v59 = vmin.f32 %v1584_v55, 1.0 }
 0x339   : > { %v1484_v27 = vpop.f32.mrf.mxu3 }
 0x33a   : > { %v1619_v2 = vperm.slane %v5888_v59, 0  ;;  %v1485_v33 = vadd.f32 %v1484_v27, %v1459_v52  ;;  %v1679_v52 = vld [vmem:[%s6899_s26] sm:$0xff]  ;;  %v1686_v27 = vld [vmem:[%s6899_s26 + $0x38] sm:$0xff] }
 0x33b   : > { %v1545_v58 = vpop.f32.mrf.mxu1  ;;  %v1689_v55 = vpack.c.bf16 %v1680_v53, %v1679_v52 }
 0x33c   : > { %v1555_v5 = vadd.f32 %v1545_v58, %v1478_v0  ;;  %v1620_v10 = vmul.f32 %v1619_v2, %v1602_v61  ;;  %v1621_v20 = vmul.f32 %v1619_v2, %v1607_v17  ;;  %v1622_v16 = vmul.f32 %v1619_v2, %v1612_v31  ;;  %v5051_v61 = vld [vmem:[%s6899_s26 + $0x48] sm:$0xff] }
 0x33d   : > { %v1623_v40 = vmul.f32 %v1619_v2, %v1617_v39  ;;  %v5078_v39 = vld [vmem:[%s6899_s26 + $0xb0] sm:$0xff] }
 0x33e   : > { %v5481_v60 = vpop.eup %5480 }
 0x33f   : > { %v1588_v62 = vmul.f32 3.0, %v5481_v60  ;;  %v5050_v60 = vld [vmem:[%s6899_s26 + $0x40] sm:$0xff] }
 0x340   : > { %v1738_v0 = vpack.c.bf16 %v5051_v61, %v5050_v60 }
 0x341   : > { %v1589_v1 = vmul.f32 %v1588_v62, %v5888_v59 }
 0x343   : > { %v1590_v4 = vperm.slane %v1589_v1, 0  ;;  %v1547_v6 = vpop.f32.mrf.mxu1 }
 0x344   : > { %v1556_v7 = vadd.f32 %v1547_v6, %v1480_v3  ;;  %v1682_v3 = vld [vmem:[%s6899_s26 + $0x18] sm:$0xff]  ;;  %v5052_v6 = vld [vmem:[%s6899_s26 + $0x50] sm:$0xff] }
 0x345   : > { %v1591_v9 = vmul.f32 %v1590_v4, %v1555_v5 }
 0x346   : > { %v1592_v15 = vmul.f32 %v1590_v4, %v1556_v7  ;;  %v5053_v7 = vld [vmem:[%s6899_s26 + $0x58] sm:$0xff] }
 0x347   : > { %v5894_v14 = vadd.f32 %v1620_v10, %v1591_v9  ;;  %v1739_v8 = vpack.c.bf16 %v5053_v7, %v5052_v6 }
 0x348   : > { %v5899_v57 = vadd.f32 %v1621_v20, %v1592_v15  ;;  %v1684_v15 = vld [vmem:[%s6899_s26 + $0x28] sm:$0xff] }
 0x349   : > { %v1628_v19 = vmax.f32 %v5894_v14, 0.0  ;;  %v1691_v20 = vpack.c.bf16 %v1684_v15, %v1683_v13  ;;  %v5294_v14 = vld [vmem:[%s6907_s18 + $0x90] sm:$0xff] }
 0x34a   : > { %v1629_v30 = vmax.f32 %v5899_v57, 0.0 }
 0x34b   : > { %v1632_v23 = vmul.f32 %v1628_v19, %v1619_v2  ;;  %v1550_v24 = vpop.f32.mrf.mxu1 }
 0x34c   : > { %v1557_v25 = vadd.f32 %v1550_v24, %v1483_v21  ;;  %v1633_v36 = vmul.f32 %v1629_v30, %v1619_v2  ;;  %v5054_v21 = vld [vmem:[%s6899_s26 + $0x60] sm:$0xff]  ;;  %v5074_v24 = vld [vmem:[%s6899_s26 + $0x90] sm:$0xff] }
 0x34d   : > { %5040 = vmatmul.msk.f32.vlgmr.msra.gmra.mxu0 %vm949_vm0, %v1632_v23  ;;  %5046 = vmatmul.msk.f32.vlgmr.msra.gmra.mxu3 %vm949_vm0, %v1632_v23 }
 0x34e   : > { %1941 = vmatpush.msra.mxu0 %v1923_v22  ;;  %v1593_v28 = vmul.f32 %v1590_v4, %v1557_v25  ;;  %v5055_v22 = vld [vmem:[%s6899_s26 + $0x68] sm:$0xff]  ;;  %v5075_v25 = vld [vmem:[%s6899_s26 + $0x98] sm:$0xff] }
 0x350   : > { %1942 = vmatpush.msra.mxu0 %v1922_v26  ;;  %v5904_v34 = vadd.f32 %v1622_v16, %v1593_v28  ;;  %v1685_v26 = vld [vmem:[%s6899_s26 + $0x30] sm:$0xff]  ;;  %v1870_v28 = vpack.c.bf16 %v5075_v25, %v5074_v24  ;;  %v1983_v25 = vpop.permute.xlu1 %1982 }
 0x351   : > { %v1692_v31 = vpack.c.bf16 %v1686_v27, %v1685_v26  ;;  %v5056_v16 = vld [vmem:[%s6899_s26 + $0x70] sm:$0xff] }
 0x352   : > { %v1630_v29 = vmax.f32 %v5904_v34, 0.0  ;;  %v5297_v34 = vld [vmem:[%s6907_s18 + $0xa8] sm:$0xff] }
 0x353   : > { %v1552_v35 = vpop.f32.mrf.mxu1 }
 0x354   : > { %v1558_v37 = vadd.f32 %v1552_v35, %v1485_v33  ;;  %v1634_v42 = vmul.f32 %v1630_v29, %v1619_v2  ;;  %v5057_v33 = vld [vmem:[%s6899_s26 + $0x78] sm:$0xff] }
 0x355   : > { %5041 = vmatmul.msk.f32.gmra.mxu0 %vm949_vm0, %v1633_v36  ;;  %5047 = vmatmul.msk.f32.gmra.mxu3 %vm949_vm0, %v1633_v36  ;;  %v1741_v35 = vpack.c.bf16 %v5057_v33, %v5056_v16 }
 0x356   : > { %v1594_v38 = vmul.f32 %v1590_v4, %v1558_v37  ;;  %v5077_v37 = vld [vmem:[%s6899_s26 + $0xa8] sm:$0xff] }
 0x358   : > { %v5911_v41 = vadd.f32 %v1623_v40, %v1594_v38  ;;  %v5079_v40 = vld [vmem:[%s6899_s26 + $0xb8] sm:$0xff] }
 0x35a   : > { %v1631_v43 = vmax.f32 %v5911_v41, 0.0 }
 0x35c   : > { %v1635_v44 = vmul.f32 %v1631_v43, %v1619_v2  ;;  %v1681_v2 = vld [vmem:[%s6899_s26 + $0x10] sm:$0xff] }
 0x35d   : > { %5042 = vmatmul.msk.f32.gmra.mxu0 %vm949_vm0, %v1634_v42  ;;  %5048 = vmatmul.msk.f32.gmra.mxu3 %vm949_vm0, %v1634_v42  ;;  %v1690_v4 = vpack.c.bf16 %v1682_v3, %v1681_v2 }
 0x365   : > { %5043 = vmatmul.msk.f32.gmra.mxu0 %vm949_vm0, %v1635_v44  ;;  %5049 = vmatmul.msk.f32.gmra.mxu3 %vm949_vm0, %v1635_v44 }
 0x36d   : > { %5068 = vmatmul.msk.f32.vlgmr.msrb.gmra.mxu0 %vm949_vm0, %v1632_v23  ;;  %v1740_v23 = vpack.c.bf16 %v5055_v22, %v5054_v21 }
 0x375   : > { %5069 = vmatmul.msk.f32.gmra.mxu0 %vm949_vm0, %v1633_v36  ;;  %v5076_v36 = vld [vmem:[%s6899_s26 + $0xa0] sm:$0xff] }
 0x376   : > { %v1871_v38 = vpack.c.bf16 %v5077_v37, %v5076_v36 }
 0x37d   : > { %5070 = vmatmul.msk.f32.gmra.mxu0 %vm949_vm0, %v1634_v42  ;;  %v1872_v42 = vpack.c.bf16 %v5079_v40, %v5078_v39 }
 0x385   : > { %5071 = vmatmul.msk.f32.gmra.mxu0 %vm949_vm0, %v1635_v44 }
 0x38d   : > { %5084 = vmatmul.msk.f32.vlgmr.msra.gmra.mxu0 %vm949_vm0, %v5888_v59 }
 0x3ca   : > { %v1667_v45 = vpop.f32.mrf.mxu0 }
 0x3d0   : > { %v1715_v63 = vpop.f32.mrf.mxu3 }
 0x3d2   : > { %v1670_v46 = vpop.f32.mrf.mxu0 }
 0x3d3   : > { %v1687_v54 = vpack.c.bf16 %v1670_v46, %v1667_v45  ;;  %v5093_v45 = vld [vmem:[%s6900_s28 + $0x8] sm:$0xff] }
 0x3d8   : > { %v1718_v48 = vpop.f32.mrf.mxu3 }
 0x3d9   : > { %v1736_v62 = vpack.c.bf16 %v1718_v48, %v1715_v63  ;;  %v2043_v63 = vld [vmem:[%s6900_s28] sm:$0xff] }
 0x3da   : > { %v1673_v49 = vpop.f32.mrf.mxu0  ;;  %2083 = vmatpush.msrb.mxu0 %v2043_v63 }
 0x3e0   : > { %v1721_v50 = vpop.f32.mrf.mxu3 }
 0x3e2   : > { %v1676_v32 = vpop.f32.mrf.mxu0 }
 0x3e3   : > { %v1688_v51 = vpack.c.bf16 %v1676_v32, %v1673_v49  ;;  %v5966_v49 = vadd.f32 %v5093_v45, %v2043_v63 }
 0x3e5   : > { %1801 = vmatpush.bf16.msrb.mxu1 %v1688_v51 }
 0x3e8   : > { %v1724_v47 = vpop.f32.mrf.mxu3 }
 0x3e9   : > { %v1737_v56 = vpack.c.bf16 %v1724_v47, %v1721_v50  ;;  %1802 = vmatpush.bf16.msrb.mxu1 %v1687_v54 }
 0x3ea   : > { %v1846_v58 = vpop.f32.mrf.mxu0 }
 0x3eb   : > { %1760 = vmatpush.bf16.msrb.mxu2 %v1737_v56 }
 0x3ec   : > { %5062 = vmatmul.msk.bf16.vlgmr.msrb.gmra.mxu1 %vm1436_vm3, %v1689_v55 }
 0x3ef   : > { %1761 = vmatpush.bf16.msrb.mxu2 %v1736_v62 }
 0x3f2   : > { %v1849_v1 = vpop.f32.mrf.mxu0  ;;  %5058 = vmatmul.msk.bf16.vlgmr.msrb.gmra.mxu2 %vm1436_vm3, %v1738_v0 }
 0x3f3   : > { %v1867_v17 = vpack.c.bf16 %v1849_v1, %v1846_v58  ;;  %2143 = vmatpush.msra.mxu2 %v5093_v45  ;;  %v1973_v1 = vpop.permute.xlu2 %1972 }
 0x3fa   : > { %v1852_v5 = vpop.f32.mrf.mxu0 }
 0x3fb   : > { %v1988_v39 = vpop.permute.xlu2 %1987 }
 0x3fc   : > { %5063 = vmatmul.msk.bf16.gmra.mxu1 %vm1436_vm3, %v1690_v4 }
 0x402   : > { %v1855_v9 = vpop.f32.mrf.mxu0  ;;  %5059 = vmatmul.msk.bf16.gmra.mxu2 %vm1436_vm3, %v1739_v8 }
 0x403   : > { %v1868_v10 = vpack.c.bf16 %v1855_v9, %v1852_v5 }
 0x405   : > { %1891 = vmatpush.bf16.msrb.mxu3 %v1868_v10 }
 0x409   : > { %1892 = vmatpush.bf16.msrb.mxu3 %v1867_v17 }
 0x40a   : > { %v1944_v44 = vpop.f32.mrf.mxu0 }
 0x40b   : > { %v1949_v46 = vadd.f32 1e-08, %v1944_v44  ;;  %v1947_v51 = vmax.f32 %v1944_v44, 0.0 }
 0x40c   : > { %5080 = vmatmul.msk.bf16.vlgmr.msrb.gmra.mxu3 %vm1436_vm3, %v1869_v18  ;;  %5064 = vmatmul.msk.bf16.gmra.mxu1 %vm1436_vm3, %v1691_v20 }
 0x40d   : > { %5482 = vrcp.f32 %v1949_v46  ;;  %v5968_v47 = vmin.f32 %v1947_v51, 1.0 }
 0x40f   : > { %v5972_v58 = vperm.slane %v5968_v47, 0 }
 0x411   : > { %v2011_v4 = vmul.f32 %v5972_v58, %v1973_v1  ;;  %v2012_v13 = vmul.f32 %v5972_v58, %v1978_v11  ;;  %v2013_v27 = vmul.f32 %v5972_v58, %v1983_v25 }
 0x412   : > { %5060 = vmatmul.msk.bf16.gmra.mxu2 %vm1436_vm3, %v1740_v23 }
 0x413   : > { %v5483_v32 = vpop.eup %5482 }
 0x414   : > { %v1951_v54 = vmul.f32 3.0, %v5483_v32 }
 0x416   : > { %v1952_v55 = vmul.f32 %v1951_v54, %v5968_v47 }
 0x418   : > { %v5974_v61 = vperm.slane %v1952_v55, 0  ;;  %v5118_v55 = vld [vmem:[%s6900_s28 + $0x10] sm:$0xff] }
 0x419   : > { %2287 = vmatpush.msra.mxu0 %v5118_v55 }
 0x41c   : > { %5081 = vmatmul.msk.bf16.gmra.mxu3 %vm1436_vm3, %v1870_v28  ;;  %5065 = vmatmul.msk.bf16.gmra.mxu1 %vm1436_vm3, %v1692_v31 }
 0x422   : > { %5061 = vmatmul.msk.bf16.gmra.mxu2 %vm1436_vm3, %v1741_v35 }
 0x42c   : > { %5082 = vmatmul.msk.bf16.gmra.mxu3 %vm1436_vm3, %v1871_v38 }
 0x43c   : > { %5083 = vmatmul.msk.bf16.gmra.mxu3 %vm1436_vm3, %v1872_v42  ;;  %v2014_v42 = vmul.f32 %v5972_v58, %v1988_v39 }
 0x469   : > { %v1804_v48 = vpop.f32.mrf.mxu1 }
 0x471   : > { %v1806_v52 = vpop.f32.mrf.mxu1 }
 0x475   : > { %v1763_v50 = vpop.f32.mrf.mxu2 }
 0x476   : > { %v1805_v56 = vadd.f32 %v1804_v48, %v1763_v50 }
 0x479   : > { %v1809_v0 = vpop.f32.mrf.mxu1 }
 0x47d   : > { %v1765_v53 = vpop.f32.mrf.mxu2 }
 0x47e   : > { %v1807_v6 = vadd.f32 %v1806_v52, %v1765_v53  ;;  %v1993_v52 = vpop.permute.xlu0 %1992 }
 0x47f   : > { %v2015_v54 = vmul.f32 %v5972_v58, %v1993_v52 }
 0x481   : > { %v1811_v15 = vpop.f32.mrf.mxu1 }
 0x485   : > { %v1768_v2 = vpop.f32.mrf.mxu2 }
 0x486   : > { %v1810_v18 = vadd.f32 %v1809_v0, %v1768_v2  ;;  %v1998_v2 = vpop.permute.xlu1 %1997 }
 0x489   : > { %v1814_v31 = vpop.f32.mrf.mxu1 }
 0x48d   : > { %v1770_v17 = vpop.f32.mrf.mxu2 }
 0x48e   : > { %v1812_v33 = vadd.f32 %v1811_v15, %v1770_v17  ;;  %v2003_v17 = vpop.permute.xlu2 %2002 }
 0x48f   : > { %v1894_v60 = vpop.f32.mrf.mxu3 }
 0x490   : > { %v1914_v62 = vadd.f32 %v1894_v60, %v1805_v56  ;;  %v6012_v56 = vadd.f32 %v5118_v55, %v5966_v49 }
 0x491   : > { %v1816_v46 = vpop.f32.mrf.mxu1 }
 0x492   : > { %v1954_v3 = vmul.f32 %v5974_v61, %v1914_v62 }
 0x494   : > { %v2019_v5 = vadd.f32 %v2011_v4, %v1954_v3 }
 0x495   : > { %v1773_v16 = vpop.f32.mrf.mxu2 }
 0x496   : > { %v2027_v7 = vmax.f32 %v2019_v5, 0.0  ;;  %v1815_v44 = vadd.f32 %v1814_v31, %v1773_v16  ;;  %v2008_v16 = vpop.permute.xlu0 %2007 }
 0x497   : > { %v1896_v8 = vpop.f32.mrf.mxu3 }
 0x498   : > { %v5979_v9 = vmul.f32 %v2027_v7, %v5972_v58  ;;  %v1915_v10 = vadd.f32 %v1896_v8, %v1807_v6  ;;  %v2016_v8 = vmul.f32 %v5972_v58, %v1998_v2  ;;  %v2110_v2 = vld [vmem:[%s6901_s1 + $0x8] sm:$0xff] }
 0x499   : > { %v1819_v6 = vpop.f32.mrf.mxu1 }
 0x49a   : > { %v1955_v12 = vmul.f32 %v5974_v61, %v1915_v10  ;;  %5085 = vmatmul.msk.f32.vlgmr.msrb.gmra.mxu0 %vm1013_vm2, %v5979_v9  ;;  %5094 = vmatmul.msk.f32.vlgmr.msra.gmra.mxu2 %vm1013_vm2, %v5979_v9 }
 0x49c   : > { %v2020_v20 = vadd.f32 %v2012_v13, %v1955_v12 }
 0x49d   : > { %v1775_v48 = vpop.f32.mrf.mxu2 }
 0x49e   : > { %v2028_v21 = vmax.f32 %v2020_v20, 0.0  ;;  %v1817_v62 = vadd.f32 %v1816_v46, %v1775_v48  ;;  %v2017_v20 = vmul.f32 %v5972_v58, %v2003_v17 }
 0x49f   : > { %v1899_v22 = vpop.f32.mrf.mxu3 }
 0x4a0   : > { %v1916_v23 = vadd.f32 %v1899_v22, %v1810_v18  ;;  %v5988_v24 = vmul.f32 %v2028_v21, %v5972_v58 }
 0x4a1   : > { %v1821_v22 = vpop.f32.mrf.mxu1 }
 0x4a2   : > { %v1956_v26 = vmul.f32 %v5974_v61, %v1916_v23  ;;  %5086 = vmatmul.msk.f32.gmra.mxu0 %vm1013_vm2, %v5988_v24  ;;  %5095 = vmatmul.msk.f32.gmra.mxu2 %vm1013_vm2, %v5988_v24 }
 0x4a4   : > { %v2021_v28 = vadd.f32 %v2013_v27, %v1956_v26 }
 0x4a5   : > { %v1778_v5 = vpop.f32.mrf.mxu2 }
 0x4a6   : > { %v2029_v35 = vmax.f32 %v2021_v28, 0.0  ;;  %v1820_v49 = vadd.f32 %v1819_v6, %v1778_v5 }
 0x4a7   : > { %v1901_v36 = vpop.f32.mrf.mxu3 }
 0x4a8   : > { %v1917_v37 = vadd.f32 %v1901_v36, %v1812_v33  ;;  %v5997_v38 = vmul.f32 %v2029_v35, %v5972_v58  ;;  %v2018_v35 = vmul.f32 %v5972_v58, %v2008_v16 }
 0x4aa   : > { %v1957_v40 = vmul.f32 %v5974_v61, %v1917_v37  ;;  %5087 = vmatmul.msk.f32.gmra.mxu0 %vm1013_vm2, %v5997_v38  ;;  %5096 = vmatmul.msk.f32.gmra.mxu2 %vm1013_vm2, %v5997_v38 }
 0x4ac   : > { %v2022_v45 = vadd.f32 %v2014_v42, %v1957_v40 }
 0x4ad   : > { %v1780_v21 = vpop.f32.mrf.mxu2 }
 0x4ae   : > { %v2030_v63 = vmax.f32 %v2022_v45, 0.0  ;;  %v1822_v25 = vadd.f32 %v1821_v22, %v1780_v21 }
 0x4af   : > { %v1904_v50 = vpop.f32.mrf.mxu3 }
 0x4b0   : > { %v1918_v32 = vadd.f32 %v1904_v50, %v1815_v44  ;;  %v2038_v51 = vmul.f32 %v2030_v63, %v5972_v58 }
 0x4b2   : > { %v1958_v53 = vmul.f32 %v5974_v61, %v1918_v32  ;;  %5088 = vmatmul.msk.f32.gmra.mxu0 %vm1013_vm2, %v2038_v51  ;;  %5097 = vmatmul.msk.f32.gmra.mxu2 %vm1013_vm2, %v2038_v51 }
 0x4b4   : > { %v2023_v60 = vadd.f32 %v2015_v54, %v1958_v53 }
 0x4b6   : > { %v2031_v0 = vmax.f32 %v2023_v60, 0.0 }
 0x4b7   : > { %v1906_v1 = vpop.f32.mrf.mxu3 }
 0x4b8   : > { %v2039_v3 = vmul.f32 %v2031_v0, %v5972_v58  ;;  %v1919_v4 = vadd.f32 %v1906_v1, %v1817_v62  ;;  %v2109_v1 = vld [vmem:[%s6901_s1] sm:$0xff] }
 0x4ba   : > { %v1959_v7 = vmul.f32 %v5974_v61, %v1919_v4  ;;  %5089 = vmatmul.msk.f32.gmra.mxu0 %vm1013_vm2, %v2039_v3  ;;  %5098 = vmatmul.msk.f32.gmra.mxu2 %vm1013_vm2, %v2039_v3  ;;  %v2121_v4 = vpack.c.bf16 %v2110_v2, %v2109_v1 }
 0x4bc   : > { %v2024_v10 = vadd.f32 %v2016_v8, %v1959_v7  ;;  %v5102_v7 = vld [vmem:[%s6901_s1 + $0x40] sm:$0xff]  ;;  %v5103_v8 = vld [vmem:[%s6901_s1 + $0x48] sm:$0xff] }
 0x4be   : > { %v2032_v11 = vmax.f32 %v2024_v10, 0.0  ;;  %v2182_v10 = vpack.c.bf16 %v5103_v8, %v5102_v7 }
 0x4bf   : > { %v1909_v12 = vpop.f32.mrf.mxu3 }
 0x4c0   : > { %v1920_v13 = vadd.f32 %v1909_v12, %v1820_v49  ;;  %v2040_v15 = vmul.f32 %v2032_v11, %v5972_v58  ;;  %v2111_v12 = vld [vmem:[%s6901_s1 + $0x10] sm:$0xff] }
 0x4c2   : > { %v1960_v18 = vmul.f32 %v5974_v61, %v1920_v13  ;;  %5090 = vmatmul.msk.f32.gmra.mxu0 %vm1013_vm2, %v2040_v15  ;;  %5099 = vmatmul.msk.f32.gmra.mxu2 %vm1013_vm2, %v2040_v15  ;;  %v2112_v13 = vld [vmem:[%s6901_s1 + $0x18] sm:$0xff] }
 0x4c4   : > { %v2025_v23 = vadd.f32 %v2017_v20, %v1960_v18  ;;  %v5104_v18 = vld [vmem:[%s6901_s1 + $0x50] sm:$0xff]  ;;  %v5105_v20 = vld [vmem:[%s6901_s1 + $0x58] sm:$0xff] }
 0x4c5   : > { %v2183_v21 = vpack.c.bf16 %v5105_v20, %v5104_v18 }
 0x4c6   : > { %v2033_v26 = vmax.f32 %v2025_v23, 0.0  ;;  %v2114_v23 = vld [vmem:[%s6901_s1 + $0x28] sm:$0xff] }
 0x4c7   : > { %v1911_v27 = vpop.f32.mrf.mxu3 }
 0x4c8   : > { %v2041_v28 = vmul.f32 %v2033_v26, %v5972_v58  ;;  %v1921_v31 = vadd.f32 %v1911_v27, %v1822_v25  ;;  %v5106_v27 = vld [vmem:[%s6901_s1 + $0x60] sm:$0xff] }
 0x4ca   : > { %v1961_v33 = vmul.f32 %v5974_v61, %v1921_v31  ;;  %5091 = vmatmul.msk.f32.gmra.mxu0 %vm1013_vm2, %v2041_v28  ;;  %5100 = vmatmul.msk.f32.gmra.mxu2 %vm1013_vm2, %v2041_v28 }
 0x4cc   : > { %v2026_v36 = vadd.f32 %v2018_v35, %v1961_v33  ;;  %v2115_v33 = vld [vmem:[%s6901_s1 + $0x30] sm:$0xff]  ;;  %v2116_v35 = vld [vmem:[%s6901_s1 + $0x38] sm:$0xff] }
 0x4ce   : > { %v2034_v37 = vmax.f32 %v2026_v36, 0.0  ;;  %v2124_v36 = vpack.c.bf16 %v2116_v35, %v2115_v33 }
 0x4d0   : > { %v2042_v39 = vmul.f32 %v2034_v37, %v5972_v58 }
 0x4d2   : > { %5092 = vmatmul.msk.f32.gmra.mxu0 %vm1013_vm2, %v2042_v39  ;;  %5101 = vmatmul.msk.f32.gmra.mxu2 %vm1013_vm2, %v2042_v39 }
 0x4da   : > { %5119 = vmatmul.msk.f32.vlgmr.msra.gmra.mxu0 %vm1013_vm2, %v5979_v9 }
 0x4e2   : > { %5120 = vmatmul.msk.f32.gmra.mxu0 %vm1013_vm2, %v5988_v24 }
 0x4ea   : > { %5121 = vmatmul.msk.f32.gmra.mxu0 %vm1013_vm2, %v5997_v38 }
 0x4f2   : > { %5122 = vmatmul.msk.f32.gmra.mxu0 %vm1013_vm2, %v2038_v51 }
 0x4fa   : > { %5123 = vmatmul.msk.f32.gmra.mxu0 %vm1013_vm2, %v2039_v3 }
 0x502   : > { %5124 = vmatmul.msk.f32.gmra.mxu0 %vm1013_vm2, %v2040_v15  ;;  %v2122_v15 = vpack.c.bf16 %v2112_v13, %v2111_v12 }
 0x50a   : > { %5125 = vmatmul.msk.f32.gmra.mxu0 %vm1013_vm2, %v2041_v28  ;;  %v5107_v28 = vld [vmem:[%s6901_s1 + $0x68] sm:$0xff] }
 0x50b   : > { %v2184_v31 = vpack.c.bf16 %v5107_v28, %v5106_v27  ;;  %v2429_v27 = vpop.permute.xlu1 %2428 }
 0x512   : > { %5126 = vmatmul.msk.f32.gmra.mxu0 %vm1013_vm2, %v2042_v39 }
 0x517   : > { %v2085_v58 = vpop.f32.mrf.mxu0 }
 0x51d   : > { %v2145_v61 = vpop.f32.mrf.mxu2 }
 0x51f   : > { %v2088_v40 = vpop.f32.mrf.mxu0 }
 0x520   : > { %v2117_v3 = vpack.c.bf16 %v2088_v40, %v2085_v58  ;;  %v5108_v58 = vld [vmem:[%s6901_s1 + $0x70] sm:$0xff] }
 0x525   : > { %v2148_v9 = vpop.f32.mrf.mxu2 }
 0x526   : > { %v2178_v49 = vpack.c.bf16 %v2148_v9, %v2145_v61  ;;  %v5109_v61 = vld [vmem:[%s6901_s1 + $0x78] sm:$0xff] }
 0x527   : > { %v2091_v42 = vpop.f32.mrf.mxu0  ;;  %v2185_v40 = vpack.c.bf16 %v5109_v61, %v5108_v58 }
 0x52d   : > { %v2151_v44 = vpop.f32.mrf.mxu2 }
 0x52f   : > { %v2094_v24 = vpop.f32.mrf.mxu0 }
 0x530   : > { %v2118_v62 = vpack.c.bf16 %v2094_v24, %v2091_v42  ;;  %v5128_v24 = vld [vmem:[%s6901_s1 + $0x88] sm:$0xff] }
 0x535   : > { %v2154_v45 = vpop.f32.mrf.mxu2 }
 0x536   : > { %v2179_v5 = vpack.c.bf16 %v2154_v45, %v2151_v44  ;;  %v5127_v44 = vld [vmem:[%s6901_s1 + $0x80] sm:$0xff] }
 0x537   : > { %v2097_v63 = vpop.f32.mrf.mxu0 }
 0x53d   : > { %v2157_v38 = vpop.f32.mrf.mxu2 }
 0x53f   : > { %v2100_v46 = vpop.f32.mrf.mxu0 }
 0x540   : > { %v2119_v53 = vpack.c.bf16 %v2100_v46, %v2097_v63  ;;  %v2326_v63 = vpack.c.bf16 %v5128_v24, %v5127_v44  ;;  %v5130_v46 = vld [vmem:[%s6901_s1 + $0x98] sm:$0xff] }
 0x545   : > { %v2160_v48 = vpop.f32.mrf.mxu2 }
 0x546   : > { %v2180_v0 = vpack.c.bf16 %v2160_v48, %v2157_v38  ;;  %v5129_v38 = vld [vmem:[%s6901_s1 + $0x90] sm:$0xff] }
 0x547   : > { %v2103_v50 = vpop.f32.mrf.mxu0  ;;  %v2327_v48 = vpack.c.bf16 %v5130_v46, %v5129_v38  ;;  %v2439_v38 = vpop.permute.xlu0 %2438 }
 0x54d   : > { %v2163_v32 = vpop.f32.mrf.mxu2 }
 0x54f   : > { %v2106_v51 = vpop.f32.mrf.mxu0 }
 0x550   : > { %v2120_v52 = vpack.c.bf16 %v2106_v51, %v2103_v50  ;;  %v5131_v50 = vld [vmem:[%s6901_s1 + $0xa0] sm:$0xff] }
 0x552   : > { %2244 = vmatpush.bf16.msra.mxu3 %v2120_v52  ;;  %v5133_v52 = vld [vmem:[%s6901_s1 + $0xb0] sm:$0xff] }
 0x555   : > { %v2166_v54 = vpop.f32.mrf.mxu2 }
 0x556   : > { %v2181_v55 = vpack.c.bf16 %v2166_v54, %v2163_v32  ;;  %2245 = vmatpush.bf16.msra.mxu3 %v2119_v53  ;;  %v5132_v32 = vld [vmem:[%s6901_s1 + $0xa8] sm:$0xff]  ;;  %v5134_v53 = vld [vmem:[%s6901_s1 + $0xb8] sm:$0xff] }
 0x557   : > { %v6043_v60 = vpop.f32.mrf.mxu0  ;;  %v2328_v51 = vpack.c.bf16 %v5132_v32, %v5131_v50  ;;  %v2329_v54 = vpack.c.bf16 %v5134_v53, %v5133_v52 }
 0x558   : > { %2203 = vmatpush.bf16.msra.mxu1 %v2181_v55 }
 0x55a   : > { %2246 = vmatpush.bf16.msra.mxu3 %v2118_v62 }
 0x55c   : > { %2204 = vmatpush.bf16.msra.mxu1 %v2180_v0 }
 0x55e   : > { %2247 = vmatpush.bf16.msra.mxu3 %v2117_v3 }
 0x55f   : > { %v2292_v6 = vpop.f32.mrf.mxu0 }
 0x560   : > { %2205 = vmatpush.bf16.msra.mxu1 %v2179_v5  ;;  %v2322_v45 = vpack.c.bf16 %v2292_v6, %v6043_v60  ;;  %v2499_v5 = vld [vmem:[%s6902_s2] sm:$0xff] }
 0x561   : > { %5114 = vmatmul.msk.bf16.vlgmr.msra.gmra.mxu3 %vm2186_vm4, %v2121_v4  ;;  %v5148_v4 = vld [vmem:[%s6902_s2 + $0x8] sm:$0xff] }
 0x562   : > { %2599 = vmatpush.msrb.mxu3 %v5148_v4  ;;  %v6093_v7 = vadd.f32 %v5148_v4, %v2499_v5 }
 0x564   : > { %2206 = vmatpush.bf16.msra.mxu1 %v2178_v49 }
 0x567   : > { %5110 = vmatmul.msk.bf16.vlgmr.msra.gmra.mxu1 %vm2186_vm4, %v2182_v10  ;;  %v2295_v11 = vpop.f32.mrf.mxu0 }
 0x568   : > { %2398 = vmatpush.msrb.mxu1 %v6012_v56  ;;  %v2113_v56 = vld [vmem:[%s6901_s1 + $0x20] sm:$0xff]  ;;  %s6910_s1 = sld [smem:[#allocation12_spill]] }
 0x569   : > { %v2123_v25 = vpack.c.bf16 %v2114_v23, %v2113_v56 }
 0x56a   : > { %2539 = vmatpush.msra.mxu1 %v2499_v5 }
 0x56f   : > { %v2298_v17 = vpop.f32.mrf.mxu0 }
 0x570   : > { %v2323_v42 = vpack.c.bf16 %v2298_v17, %v2295_v11 }
 0x571   : > { %5115 = vmatmul.msk.bf16.gmra.mxu3 %vm2186_vm4, %v2122_v15 }
 0x577   : > { %5111 = vmatmul.msk.bf16.gmra.mxu1 %vm2186_vm4, %v2183_v21  ;;  %v2301_v22 = vpop.f32.mrf.mxu0 }
 0x57f   : > { %v2304_v26 = vpop.f32.mrf.mxu0 }
 0x580   : > { %v2324_v9 = vpack.c.bf16 %v2304_v26, %v2301_v22 }
 0x581   : > { %5116 = vmatmul.msk.bf16.gmra.mxu3 %vm2186_vm4, %v2123_v25 }
 0x587   : > { %5112 = vmatmul.msk.bf16.gmra.mxu1 %vm2186_vm4, %v2184_v31  ;;  %v2307_v16 = vpop.f32.mrf.mxu0 }
 0x58f   : > { %v2310_v37 = vpop.f32.mrf.mxu0 }
 0x590   : > { %v2325_v39 = vpack.c.bf16 %v2310_v37, %v2307_v16 }
 0x591   : > { %5117 = vmatmul.msk.bf16.gmra.mxu3 %vm2186_vm4, %v2124_v36 }
 0x592   : > { %2346 = vmatpush.bf16.msrb.mxu2 %v2325_v39  ;;  %v2434_v39 = vpop.permute.xlu2 %2433 }
 0x596   : > { %2347 = vmatpush.bf16.msrb.mxu2 %v2324_v9 }
 0x597   : > { %5113 = vmatmul.msk.bf16.gmra.mxu1 %vm2186_vm4, %v2185_v40 }
 0x59a   : > { %2348 = vmatpush.bf16.msrb.mxu2 %v2323_v42 }
 0x59e   : > { %2349 = vmatpush.bf16.msrb.mxu2 %v2322_v45 }
 0x5a1   : > { %5135 = vmatmul.msk.bf16.vlgmr.msrb.gmra.mxu2 %vm2186_vm4, %v2326_v63 }
 0x5a7   : > { %5139 = vmatmul.msk.f32.vlgmr.msrb.gmra.mxu1 %vm1013_vm2, %v5968_v47 }
 0x5b1   : > { %5136 = vmatmul.msk.bf16.gmra.mxu2 %vm2186_vm4, %v2327_v48 }
 0x5c1   : > { %5137 = vmatmul.msk.bf16.gmra.mxu2 %vm2186_vm4, %v2328_v51 }
 0x5d1   : > { %5138 = vmatmul.msk.bf16.gmra.mxu2 %vm2186_vm4, %v2329_v54 }
 0x5e4   : > { %v2208_v55 = vpop.f32.mrf.mxu1  ;;  %v2249_v3 = vpop.f32.mrf.mxu3 }
 0x5e5   : > { %v2250_v21 = vadd.f32 %v2249_v3, %v2208_v55 }
 0x5ec   : > { %v2210_v60 = vpop.f32.mrf.mxu1  ;;  %v2251_v8 = vpop.f32.mrf.mxu3 }
 0x5ed   : > { %v2252_v23 = vadd.f32 %v2251_v8, %v2210_v60  ;;  %v2444_v60 = vpop.permute.xlu1 %2443 }
 0x5f4   : > { %v2213_v47 = vpop.f32.mrf.mxu1  ;;  %v2254_v13 = vpop.f32.mrf.mxu3 }
 0x5f5   : > { %v2255_v58 = vadd.f32 %v2254_v13, %v2213_v47 }
 0x5fc   : > { %v2215_v62 = vpop.f32.mrf.mxu1  ;;  %v2256_v35 = vpop.f32.mrf.mxu3 }
 0x5fd   : > { %v2257_v48 = vadd.f32 %v2256_v35, %v2215_v62 }
 0x604   : > { %v2218_v0 = vpop.f32.mrf.mxu1  ;;  %v2259_v46 = vpop.f32.mrf.mxu3 }
 0x605   : > { %v2260_v47 = vadd.f32 %v2259_v46, %v2218_v0 }
 0x60c   : > { %v6085_v1 = vpop.f32.mrf.mxu1  ;;  %v2261_v3 = vpop.f32.mrf.mxu3 }
 0x60d   : > { %v2262_v13 = vadd.f32 %v2261_v3, %v6085_v1 }
 0x614   : > { %v6087_v2 = vpop.f32.mrf.mxu1 }
 0x61c   : > { %v6091_v6 = vpop.f32.mrf.mxu1 }
 0x624   : > { %v2351_v49 = vpop.f32.mrf.mxu2  ;;  %v2400_v10 = vpop.f32.mrf.mxu1 }
 0x625   : > { %v2405_v11 = vadd.f32 1e-08, %v2400_v10  ;;  %v2403_v12 = vmax.f32 %v2400_v10, 0.0  ;;  %v2371_v25 = vadd.f32 %v2351_v49, %v2250_v21  ;;  %v2264_v21 = vpop.f32.mrf.mxu3 }
 0x627   : > { %5484 = vrcp.f32 %v2405_v11  ;;  %v6095_v15 = vmin.f32 %v2403_v12, 1.0  ;;  %v2449_v12 = vpop.permute.xlu2 %2448 }
 0x629   : > { %v6099_v56 = vperm.slane %v6095_v15, 0 }
 0x62b   : > { %v2467_v33 = vmul.f32 %v6099_v56, %v2429_v27  ;;  %v2468_v61 = vmul.f32 %v6099_v56, %v2434_v39  ;;  %v2469_v50 = vmul.f32 %v6099_v56, %v2439_v38  ;;  %v2470_v62 = vmul.f32 %v6099_v56, %v2444_v60 }
 0x62c   : > { %v2353_v17 = vpop.f32.mrf.mxu2  ;;  %v2471_v0 = vmul.f32 %v6099_v56, %v2449_v12 }
 0x62d   : > { %v5485_v18 = vpop.eup %5484  ;;  %v2372_v28 = vadd.f32 %v2353_v17, %v2252_v23 }
 0x62e   : > { %v2407_v20 = vmul.f32 3.0, %v5485_v18 }
 0x62f   : > { %v2464_v38 = vpop.permute.xlu2 %2463 }
 0x630   : > { %v2408_v22 = vmul.f32 %v2407_v20, %v6095_v15  ;;  %v2474_v46 = vmul.f32 %v6099_v56, %v2464_v38 }
 0x632   : > { %v6101_v26 = vperm.slane %v2408_v22, 0  ;;  %v5173_v22 = vld [vmem:[%s6902_s2 + $0x10] sm:$0xff] }
 0x633   : > { %2742 = vmatpush.msrb.mxu1 %v5173_v22 }
 0x634   : > { %v2356_v31 = vpop.f32.mrf.mxu2  ;;  %v2410_v16 = vmul.f32 %v6101_v26, %v2371_v25  ;;  %v2411_v36 = vmul.f32 %v6101_v26, %v2372_v28  ;;  %v6136_v25 = vadd.f32 %v5173_v22, %v6093_v7  ;;  %v2454_v28 = vpop.permute.xlu0 %2453 }
 0x635   : > { %v2373_v42 = vadd.f32 %v2356_v31, %v2255_v58  ;;  %v2265_v31 = vadd.f32 %v2264_v21, %v6087_v2  ;;  %v2459_v58 = vpop.permute.xlu1 %2458 }
 0x636   : > { %v2475_v37 = vadd.f32 %v2467_v33, %v2410_v16  ;;  %v2476_v9 = vadd.f32 %v2468_v61, %v2411_v36  ;;  %v2472_v16 = vmul.f32 %v6099_v56, %v2454_v28  ;;  %v2473_v2 = vmul.f32 %v6099_v56, %v2459_v58  ;;  %v5158_v28 = vld [vmem:[%s6903_s7 + $0x48] sm:$0xff]  ;;  %v5160_v58 = vld [vmem:[%s6903_s7 + $0x58] sm:$0xff] }
 0x637   : > { %v2412_v63 = vmul.f32 %v6101_v26, %v2373_v42 }
 0x638   : > { %v2483_v40 = vmax.f32 %v2475_v37, 0.0  ;;  %v2484_v45 = vmax.f32 %v2476_v9, 0.0  ;;  %v2266_v37 = vpop.f32.mrf.mxu3 }
 0x639   : > { %v2477_v32 = vadd.f32 %v2469_v50, %v2412_v63 }
 0x63a   : > { %v6108_v44 = vmul.f32 %v2483_v40, %v6099_v56  ;;  %v6117_v52 = vmul.f32 %v2484_v45, %v6099_v56  ;;  %v2267_v40 = vadd.f32 %v2266_v37, %v6091_v6 }
 0x63b   : > { %v2485_v54 = vmax.f32 %v2477_v32, 0.0 }
 0x63c   : > { %v2358_v24 = vpop.f32.mrf.mxu2  ;;  %5140 = vmatmul.msk.f32.vlgmr.msra.gmra.mxu1 %vm1013_vm2, %v6108_v44  ;;  %5149 = vmatmul.msk.f32.vlgmr.msrb.gmra.mxu3 %vm1013_vm2, %v6108_v44 }
 0x63d   : > { %v2374_v51 = vadd.f32 %v2358_v24, %v2257_v48  ;;  %v2493_v8 = vmul.f32 %v2485_v54, %v6099_v56 }
 0x63f   : > { %v2413_v55 = vmul.f32 %v6101_v26, %v2374_v51 }
 0x641   : > { %v2478_v4 = vadd.f32 %v2470_v62, %v2413_v55 }
 0x643   : > { %v2486_v10 = vmax.f32 %v2478_v4, 0.0 }
 0x644   : > { %v2361_v53 = vpop.f32.mrf.mxu2  ;;  %5141 = vmatmul.msk.f32.gmra.mxu1 %vm1013_vm2, %v6117_v52  ;;  %5150 = vmatmul.msk.f32.gmra.mxu3 %vm1013_vm2, %v6117_v52 }
 0x645   : > { %v2375_v5 = vadd.f32 %v2361_v53, %v2260_v47  ;;  %v2494_v20 = vmul.f32 %v2486_v10, %v6099_v56 }
 0x647   : > { %v2414_v11 = vmul.f32 %v6101_v26, %v2375_v5 }
 0x649   : > { %v2479_v17 = vadd.f32 %v2471_v0, %v2414_v11 }
 0x64b   : > { %v2487_v27 = vmax.f32 %v2479_v17, 0.0 }
 0x64c   : > { %v2363_v49 = vpop.f32.mrf.mxu2  ;;  %5142 = vmatmul.msk.f32.gmra.mxu1 %vm1013_vm2, %v2493_v8  ;;  %5151 = vmatmul.msk.f32.gmra.mxu3 %vm1013_vm2, %v2493_v8 }
 0x64d   : > { %v2376_v18 = vadd.f32 %v2363_v49, %v2262_v13  ;;  %v2495_v36 = vmul.f32 %v2487_v27, %v6099_v56 }
 0x64f   : > { %v2415_v1 = vmul.f32 %v6101_v26, %v2376_v18  ;;  %v2565_v18 = vld [vmem:[%s6903_s7] sm:$0xff] }
 0x651   : > { %v2480_v33 = vadd.f32 %v2472_v16, %v2415_v1  ;;  %v5157_v1 = vld [vmem:[%s6903_s7 + $0x40] sm:$0xff] }
 0x652   : > { %v2638_v16 = vpack.c.bf16 %v5158_v28, %v5157_v1 }
 0x653   : > { %v2488_v39 = vmax.f32 %v2480_v33, 0.0 }
 0x654   : > { %5143 = vmatmul.msk.f32.gmra.mxu1 %vm1013_vm2, %v2494_v20  ;;  %5152 = vmatmul.msk.f32.gmra.mxu3 %vm1013_vm2, %v2494_v20  ;;  %v2366_v23 = vpop.f32.mrf.mxu2 }
 0x655   : > { %v2377_v35 = vadd.f32 %v2366_v23, %v2265_v31  ;;  %v2496_v24 = vmul.f32 %v2488_v39, %v6099_v56 }
 0x657   : > { %v2416_v7 = vmul.f32 %v6101_v26, %v2377_v35  ;;  %v2567_v35 = vld [vmem:[%s6903_s7 + $0x10] sm:$0xff] }
 0x659   : > { %v2481_v9 = vadd.f32 %v2473_v2, %v2416_v7  ;;  %v5159_v7 = vld [vmem:[%s6903_s7 + $0x50] sm:$0xff]  ;;  %v2570_v2 = vld [vmem:[%s6903_s7 + $0x28] sm:$0xff] }
 0x65b   : > { %v2489_v45 = vmax.f32 %v2481_v9, 0.0 }
 0x65c   : > { %5144 = vmatmul.msk.f32.gmra.mxu1 %vm1013_vm2, %v2495_v36  ;;  %5153 = vmatmul.msk.f32.gmra.mxu3 %vm1013_vm2, %v2495_v36  ;;  %v2368_v61 = vpop.f32.mrf.mxu2 }
 0x65d   : > { %v2378_v42 = vadd.f32 %v2368_v61, %v2267_v40  ;;  %v2497_v50 = vmul.f32 %v2489_v45, %v6099_v56  ;;  %v2639_v61 = vpack.c.bf16 %v5160_v58, %v5159_v7  ;;  %v5162_v45 = vld [vmem:[%s6903_s7 + $0x68] sm:$0xff] }
 0x65f   : > { %v2417_v63 = vmul.f32 %v6101_v26, %v2378_v42 }
 0x661   : > { %v2482_v48 = vadd.f32 %v2474_v46, %v2417_v63  ;;  %v2571_v46 = vld [vmem:[%s6903_s7 + $0x30] sm:$0xff] }
 0x663   : > { %v2490_v6 = vmax.f32 %v2482_v48, 0.0  ;;  %v2572_v48 = vld [vmem:[%s6903_s7 + $0x38] sm:$0xff] }
 0x664   : > { %5145 = vmatmul.msk.f32.gmra.mxu1 %vm1013_vm2, %v2496_v24  ;;  %5154 = vmatmul.msk.f32.gmra.mxu3 %vm1013_vm2, %v2496_v24 }
 0x665   : > { %v2498_v32 = vmul.f32 %v2490_v6, %v6099_v56 }
 0x66c   : > { %5146 = vmatmul.msk.f32.gmra.mxu1 %vm1013_vm2, %v2497_v50  ;;  %5155 = vmatmul.msk.f32.gmra.mxu3 %vm1013_vm2, %v2497_v50 }
 0x674   : > { %5147 = vmatmul.msk.f32.gmra.mxu1 %vm1013_vm2, %v2498_v32  ;;  %5156 = vmatmul.msk.f32.gmra.mxu3 %vm1013_vm2, %v2498_v32 }
 0x67c   : > { %5174 = vmatmul.msk.f32.vlgmr.msrb.gmra.mxu1 %vm1013_vm2, %v6108_v44 }
 0x684   : > { %5175 = vmatmul.msk.f32.gmra.mxu1 %vm1013_vm2, %v6117_v52 }
 0x68c   : > { %5176 = vmatmul.msk.f32.gmra.mxu1 %vm1013_vm2, %v2493_v8 }
 0x694   : > { %5177 = vmatmul.msk.f32.gmra.mxu1 %vm1013_vm2, %v2494_v20  ;;  %v2566_v20 = vld [vmem:[%s6903_s7 + $0x8] sm:$0xff] }
 0x695   : > { %v2577_v22 = vpack.c.bf16 %v2566_v20, %v2565_v18 }
 0x69c   : > { %5178 = vmatmul.msk.f32.gmra.mxu1 %vm1013_vm2, %v2495_v36  ;;  %v2568_v36 = vld [vmem:[%s6903_s7 + $0x18] sm:$0xff] }
 0x69d   : > { %v2578_v37 = vpack.c.bf16 %v2568_v36, %v2567_v35 }
 0x6a4   : > { %5179 = vmatmul.msk.f32.gmra.mxu1 %vm1013_vm2, %v2496_v24  ;;  %v5161_v24 = vld [vmem:[%s6903_s7 + $0x60] sm:$0xff] }
 0x6a5   : > { %v2640_v63 = vpack.c.bf16 %v5162_v45, %v5161_v24  ;;  %v2884_v24 = vpop.permute.xlu0 %2883 }
 0x6ac   : > { %5180 = vmatmul.msk.f32.gmra.mxu1 %vm1013_vm2, %v2497_v50  ;;  %v2580_v50 = vpack.c.bf16 %v2572_v48, %v2571_v46 }
 0x6b4   : > { %5181 = vmatmul.msk.f32.gmra.mxu1 %vm1013_vm2, %v2498_v32 }
 0x6b9   : > { %v2541_v56 = vpop.f32.mrf.mxu1 }
 0x6bf   : > { %v2601_v26 = vpop.f32.mrf.mxu3 }
 0x6c1   : > { %v2544_v51 = vpop.f32.mrf.mxu1 }
 0x6c2   : > { %v2573_v21 = vpack.c.bf16 %v2544_v51, %v2541_v56  ;;  %v5163_v56 = vld [vmem:[%s6903_s7 + $0x70] sm:$0xff] }
 0x6c7   : > { %v2604_v53 = vpop.f32.mrf.mxu3 }
 0x6c8   : > { %v2634_v31 = vpack.c.bf16 %v2604_v53, %v2601_v26  ;;  %v5164_v26 = vld [vmem:[%s6903_s7 + $0x78] sm:$0xff] }
 0x6c9   : > { %v2547_v44 = vpop.f32.mrf.mxu1  ;;  %v2641_v51 = vpack.c.bf16 %v5164_v26, %v5163_v56 }
 0x6cf   : > { %v2607_v54 = vpop.f32.mrf.mxu3 }
 0x6d1   : > { %v2550_v55 = vpop.f32.mrf.mxu1 }
 0x6d2   : > { %v2574_v0 = vpack.c.bf16 %v2550_v55, %v2547_v44  ;;  %v5183_v55 = vld [vmem:[%s6903_s7 + $0x88] sm:$0xff] }
 0x6d7   : > { %v2610_v52 = vpop.f32.mrf.mxu3 }
 0x6d8   : > { %v2635_v23 = vpack.c.bf16 %v2610_v52, %v2607_v54  ;;  %v5182_v54 = vld [vmem:[%s6903_s7 + $0x80] sm:$0xff] }
 0x6d9   : > { %v2553_v60 = vpop.f32.mrf.mxu1 }
 0x6df   : > { %v2613_v47 = vpop.f32.mrf.mxu3 }
 0x6e1   : > { %v2556_v62 = vpop.f32.mrf.mxu1 }
 0x6e2   : > { %v2575_v10 = vpack.c.bf16 %v2556_v62, %v2553_v60  ;;  %v2781_v60 = vpack.c.bf16 %v5183_v55, %v5182_v54  ;;  %v5185_v62 = vld [vmem:[%s6903_s7 + $0x98] sm:$0xff] }
 0x6e7   : > { %v2616_v3 = vpop.f32.mrf.mxu3 }
 0x6e8   : > { %v2636_v17 = vpack.c.bf16 %v2616_v3, %v2613_v47  ;;  %v5184_v47 = vld [vmem:[%s6903_s7 + $0x90] sm:$0xff] }
 0x6e9   : > { %v2559_v4 = vpop.f32.mrf.mxu1  ;;  %v2782_v3 = vpack.c.bf16 %v5185_v62, %v5184_v47  ;;  %v2894_v47 = vpop.permute.xlu2 %2893 }
 0x6ef   : > { %v2619_v5 = vpop.f32.mrf.mxu3 }
 0x6f1   : > { %v2562_v8 = vpop.f32.mrf.mxu1 }
 0x6f2   : > { %v2576_v49 = vpack.c.bf16 %v2562_v8, %v2559_v4  ;;  %v5186_v4 = vld [vmem:[%s6903_s7 + $0xa0] sm:$0xff] }
 0x6f4   : > { %2699 = vmatpush.bf16.msra.mxu2 %v2576_v49  ;;  %v5188_v49 = vld [vmem:[%s6903_s7 + $0xb0] sm:$0xff] }
 0x6f7   : > { %v2622_v11 = vpop.f32.mrf.mxu3 }
 0x6f8   : > { %v2637_v12 = vpack.c.bf16 %v2622_v11, %v2619_v5  ;;  %2700 = vmatpush.bf16.msra.mxu2 %v2575_v10  ;;  %v5187_v5 = vld [vmem:[%s6903_s7 + $0xa8] sm:$0xff]  ;;  %v5189_v10 = vld [vmem:[%s6903_s7 + $0xb8] sm:$0xff] }
 0x6f9   : > { %v2744_v13 = vpop.f32.mrf.mxu1  ;;  %v2783_v8 = vpack.c.bf16 %v5187_v5, %v5186_v4  ;;  %v2784_v11 = vpack.c.bf16 %v5189_v10, %v5188_v49 }
 0x6fa   : > { %2658 = vmatpush.bf16.msrb.mxu0 %v2637_v12 }
 0x6fc   : > { %2701 = vmatpush.bf16.msra.mxu2 %v2574_v0 }
 0x6fe   : > { %2659 = vmatpush.bf16.msrb.mxu0 %v2636_v17 }
 0x700   : > { %2702 = vmatpush.bf16.msra.mxu2 %v2573_v21 }
 0x701   : > { %v2747_v27 = vpop.f32.mrf.mxu1 }
 0x702   : > { %2660 = vmatpush.bf16.msrb.mxu0 %v2635_v23  ;;  %v2777_v52 = vpack.c.bf16 %v2747_v27, %v2744_v13  ;;  %v5203_v23 = vld [vmem:[%s6904_s10 + $0x8] sm:$0xff] }
 0x703   : > { %5169 = vmatmul.msk.bf16.vlgmr.msra.gmra.mxu2 %vm2186_vm4, %v2577_v22  ;;  %v2954_v22 = vld [vmem:[%s6904_s10] sm:$0xff] }
 0x704   : > { %2994 = vmatpush.msrb.mxu2 %v2954_v22  ;;  %v6215_v1 = vadd.f32 %v5203_v23, %v2954_v22 }
 0x706   : > { %2661 = vmatpush.bf16.msrb.mxu0 %v2634_v31 }
 0x709   : > { %5165 = vmatmul.msk.bf16.vlgmr.msrb.gmra.mxu0 %vm2186_vm4, %v2638_v16  ;;  %v2750_v33 = vpop.f32.mrf.mxu1 }
 0x70a   : > { %2853 = vmatpush.msra.mxu0 %v6136_v25  ;;  %v2569_v25 = vld [vmem:[%s6903_s7 + $0x20] sm:$0xff] }
 0x70b   : > { %v2579_v9 = vpack.c.bf16 %v2570_v2, %v2569_v25 }
 0x70c   : > { %3054 = vmatpush.msrb.mxu0 %v5203_v23 }
 0x711   : > { %v2753_v39 = vpop.f32.mrf.mxu1 }
 0x712   : > { %v2778_v44 = vpack.c.bf16 %v2753_v39, %v2750_v33 }
 0x713   : > { %5170 = vmatmul.msk.bf16.gmra.mxu2 %vm2186_vm4, %v2578_v37 }
 0x719   : > { %5166 = vmatmul.msk.bf16.gmra.mxu0 %vm2186_vm4, %v2639_v61  ;;  %v2756_v40 = vpop.f32.mrf.mxu1 }
 0x721   : > { %v2759_v42 = vpop.f32.mrf.mxu1 }
 0x722   : > { %v2779_v53 = vpack.c.bf16 %v2759_v42, %v2756_v40 }
 0x723   : > { %5171 = vmatmul.msk.bf16.gmra.mxu2 %vm2186_vm4, %v2579_v9 }
 0x729   : > { %5167 = vmatmul.msk.bf16.gmra.mxu0 %vm2186_vm4, %v2640_v63  ;;  %v2762_v38 = vpop.f32.mrf.mxu1 }
 0x731   : > { %v2765_v6 = vpop.f32.mrf.mxu1 }
 0x732   : > { %v2780_v32 = vpack.c.bf16 %v2765_v6, %v2762_v38 }
 0x733   : > { %5172 = vmatmul.msk.bf16.gmra.mxu2 %vm2186_vm4, %v2580_v50 }
 0x734   : > { %2801 = vmatpush.bf16.msra.mxu3 %v2780_v32  ;;  %v2889_v32 = vpop.permute.xlu1 %2888 }
 0x738   : > { %2802 = vmatpush.bf16.msra.mxu3 %v2779_v53 }
 0x739   : > { %5168 = vmatmul.msk.bf16.gmra.mxu0 %vm2186_vm4, %v2641_v51 }
 0x73c   : > { %2803 = vmatpush.bf16.msra.mxu3 %v2778_v44 }
 0x740   : > { %2804 = vmatpush.bf16.msra.mxu3 %v2777_v52 }
 0x743   : > { %5190 = vmatmul.msk.bf16.vlgmr.msra.gmra.mxu3 %vm2186_vm4, %v2781_v60 }
 0x749   : > { %5194 = vmatmul.msk.f32.vlgmr.msra.gmra.mxu0 %vm1013_vm2, %v6095_v15 }
 0x753   : > { %5191 = vmatmul.msk.bf16.gmra.mxu3 %vm2186_vm4, %v2782_v3 }
 0x763   : > { %5192 = vmatmul.msk.bf16.gmra.mxu3 %vm2186_vm4, %v2783_v8 }
 0x773   : > { %5193 = vmatmul.msk.bf16.gmra.mxu3 %vm2186_vm4, %v2784_v11 }
 0x786   : > { %v2663_v12 = vpop.f32.mrf.mxu0  ;;  %v2704_v21 = vpop.f32.mrf.mxu2 }
 0x787   : > { %v2705_v61 = vadd.f32 %v2704_v21, %v2663_v12 }
 0x78e   : > { %v2665_v13 = vpop.f32.mrf.mxu0  ;;  %v2706_v28 = vpop.f32.mrf.mxu2 }
 0x78f   : > { %v2707_v2 = vadd.f32 %v2706_v28, %v2665_v13  ;;  %v2899_v13 = vpop.permute.xlu0 %2898 }
 0x796   : > { %v2668_v15 = vpop.f32.mrf.mxu0  ;;  %v2709_v36 = vpop.f32.mrf.mxu2 }
 0x797   : > { %v2710_v56 = vadd.f32 %v2709_v36, %v2668_v15 }
 0x79e   : > { %v2670_v0 = vpop.f32.mrf.mxu0  ;;  %v2711_v48 = vpop.f32.mrf.mxu2 }
 0x79f   : > { %v2712_v3 = vadd.f32 %v2711_v48, %v2670_v0 }
 0x7a6   : > { %v2673_v17 = vpop.f32.mrf.mxu0  ;;  %v2714_v62 = vpop.f32.mrf.mxu2 }
 0x7a7   : > { %v2715_v15 = vadd.f32 %v2714_v62, %v2673_v17 }
 0x7ae   : > { %v6207_v18 = vpop.f32.mrf.mxu0  ;;  %v2716_v21 = vpop.f32.mrf.mxu2 }
 0x7af   : > { %v2717_v36 = vadd.f32 %v2716_v21, %v6207_v18 }
 0x7b6   : > { %v6209_v20 = vpop.f32.mrf.mxu0 }
 0x7be   : > { %v6213_v27 = vpop.f32.mrf.mxu0 }
 0x7c6   : > { %v2806_v31 = vpop.f32.mrf.mxu3  ;;  %v2855_v16 = vpop.f32.mrf.mxu0 }
 0x7c7   : > { %v2860_v33 = vadd.f32 1e-08, %v2855_v16  ;;  %v2858_v35 = vmax.f32 %v2855_v16, 0.0  ;;  %v2826_v9 = vadd.f32 %v2806_v31, %v2705_v61  ;;  %v2719_v61 = vpop.f32.mrf.mxu2 }
 0x7c9   : > { %5486 = vrcp.f32 %v2860_v33  ;;  %v6217_v37 = vmin.f32 %v2858_v35, 1.0  ;;  %v2904_v35 = vpop.permute.xlu1 %2903 }
 0x7cb   : > { %v6221_v25 = vperm.slane %v6217_v37, 0 }
 0x7cd   : > { %v2922_v46 = vmul.f32 %v6221_v25, %v2884_v24  ;;  %v2923_v26 = vmul.f32 %v6221_v25, %v2889_v32  ;;  %v2924_v4 = vmul.f32 %v6221_v25, %v2894_v47  ;;  %v2925_v0 = vmul.f32 %v6221_v25, %v2899_v13 }
 0x7ce   : > { %v2808_v39 = vpop.f32.mrf.mxu3  ;;  %v2926_v17 = vmul.f32 %v6221_v25, %v2904_v35 }
 0x7cf   : > { %v5487_v7 = vpop.eup %5486  ;;  %v2827_v45 = vadd.f32 %v2808_v39, %v2707_v2 }
 0x7d0   : > { %v2862_v58 = vmul.f32 3.0, %v5487_v7 }
 0x7d1   : > { %v2919_v47 = vpop.permute.xlu1 %2918 }
 0x7d2   : > { %v2863_v40 = vmul.f32 %v2862_v58, %v6217_v37  ;;  %v2929_v62 = vmul.f32 %v6221_v25, %v2919_v47  ;;  %v5218_v47 = vld [vmem:[%s6905_s11 + $0x70] sm:$0xff] }
 0x7d4   : > { %v6223_v42 = vperm.slane %v2863_v40, 0  ;;  %v5228_v40 = vld [vmem:[%s6904_s10 + $0x10] sm:$0xff] }
 0x7d5   : > { %3197 = vmatpush.msra.mxu2 %v5228_v40 }
 0x7d6   : > { %v2811_v63 = vpop.f32.mrf.mxu3  ;;  %v2865_v38 = vmul.f32 %v6223_v42, %v2826_v9  ;;  %v2866_v50 = vmul.f32 %v6223_v42, %v2827_v45  ;;  %v6258_v9 = vadd.f32 %v5228_v40, %v6215_v1  ;;  %v2909_v45 = vpop.permute.xlu2 %2908 }
 0x7d7   : > { %v2828_v44 = vadd.f32 %v2811_v63, %v2710_v56  ;;  %v2720_v63 = vadd.f32 %v2719_v61, %v6209_v20  ;;  %v2914_v56 = vpop.permute.xlu0 %2913 }
 0x7d8   : > { %v2930_v6 = vadd.f32 %v2922_v46, %v2865_v38  ;;  %v2931_v53 = vadd.f32 %v2923_v26, %v2866_v50  ;;  %v2927_v38 = vmul.f32 %v6221_v25, %v2909_v45  ;;  %v2928_v20 = vmul.f32 %v6221_v25, %v2914_v56 }
 0x7d9   : > { %v2867_v60 = vmul.f32 %v6223_v42, %v2828_v44 }
 0x7da   : > { %v2938_v51 = vmax.f32 %v2930_v6, 0.0  ;;  %v2939_v52 = vmax.f32 %v2931_v53, 0.0  ;;  %v2721_v6 = vpop.f32.mrf.mxu2 }
 0x7db   : > { %v2932_v5 = vadd.f32 %v2924_v4, %v2867_v60 }
 0x7dc   : > { %v6230_v54 = vmul.f32 %v2938_v51, %v6221_v25  ;;  %v6239_v49 = vmul.f32 %v2939_v52, %v6221_v25  ;;  %v2722_v51 = vadd.f32 %v2721_v6, %v6213_v27 }
 0x7dd   : > { %v2940_v11 = vmax.f32 %v2932_v5, 0.0 }
 0x7de   : > { %v2813_v55 = vpop.f32.mrf.mxu3  ;;  %5195 = vmatmul.msk.f32.vlgmr.msrb.gmra.mxu2 %vm1013_vm2, %v6230_v54  ;;  %5204 = vmatmul.msk.f32.vlgmr.msrb.gmra.mxu0 %vm1013_vm2, %v6230_v54 }
 0x7df   : > { %v2829_v8 = vadd.f32 %v2813_v55, %v2712_v3  ;;  %v2948_v22 = vmul.f32 %v2940_v11, %v6221_v25 }
 0x7e1   : > { %v2868_v12 = vmul.f32 %v6223_v42, %v2829_v8 }
 0x7e3   : > { %v2933_v23 = vadd.f32 %v2925_v0, %v2868_v12 }
 0x7e5   : > { %v2941_v16 = vmax.f32 %v2933_v23, 0.0 }
 0x7e6   : > { %v2816_v10 = vpop.f32.mrf.mxu3  ;;  %5196 = vmatmul.msk.f32.gmra.mxu2 %vm1013_vm2, %v6239_v49  ;;  %5205 = vmatmul.msk.f32.gmra.mxu0 %vm1013_vm2, %v6239_v49 }
 0x7e7   : > { %v2830_v28 = vadd.f32 %v2816_v10, %v2715_v15  ;;  %v2949_v58 = vmul.f32 %v2941_v16, %v6221_v25 }
 0x7e9   : > { %v2869_v33 = vmul.f32 %v6223_v42, %v2830_v28 }
 0x7eb   : > { %v2934_v39 = vadd.f32 %v2926_v17, %v2869_v33 }
 0x7ed   : > { %v2942_v24 = vmax.f32 %v2934_v39, 0.0  ;;  %v5212_v39 = vld [vmem:[%s6905_s11 + $0x40] sm:$0xff] }
 0x7ee   : > { %v2818_v31 = vpop.f32.mrf.mxu3  ;;  %5197 = vmatmul.msk.f32.gmra.mxu2 %vm1013_vm2, %v2948_v22  ;;  %5206 = vmatmul.msk.f32.gmra.mxu0 %vm1013_vm2, %v2948_v22 }
 0x7ef   : > { %v2831_v7 = vadd.f32 %v2818_v31, %v2717_v36  ;;  %v2950_v46 = vmul.f32 %v2942_v24, %v6221_v25  ;;  %v3020_v24 = vld [vmem:[%s6905_s11] sm:$0xff] }
 0x7f1   : > { %v2870_v18 = vmul.f32 %v6223_v42, %v2831_v7  ;;  %v5213_v7 = vld [vmem:[%s6905_s11 + $0x48] sm:$0xff] }
 0x7f2   : > { %v3093_v40 = vpack.c.bf16 %v5213_v7, %v5212_v39 }
 0x7f3   : > { %v2935_v48 = vadd.f32 %v2927_v38, %v2870_v18  ;;  %v3021_v18 = vld [vmem:[%s6905_s11 + $0x8] sm:$0xff] }
 0x7f5   : > { %v2943_v32 = vmax.f32 %v2935_v48, 0.0  ;;  %v5215_v48 = vld [vmem:[%s6905_s11 + $0x58] sm:$0xff] }
 0x7f6   : > { %5198 = vmatmul.msk.f32.gmra.mxu2 %vm1013_vm2, %v2949_v58  ;;  %5207 = vmatmul.msk.f32.gmra.mxu0 %vm1013_vm2, %v2949_v58  ;;  %v2821_v2 = vpop.f32.mrf.mxu3 }
 0x7f7   : > { %v2832_v50 = vadd.f32 %v2821_v2, %v2720_v63  ;;  %v2951_v55 = vmul.f32 %v2943_v32, %v6221_v25  ;;  %v3032_v63 = vpack.c.bf16 %v3021_v18, %v3020_v24  ;;  %v3023_v32 = vld [vmem:[%s6905_s11 + $0x18] sm:$0xff] }
 0x7f9   : > { %v2871_v1 = vmul.f32 %v6223_v42, %v2832_v50 }
 0x7fb   : > { %v2936_v53 = vadd.f32 %v2928_v20, %v2871_v1 }
 0x7fd   : > { %v2944_v52 = vmax.f32 %v2936_v53, 0.0 }
 0x7fe   : > { %5199 = vmatmul.msk.f32.gmra.mxu2 %vm1013_vm2, %v2950_v46  ;;  %5208 = vmatmul.msk.f32.gmra.mxu0 %vm1013_vm2, %v2950_v46  ;;  %v2823_v26 = vpop.f32.mrf.mxu3 }
 0x7ff   : > { %v2833_v44 = vadd.f32 %v2823_v26, %v2722_v51  ;;  %v2952_v3 = vmul.f32 %v2944_v52, %v6221_v25  ;;  %v5216_v26 = vld [vmem:[%s6905_s11 + $0x60] sm:$0xff]  ;;  %v5217_v51 = vld [vmem:[%s6905_s11 + $0x68] sm:$0xff] }
 0x800   : > { %v3095_v53 = vpack.c.bf16 %v5217_v51, %v5216_v26 }
 0x801   : > { %v2872_v60 = vmul.f32 %v6223_v42, %v2833_v44  ;;  %v3024_v44 = vld [vmem:[%s6905_s11 + $0x20] sm:$0xff] }
 0x803   : > { %v2937_v4 = vadd.f32 %v2929_v62, %v2872_v60  ;;  %v5219_v62 = vld [vmem:[%s6905_s11 + $0x78] sm:$0xff] }
 0x805   : > { %v2945_v27 = vmax.f32 %v2937_v4, 0.0  ;;  %v3096_v4 = vpack.c.bf16 %v5219_v62, %v5218_v47 }
 0x806   : > { %5200 = vmatmul.msk.f32.gmra.mxu2 %vm1013_vm2, %v2951_v55  ;;  %5209 = vmatmul.msk.f32.gmra.mxu0 %vm1013_vm2, %v2951_v55 }
 0x807   : > { %v2953_v5 = vmul.f32 %v2945_v27, %v6221_v25  ;;  %v3026_v27 = vld [vmem:[%s6905_s11 + $0x30] sm:$0xff] }
 0x80e   : > { %5201 = vmatmul.msk.f32.gmra.mxu2 %vm1013_vm2, %v2952_v3  ;;  %5210 = vmatmul.msk.f32.gmra.mxu0 %vm1013_vm2, %v2952_v3 }
 0x816   : > { %5202 = vmatmul.msk.f32.gmra.mxu2 %vm1013_vm2, %v2953_v5  ;;  %5211 = vmatmul.msk.f32.gmra.mxu0 %vm1013_vm2, %v2953_v5 }
 0x81e   : > { %5229 = vmatmul.msk.f32.vlgmr.msra.gmra.mxu2 %vm1013_vm2, %v6230_v54 }
 0x826   : > { %5230 = vmatmul.msk.f32.gmra.mxu2 %vm1013_vm2, %v6239_v49 }
 0x82e   : > { %5231 = vmatmul.msk.f32.gmra.mxu2 %vm1013_vm2, %v2948_v22 }
 0x836   : > { %5232 = vmatmul.msk.f32.gmra.mxu2 %vm1013_vm2, %v2949_v58 }
 0x83e   : > { %5233 = vmatmul.msk.f32.gmra.mxu2 %vm1013_vm2, %v2950_v46  ;;  %v5214_v46 = vld [vmem:[%s6905_s11 + $0x50] sm:$0xff] }
 0x83f   : > { %v3094_v6 = vpack.c.bf16 %v5215_v48, %v5214_v46 }
 0x846   : > { %5234 = vmatmul.msk.f32.gmra.mxu2 %vm1013_vm2, %v2951_v55  ;;  %v3025_v55 = vld [vmem:[%s6905_s11 + $0x28] sm:$0xff] }
 0x847   : > { %v3034_v52 = vpack.c.bf16 %v3025_v55, %v3024_v44  ;;  %v3339_v44 = vpop.permute.xlu2 %3338 }
 0x84e   : > { %5235 = vmatmul.msk.f32.gmra.mxu2 %vm1013_vm2, %v2952_v3 }
 0x856   : > { %5236 = vmatmul.msk.f32.gmra.mxu2 %vm1013_vm2, %v2953_v5  ;;  %v3027_v5 = vld [vmem:[%s6905_s11 + $0x38] sm:$0xff] }
 0x85b   : > { %v3056_v25 = vpop.f32.mrf.mxu0 }
 0x861   : > { %v2996_v42 = vpop.f32.mrf.mxu2 }
 0x863   : > { %v3059_v8 = vpop.f32.mrf.mxu0 }
 0x864   : > { %v3089_v58 = vpack.c.bf16 %v3059_v8, %v3056_v25  ;;  %v3035_v25 = vpack.c.bf16 %v3027_v5, %v3026_v27 }
 0x869   : > { %v2999_v10 = vpop.f32.mrf.mxu2 }
 0x86a   : > { %v3028_v45 = vpack.c.bf16 %v2999_v10, %v2996_v42 }
 0x86b   : > { %v3062_v54 = vpop.f32.mrf.mxu0 }
 0x871   : > { %v3002_v11 = vpop.f32.mrf.mxu2 }
 0x873   : > { %v3065_v12 = vpop.f32.mrf.mxu0 }
 0x874   : > { %v3090_v36 = vpack.c.bf16 %v3065_v12, %v3062_v54  ;;  %v5238_v12 = vld [vmem:[%s6905_s11 + $0x88] sm:$0xff] }
 0x879   : > { %v3005_v49 = vpop.f32.mrf.mxu2 }
 0x87a   : > { %v3029_v2 = vpack.c.bf16 %v3005_v49, %v3002_v11  ;;  %v5237_v11 = vld [vmem:[%s6905_s11 + $0x80] sm:$0xff] }
 0x87b   : > { %v3068_v13 = vpop.f32.mrf.mxu0 }
 0x881   : > { %v3008_v15 = vpop.f32.mrf.mxu2 }
 0x883   : > { %v3071_v0 = vpop.f32.mrf.mxu0 }
 0x884   : > { %v3091_v16 = vpack.c.bf16 %v3071_v0, %v3068_v13  ;;  %v3236_v13 = vpack.c.bf16 %v5238_v12, %v5237_v11  ;;  %v5240_v0 = vld [vmem:[%s6905_s11 + $0x98] sm:$0xff] }
 0x889   : > { %v3011_v21 = vpop.f32.mrf.mxu2 }
 0x88a   : > { %v3030_v17 = vpack.c.bf16 %v3011_v21, %v3008_v15  ;;  %v5239_v15 = vld [vmem:[%s6905_s11 + $0x90] sm:$0xff] }
 0x88b   : > { %v3074_v22 = vpop.f32.mrf.mxu0  ;;  %v3237_v21 = vpack.c.bf16 %v5240_v0, %v5239_v15 }
 0x891   : > { %v3014_v23 = vpop.f32.mrf.mxu2 }
 0x893   : > { %v3077_v28 = vpop.f32.mrf.mxu0 }
 0x894   : > { %v3092_v31 = vpack.c.bf16 %v3077_v28, %v3074_v22  ;;  %v5241_v22 = vld [vmem:[%s6905_s11 + $0xa0] sm:$0xff] }
 0x896   : > { %3113 = vmatpush.bf16.msra.mxu1 %v3092_v31  ;;  %v5243_v31 = vld [vmem:[%s6905_s11 + $0xb0] sm:$0xff] }
 0x899   : > { %v3017_v33 = vpop.f32.mrf.mxu2 }
 0x89a   : > { %v3031_v35 = vpack.c.bf16 %v3017_v33, %v3014_v23  ;;  %3114 = vmatpush.bf16.msra.mxu1 %v3091_v16  ;;  %v5242_v23 = vld [vmem:[%s6905_s11 + $0xa8] sm:$0xff]  ;;  %v5244_v16 = vld [vmem:[%s6905_s11 + $0xb8] sm:$0xff] }
 0x89b   : > { %v3238_v28 = vpack.c.bf16 %v5242_v23, %v5241_v22 }
 0x89c   : > { %3154 = vmatpush.bf16.msrb.mxu3 %v3031_v35 }
 0x89e   : > { %3115 = vmatpush.bf16.msra.mxu1 %v3090_v36 }
 0x8a0   : > { %3155 = vmatpush.bf16.msrb.mxu3 %v3030_v17 }
 0x8a1   : > { %v3199_v61 = vpop.f32.mrf.mxu2 }
 0x8a2   : > { %3116 = vmatpush.bf16.msra.mxu1 %v3089_v58 }
 0x8a4   : > { %3156 = vmatpush.bf16.msrb.mxu3 %v3029_v2  ;;  %v6338_v2 = vld [vmem:[%s6906_s0] sm:$0xff] }
 0x8a5   : > { %5220 = vmatmul.msk.bf16.vlgmr.msra.gmra.mxu1 %vm2186_vm4, %v3093_v40  ;;  %v6334_v40 = vld [vmem:[%s6906_s0 + $0x8] sm:$0xff] }
 0x8a6   : > { %3308 = vmatpush.msrb.mxu1 %v6258_v9  ;;  %v3022_v9 = vld [vmem:[%s6905_s11 + $0x10] sm:$0xff] }
 0x8a7   : > { %v3033_v1 = vpack.c.bf16 %v3023_v32, %v3022_v9 }
 0x8a8   : > { %3157 = vmatpush.bf16.msrb.mxu3 %v3028_v45  ;;  %3449 = vmatpush.msra.mxu1 %v6338_v2 }
 0x8a9   : > { %v3202_v38 = vpop.f32.mrf.mxu2 }
 0x8aa   : > { %v3232_v49 = vpack.c.bf16 %v3202_v38, %v3199_v61 }
 0x8ab   : > { %5224 = vmatmul.msk.bf16.vlgmr.msrb.gmra.mxu3 %vm2186_vm4, %v3032_v63 }
 0x8ac   : > { %3509 = vmatpush.msra.mxu3 %v6334_v40 }
 0x8b1   : > { %v3205_v50 = vpop.f32.mrf.mxu2 }
 0x8b5   : > { %5221 = vmatmul.msk.bf16.gmra.mxu1 %vm2186_vm4, %v3094_v6 }
 0x8b9   : > { %v3208_v56 = vpop.f32.mrf.mxu2 }
 0x8ba   : > { %v3233_v54 = vpack.c.bf16 %v3208_v56, %v3205_v50 }
 0x8bb   : > { %5225 = vmatmul.msk.bf16.gmra.mxu3 %vm2186_vm4, %v3033_v1 }
 0x8c1   : > { %v3211_v20 = vpop.f32.mrf.mxu2 }
 0x8c5   : > { %5222 = vmatmul.msk.bf16.gmra.mxu1 %vm2186_vm4, %v3095_v53 }
 0x8c9   : > { %v3214_v60 = vpop.f32.mrf.mxu2 }
 0x8ca   : > { %v3234_v10 = vpack.c.bf16 %v3214_v60, %v3211_v20 }
 0x8cb   : > { %5226 = vmatmul.msk.bf16.gmra.mxu3 %vm2186_vm4, %v3034_v52 }
 0x8d1   : > { %v3217_v3 = vpop.f32.mrf.mxu2 }
 0x8d5   : > { %5223 = vmatmul.msk.bf16.gmra.mxu1 %vm2186_vm4, %v3096_v4  ;;  %v3344_v4 = vpop.permute.xlu0 %3343 }
 0x8d9   : > { %v3220_v42 = vpop.f32.mrf.mxu2 }
 0x8da   : > { %v3235_v8 = vpack.c.bf16 %v3220_v42, %v3217_v3 }
 0x8db   : > { %5227 = vmatmul.msk.bf16.gmra.mxu3 %vm2186_vm4, %v3035_v25 }
 0x8dc   : > { %3256 = vmatpush.bf16.msra.mxu0 %v3235_v8 }
 0x8e0   : > { %3257 = vmatpush.bf16.msra.mxu0 %v3234_v10 }
 0x8e4   : > { %3258 = vmatpush.bf16.msra.mxu0 %v3233_v54 }
 0x8e5   : > { %5249 = vmatmul.msk.f32.vlgmr.msrb.gmra.mxu1 %vm1013_vm2, %v6217_v37  ;;  %v3239_v37 = vpack.c.bf16 %v5244_v16, %v5243_v31 }
 0x8e8   : > { %3259 = vmatpush.bf16.msra.mxu0 %v3232_v49  ;;  %v3349_v49 = vpop.permute.xlu1 %3348 }
 0x8eb   : > { %5245 = vmatmul.msk.bf16.vlgmr.msra.gmra.mxu0 %vm2186_vm4, %v3236_v13 }
 0x8fb   : > { %5246 = vmatmul.msk.bf16.gmra.mxu0 %vm2186_vm4, %v3237_v21 }
 0x90b   : > { %5247 = vmatmul.msk.bf16.gmra.mxu0 %vm2186_vm4, %v3238_v28 }
 0x91b   : > { %5248 = vmatmul.msk.bf16.gmra.mxu0 %vm2186_vm4, %v3239_v37  ;;  %v3354_v37 = vpop.permute.xlu2 %3353 }
 0x922   : > { %v3118_v33 = vpop.f32.mrf.mxu1 }
 0x92a   : > { %v3120_v35 = vpop.f32.mrf.mxu1 }
 0x92e   : > { %v3159_v61 = vpop.f32.mrf.mxu3 }
 0x92f   : > { %v3160_v32 = vadd.f32 %v3159_v61, %v3118_v33 }
 0x932   : > { %v3123_v36 = vpop.f32.mrf.mxu1 }
 0x936   : > { %v3161_v18 = vpop.f32.mrf.mxu3 }
 0x937   : > { %v3162_v26 = vadd.f32 %v3161_v18, %v3120_v35 }
 0x93a   : > { %v3125_v17 = vpop.f32.mrf.mxu1 }
 0x93e   : > { %v3164_v48 = vpop.f32.mrf.mxu3 }
 0x93f   : > { %v3165_v25 = vadd.f32 %v3164_v48, %v3123_v36 }
 0x942   : > { %v3128_v39 = vpop.f32.mrf.mxu1 }
 0x946   : > { %v3166_v47 = vpop.f32.mrf.mxu3 }
 0x947   : > { %v3167_v0 = vadd.f32 %v3166_v47, %v3125_v17 }
 0x94a   : > { %v6329_v7 = vpop.f32.mrf.mxu1 }
 0x94e   : > { %v3169_v13 = vpop.f32.mrf.mxu3 }
 0x94f   : > { %v3170_v35 = vadd.f32 %v3169_v13, %v3128_v39 }
 0x952   : > { %v6331_v58 = vpop.f32.mrf.mxu1 }
 0x956   : > { %v3171_v36 = vpop.f32.mrf.mxu3 }
 0x957   : > { %v3172_v48 = vadd.f32 %v3171_v36, %v6329_v7 }
 0x95a   : > { %v6340_v24 = vpop.f32.mrf.mxu1 }
 0x962   : > { %v3310_v45 = vpop.f32.mrf.mxu1 }
 0x963   : > { %v3315_v63 = vadd.f32 1e-08, %v3310_v45  ;;  %v3313_v38 = vmax.f32 %v3310_v45, 0.0 }
 0x965   : > { %5488 = vrcp.f32 %v3315_v63  ;;  %v6343_v50 = vmin.f32 %v3313_v38, 1.0 }
 0x967   : > { %v6347_v56 = vperm.slane %v6343_v50, 0 }
 0x968   : > { %v3261_v46 = vpop.f32.mrf.mxu0 }
 0x969   : > { %v3281_v20 = vadd.f32 %v3261_v46, %v3160_v32  ;;  %v3377_v60 = vmul.f32 %v6347_v56, %v3339_v44  ;;  %v3378_v5 = vmul.f32 %v6347_v56, %v3344_v4  ;;  %v3379_v15 = vmul.f32 %v6347_v56, %v3349_v49  ;;  %v3359_v46 = vpop.permute.xlu0 %3358  ;;  %v6394_v44 = vld [vmem:[%s6906_s0 + $0x18] sm:$0xff] }
 0x96a   : > { %v3380_v33 = vmul.f32 %v6347_v56, %v3354_v37  ;;  %v3381_v39 = vmul.f32 %v6347_v56, %v3359_v46 }
 0x96b   : > { %v5489_v6 = vpop.eup %5488 }
 0x96c   : > { %v3317_v9 = vmul.f32 3.0, %v5489_v6  ;;  %v3634_v6 = vadd.f32 %v6334_v40, %v6338_v2  ;;  %v3364_v2 = vpop.permute.xlu1 %3363 }
 0x96e   : > { %v3318_v1 = vmul.f32 %v3317_v9, %v6343_v50 }
 0x970   : > { %v6349_v51 = vperm.slane %v3318_v1, 0  ;;  %v3263_v53 = vpop.f32.mrf.mxu0 }
 0x971   : > { %v3282_v55 = vadd.f32 %v3263_v53, %v3162_v26  ;;  %v5283_v53 = vld [vmem:[%s6906_s0 + $0x10] sm:$0xff]  ;;  %s6909_s0 = sld [smem:[#allocation13_spill]] }
 0x972   : > { %v3320_v52 = vmul.f32 %v6349_v51, %v3281_v20  ;;  %v3174_v20 = vpop.f32.mrf.mxu3  ;;  %3652 = vmatpush.msrb.mxu1 %v5283_v53  ;;  %v3744_v7 = vadd.f32 %v5283_v53, %v3634_v6 }
 0x973   : > { %v3321_v3 = vmul.f32 %v6349_v51, %v3282_v55  ;;  %v3175_v47 = vadd.f32 %v3174_v20, %v6331_v58 }
 0x974   : > { %v3385_v62 = vadd.f32 %v3377_v60, %v3320_v52  ;;  %v3854_v52 = vadd.f32 %v6394_v44, %v3744_v7  ;;  %v3382_v60 = vmul.f32 %v6347_v56, %v3364_v2 }
 0x975   : > { %v3386_v8 = vadd.f32 %v3378_v5, %v3321_v3 }
 0x976   : > { %v3393_v27 = vmax.f32 %v3385_v62, 0.0 }
 0x977   : > { %v3394_v11 = vmax.f32 %v3386_v8, 0.0 }
 0x978   : > { %v6356_v42 = vmul.f32 %v3393_v27, %v6347_v56  ;;  %v3266_v10 = vpop.f32.mrf.mxu0 }
 0x979   : > { %v3283_v54 = vadd.f32 %v3266_v10, %v3165_v25  ;;  %v6365_v23 = vmul.f32 %v3394_v11, %v6347_v56  ;;  %v3369_v10 = vpop.permute.xlu2 %3368 }
 0x97a   : > { %5250 = vmatmul.msk.f32.vlgmr.msra.gmra.mxu1 %vm1013_vm2, %v6356_v42  ;;  %5259 = vmatmul.msk.f32.vlgmr.msra.gmra.mxu3 %vm1013_vm2, %v6356_v42  ;;  %v3176_v5 = vpop.f32.mrf.mxu3  ;;  %v3383_v58 = vmul.f32 %v6347_v56, %v3369_v10  ;;  %v3478_v10 = vld [vmem:[%s6907_s18 + $0x18] sm:$0xff] }
 0x97b   : > { %v3322_v12 = vmul.f32 %v6349_v51, %v3283_v54  ;;  %3873 = vmatpush.msra.mxu1 %v3854_v52  ;;  %v3177_v54 = vadd.f32 %v3176_v5, %v6340_v24 }
 0x97d   : > { %v3387_v21 = vadd.f32 %v3379_v15, %v3322_v12 }
 0x97f   : > { %v3395_v31 = vmax.f32 %v3387_v21, 0.0  ;;  %v3374_v21 = vpop.permute.xlu0 %3373 }
 0x980   : > { %v3268_v22 = vpop.f32.mrf.mxu0 }
 0x981   : > { %v3284_v28 = vadd.f32 %v3268_v22, %v3167_v0  ;;  %v6374_v18 = vmul.f32 %v3395_v31, %v6347_v56  ;;  %v3384_v22 = vmul.f32 %v6347_v56, %v3374_v21 }
 0x982   : > { %5251 = vmatmul.msk.f32.gmra.mxu1 %vm1013_vm2, %v6365_v23  ;;  %5260 = vmatmul.msk.f32.gmra.mxu3 %vm1013_vm2, %v6365_v23 }
 0x983   : > { %v3323_v16 = vmul.f32 %v6349_v51, %v3284_v28 }
 0x985   : > { %v3388_v17 = vadd.f32 %v3380_v33, %v3323_v16 }
 0x987   : > { %v3396_v63 = vmax.f32 %v3388_v17, 0.0 }
 0x988   : > { %v3271_v61 = vpop.f32.mrf.mxu0 }
 0x989   : > { %v3285_v45 = vadd.f32 %v3271_v61, %v3170_v35  ;;  %v6386_v1 = vmul.f32 %v3396_v63, %v6347_v56 }
 0x98a   : > { %5252 = vmatmul.msk.f32.gmra.mxu1 %vm1013_vm2, %v6374_v18  ;;  %5261 = vmatmul.msk.f32.gmra.mxu3 %vm1013_vm2, %v6374_v18 }
 0x98b   : > { %v3324_v38 = vmul.f32 %v6349_v51, %v3285_v45 }
 0x98d   : > { %v3389_v9 = vadd.f32 %v3381_v39, %v3324_v38 }
 0x98f   : > { %v3397_v55 = vmax.f32 %v3389_v9, 0.0 }
 0x990   : > { %v3273_v32 = vpop.f32.mrf.mxu0 }
 0x991   : > { %v3286_v26 = vadd.f32 %v3273_v32, %v3172_v48  ;;  %v6401_v4 = vmul.f32 %v3397_v55, %v6347_v56  ;;  %v3475_v55 = vld [vmem:[%s6907_s18] sm:$0xff] }
 0x992   : > { %5253 = vmatmul.msk.f32.gmra.mxu1 %vm1013_vm2, %v6386_v1  ;;  %5262 = vmatmul.msk.f32.gmra.mxu3 %vm1013_vm2, %v6386_v1 }
 0x993   : > { %v3325_v40 = vmul.f32 %v6349_v51, %v3286_v26 }
 0x995   : > { %v3390_v62 = vadd.f32 %v3382_v60, %v3325_v40  ;;  %v3476_v40 = vld [vmem:[%s6907_s18 + $0x8] sm:$0xff] }
 0x996   : > { %v3487_v52 = vpack.c.bf16 %v3476_v40, %v3475_v55 }
 0x997   : > { %v3398_v25 = vmax.f32 %v3390_v62, 0.0  ;;  %v5267_v62 = vld [vmem:[%s6907_s18 + $0x40] sm:$0xff] }
 0x998   : > { %v3276_v3 = vpop.f32.mrf.mxu0 }
 0x999   : > { %v3287_v27 = vadd.f32 %v3276_v3, %v3175_v47  ;;  %v6411_v49 = vmul.f32 %v3398_v25, %v6347_v56  ;;  %v5268_v3 = vld [vmem:[%s6907_s18 + $0x48] sm:$0xff] }
 0x99a   : > { %5254 = vmatmul.msk.f32.gmra.mxu1 %vm1013_vm2, %v6401_v4  ;;  %5263 = vmatmul.msk.f32.gmra.mxu3 %vm1013_vm2, %v6401_v4  ;;  %v3548_v5 = vpack.c.bf16 %v5268_v3, %v5267_v62 }
 0x99b   : > { %v3326_v8 = vmul.f32 %v6349_v51, %v3287_v27 }
 0x99d   : > { %v3391_v11 = vadd.f32 %v3383_v58, %v3326_v8  ;;  %v3477_v8 = vld [vmem:[%s6907_s18 + $0x10] sm:$0xff] }
 0x99e   : > { %v3488_v58 = vpack.c.bf16 %v3478_v10, %v3477_v8 }
 0x99f   : > { %v3399_v15 = vmax.f32 %v3391_v11, 0.0  ;;  %v5269_v11 = vld [vmem:[%s6907_s18 + $0x50] sm:$0xff] }
 0x9a0   : > { %v3278_v12 = vpop.f32.mrf.mxu0 }
 0x9a1   : > { %v3288_v13 = vadd.f32 %v3278_v12, %v3177_v54  ;;  %v6420_v24 = vmul.f32 %v3399_v15, %v6347_v56  ;;  %v5270_v12 = vld [vmem:[%s6907_s18 + $0x58] sm:$0xff]  ;;  %v3479_v15 = vld [vmem:[%s6907_s18 + $0x20] sm:$0xff] }
 0x9a2   : > { %5255 = vmatmul.msk.f32.gmra.mxu1 %vm1013_vm2, %v6411_v49  ;;  %5264 = vmatmul.msk.f32.gmra.mxu3 %vm1013_vm2, %v6411_v49 }
 0x9a3   : > { %v3327_v0 = vmul.f32 %v6349_v51, %v3288_v13  ;;  %v3549_v13 = vpack.c.bf16 %v5270_v12, %v5269_v11 }
 0x9a5   : > { %v3392_v28 = vadd.f32 %v3384_v22, %v3327_v0  ;;  %v3480_v0 = vld [vmem:[%s6907_s18 + $0x28] sm:$0xff] }
 0x9a6   : > { %v3489_v21 = vpack.c.bf16 %v3480_v0, %v3479_v15 }
 0x9a7   : > { %v3400_v31 = vmax.f32 %v3392_v28, 0.0  ;;  %v5271_v28 = vld [vmem:[%s6907_s18 + $0x60] sm:$0xff] }
 0x9a9   : > { %v6427_v16 = vmul.f32 %v3400_v31, %v6347_v56  ;;  %v5272_v31 = vld [vmem:[%s6907_s18 + $0x68] sm:$0xff] }
 0x9aa   : > { %5256 = vmatmul.msk.f32.gmra.mxu1 %vm1013_vm2, %v6420_v24  ;;  %5265 = vmatmul.msk.f32.gmra.mxu3 %vm1013_vm2, %v6420_v24 }
 0x9b2   : > { %5257 = vmatmul.msk.f32.gmra.mxu1 %vm1013_vm2, %v6427_v16  ;;  %5266 = vmatmul.msk.f32.gmra.mxu3 %vm1013_vm2, %v6427_v16 }
 0x9ba   : > { %5284 = vmatmul.msk.f32.vlgmr.msrb.gmra.mxu1 %vm1013_vm2, %v6356_v42 }
 0x9c2   : > { %5285 = vmatmul.msk.f32.gmra.mxu1 %vm1013_vm2, %v6365_v23 }
 0x9ca   : > { %5286 = vmatmul.msk.f32.gmra.mxu1 %vm1013_vm2, %v6374_v18 }
 0x9d2   : > { %5287 = vmatmul.msk.f32.gmra.mxu1 %vm1013_vm2, %v6386_v1 }
 0x9da   : > { %5288 = vmatmul.msk.f32.gmra.mxu1 %vm1013_vm2, %v6401_v4 }
 0x9e2   : > { %5289 = vmatmul.msk.f32.gmra.mxu1 %vm1013_vm2, %v6411_v49 }
 0x9ea   : > { %5290 = vmatmul.msk.f32.gmra.mxu1 %vm1013_vm2, %v6420_v24 }
 0x9f2   : > { %5291 = vmatmul.msk.f32.gmra.mxu1 %vm1013_vm2, %v6427_v16 }
 0x9f7   : > { %v3451_v56 = vpop.f32.mrf.mxu1 }
 0x9fa   : > { %5325 = vmatmul.msk.f32.vlgmr.msra.gmra.mxu1 %vm1013_vm2, %v6343_v50 }
 0x9fd   : > { %v3511_v51 = vpop.f32.mrf.mxu3 }
 0x9ff   : > { %v3454_v37 = vpop.f32.mrf.mxu1 }
 0xa00   : > { %v3483_v2 = vpack.c.bf16 %v3454_v37, %v3451_v56  ;;  %v6471_v56 = vld [vmem:[%s6908_s22 + $0x8] sm:$0xff]  ;;  %v3550_v37 = vpack.c.bf16 %v5272_v31, %v5271_v28 }
 0xa01   : > { %4073 = vmatpush.msrb.mxu1 %v6471_v56  ;;  %v5314_v28 = vld [vmem:[%s6907_s18 + $0xc8] sm:$0xff] }
 0xa05   : > { %v3514_v33 = vpop.f32.mrf.mxu3 }
 0xa06   : > { %v3544_v27 = vpack.c.bf16 %v3514_v33, %v3511_v51  ;;  %v6476_v51 = vld [vmem:[%s6908_s22] sm:$0xff] }
 0xa07   : > { %v3457_v35 = vpop.f32.mrf.mxu1  ;;  %4074 = vmatpush.msrb.mxu1 %v6476_v51 }
 0xa0d   : > { %v3517_v36 = vpop.f32.mrf.mxu3 }
 0xa0f   : > { %v3460_v17 = vpop.f32.mrf.mxu1 }
 0xa10   : > { %v3484_v53 = vpack.c.bf16 %v3460_v17, %v3457_v35  ;;  %v3481_v35 = vld [vmem:[%s6907_s18 + $0x30] sm:$0xff] }
 0xa15   : > { %v3520_v61 = vpop.f32.mrf.mxu3 }
 0xa16   : > { %v3545_v60 = vpack.c.bf16 %v3520_v61, %v3517_v36  ;;  %v3482_v36 = vld [vmem:[%s6907_s18 + $0x38] sm:$0xff] }
 0xa17   : > { %v3463_v45 = vpop.f32.mrf.mxu1  ;;  %v3490_v17 = vpack.c.bf16 %v3482_v36, %v3481_v35  ;;  %v5316_v35 = vld [vmem:[%s6907_s18 + $0xd8] sm:$0xff] }
 0xa1d   : > { %v3523_v63 = vpop.f32.mrf.mxu3 }
 0xa1f   : > { %v3466_v38 = vpop.f32.mrf.mxu1 }
 0xa20   : > { %v3485_v32 = vpack.c.bf16 %v3466_v38, %v3463_v45  ;;  %v5274_v38 = vld [vmem:[%s6907_s18 + $0x78] sm:$0xff] }
 0xa25   : > { %v3526_v46 = vpop.f32.mrf.mxu3 }
 0xa26   : > { %v3546_v7 = vpack.c.bf16 %v3526_v46, %v3523_v63  ;;  %v5273_v63 = vld [vmem:[%s6907_s18 + $0x70] sm:$0xff] }
 0xa27   : > { %v3469_v39 = vpop.f32.mrf.mxu1  ;;  %v3551_v46 = vpack.c.bf16 %v5274_v38, %v5273_v63  ;;  %v5319_v63 = vld [vmem:[%s6907_s18 + $0xf0] sm:$0xff]  ;;  %v5320_v38 = vld [vmem:[%s6907_s18 + $0xf8] sm:$0xff] }
 0xa2d   : > { %v3529_v48 = vpop.f32.mrf.mxu3 }
 0xa2f   : > { %v3472_v6 = vpop.f32.mrf.mxu1 }
 0xa30   : > { %v3486_v9 = vpack.c.bf16 %v3472_v6, %v3469_v39 }
 0xa32   : > { %3609 = vmatpush.bf16.msrb.mxu0 %v3486_v9 }
 0xa35   : > { %v3532_v50 = vpop.f32.mrf.mxu3 }
 0xa36   : > { %v3547_v26 = vpack.c.bf16 %v3532_v50, %v3529_v48  ;;  %3610 = vmatpush.bf16.msrb.mxu0 %v3485_v32  ;;  %v5292_v50 = vld [vmem:[%s6907_s18 + $0x80] sm:$0xff] }
 0xa37   : > { %v6451_v20 = vpop.f32.mrf.mxu1 }
 0xa38   : > { %3568 = vmatpush.bf16.msrb.mxu2 %v3547_v26  ;;  %v5293_v26 = vld [vmem:[%s6907_s18 + $0x88] sm:$0xff] }
 0xa39   : > { %v3691_v55 = vpack.c.bf16 %v5293_v26, %v5292_v50 }
 0xa3a   : > { %3611 = vmatpush.bf16.msrb.mxu0 %v3484_v53 }
 0xa3c   : > { %3569 = vmatpush.bf16.msrb.mxu2 %v3546_v7 }
 0xa3e   : > { %3612 = vmatpush.bf16.msrb.mxu0 %v3483_v2 }
 0xa3f   : > { %v3657_v47 = vpop.f32.mrf.mxu1 }
 0xa40   : > { %3570 = vmatpush.bf16.msrb.mxu2 %v3545_v60  ;;  %v3687_v53 = vpack.c.bf16 %v3657_v47, %v6451_v20 }
 0xa41   : > { %5279 = vmatmul.msk.bf16.vlgmr.msrb.gmra.mxu0 %vm2186_vm4, %v3487_v52 }
 0xa44   : > { %3571 = vmatpush.bf16.msrb.mxu2 %v3544_v27 }
 0xa47   : > { %5275 = vmatmul.msk.bf16.vlgmr.msrb.gmra.mxu2 %vm2186_vm4, %v3548_v5  ;;  %v3660_v25 = vpop.f32.mrf.mxu1 }
 0xa48   : > { %3762 = vmatpush.msra.mxu2 %v6394_v44 }
 0xa4f   : > { %v3663_v54 = vpop.f32.mrf.mxu1 }
 0xa50   : > { %v3688_v6 = vpack.c.bf16 %v3663_v54, %v3660_v25 }
 0xa51   : > { %5280 = vmatmul.msk.bf16.gmra.mxu0 %vm2186_vm4, %v3488_v58 }
 0xa57   : > { %5276 = vmatmul.msk.bf16.gmra.mxu2 %vm2186_vm4, %v3549_v13  ;;  %v3666_v44 = vpop.f32.mrf.mxu1 }
 0xa5f   : > { %v3669_v22 = vpop.f32.mrf.mxu1 }
 0xa60   : > { %v3689_v39 = vpack.c.bf16 %v3669_v22, %v3666_v44  ;;  %v5313_v22 = vld [vmem:[%s6907_s18 + $0xc0] sm:$0xff] }
 0xa61   : > { %5281 = vmatmul.msk.bf16.gmra.mxu0 %vm2186_vm4, %v3489_v21 }
 0xa67   : > { %5277 = vmatmul.msk.bf16.gmra.mxu2 %vm2186_vm4, %v3550_v37  ;;  %v3672_v33 = vpop.f32.mrf.mxu1  ;;  %v3801_v37 = vpack.c.bf16 %v5314_v28, %v5313_v22 }
 0xa6f   : > { %v3675_v61 = vpop.f32.mrf.mxu1 }
 0xa70   : > { %v3690_v45 = vpack.c.bf16 %v3675_v61, %v3672_v33  ;;  %v5315_v33 = vld [vmem:[%s6907_s18 + $0xd0] sm:$0xff]  ;;  %v5318_v61 = vld [vmem:[%s6907_s18 + $0xe8] sm:$0xff] }
 0xa71   : > { %5282 = vmatmul.msk.bf16.gmra.mxu0 %vm2186_vm4, %v3490_v17  ;;  %v3802_v36 = vpack.c.bf16 %v5316_v35, %v5315_v33  ;;  %v5317_v17 = vld [vmem:[%s6907_s18 + $0xe0] sm:$0xff] }
 0xa72   : > { %3711 = vmatpush.bf16.msrb.mxu3 %v3690_v45  ;;  %v3803_v45 = vpack.c.bf16 %v5318_v61, %v5317_v17  ;;  %v3914_v17 = vpop.permute.xlu0 %3913 }
 0xa76   : > { %3712 = vmatpush.bf16.msrb.mxu3 %v3689_v39 }
 0xa77   : > { %5278 = vmatmul.msk.bf16.gmra.mxu2 %vm2186_vm4, %v3551_v46  ;;  %v6486_v48 = vpop.f32.mrf.mxu1  ;;  %v3804_v46 = vpack.c.bf16 %v5320_v38, %v5319_v63 }
 0xa78   : > { %v3878_v9 = vmax.f32 %v6486_v48, 0.0 }
 0xa7a   : > { %v6489_v32 = vmin.f32 %v3878_v9, 1.0  ;;  %3713 = vmatpush.bf16.msrb.mxu3 %v3688_v6 }
 0xa7c   : > { %v6496_v7 = vmax.f32 %v6489_v32, %v5888_v59 }
 0xa7e   : > { %v6499_v40 = vperm.slane %v6496_v7, 0  ;;  %3714 = vmatpush.bf16.msrb.mxu3 %v3687_v53 }
 0xa80   : > { %v6505_v2 = vmul.f32 %v6499_v40, %v1628_v19  ;;  %v6516_v59 = vmul.f32 %v6499_v40, %v1629_v30  ;;  %v5295_v19 = vld [vmem:[%s6907_s18 + $0x98] sm:$0xff]  ;;  %v6537_v57 = vmul.f32 %v6499_v40, %v1631_v43  ;;  %v5296_v30 = vld [vmem:[%s6907_s18 + $0xa0] sm:$0xff] }
 0xa81   : > { %5300 = vmatmul.msk.bf16.vlgmr.msrb.gmra.mxu3 %vm2186_vm4, %v3691_v55  ;;  %v3692_v20 = vpack.c.bf16 %v5295_v19, %v5294_v14  ;;  %v6590_v55 = vld [vmem:[%s6908_s22 + $0x18] sm:$0xff]  ;;  %v6595_v14 = vld [vmem:[%s6908_s22 + $0x10] sm:$0xff]  ;;  %v3880_v19 = vadd.f32 1e-08, %v6486_v48 }
 0xa82   : > { %4020 = vmatpush.msra.mxu3 %v6471_v56  ;;  %5334 = vmatmul.msk.f32.vlgmr.msrb.gmra.mxu1 %vm949_vm0, %v6505_v2 }
 0xa83   : > { %5490 = vrcp.f32 %v3880_v19 }
 0xa84   : > { %4021 = vmatpush.msra.mxu3 %v6476_v51 }
 0xa86   : > { %4216 = vmatpush.msrb.mxu3 %v6590_v55 }
 0xa87   : > { %5305 = vmatmul.msk.f32.vlgmr.msra.gmra.mxu2 %vm1013_vm2, %v6356_v42  ;;  %v6527_v42 = vmul.f32 %v6499_v40, %v1630_v29  ;;  %v3693_v29 = vpack.c.bf16 %v5297_v34, %v5296_v30 }
 0xa88   : > { %4217 = vmatpush.msrb.mxu3 %v6595_v14 }
 0xa89   : > { %v5491_v34 = vpop.eup %5490 }
 0xa8a   : > { %5335 = vmatmul.msk.f32.gmra.mxu1 %vm949_vm0, %v6516_v59 }
 0xa8f   : > { %5306 = vmatmul.msk.f32.gmra.mxu2 %vm1013_vm2, %v6365_v23  ;;  %v5298_v23 = vld [vmem:[%s6907_s18 + $0xb0] sm:$0xff] }
 0xa91   : > { %5301 = vmatmul.msk.bf16.gmra.mxu3 %vm2186_vm4, %v3692_v20 }
 0xa92   : > { %5336 = vmatmul.msk.f32.gmra.mxu1 %vm949_vm0, %v6527_v42 }
 0xa97   : > { %5307 = vmatmul.msk.f32.gmra.mxu2 %vm1013_vm2, %v6374_v18  ;;  %v5299_v18 = vld [vmem:[%s6907_s18 + $0xb8] sm:$0xff] }
 0xa98   : > { %v3694_v41 = vpack.c.bf16 %v5299_v18, %v5298_v23  ;;  %v3882_v18 = vmul.f32 4.0, %v5491_v34 }
 0xa9a   : > { %5337 = vmatmul.msk.f32.gmra.mxu1 %vm949_vm0, %v6537_v57 }
 0xa9f   : > { %5308 = vmatmul.msk.f32.gmra.mxu2 %vm1013_vm2, %v6386_v1 }
 0xaa1   : > { %5302 = vmatmul.msk.bf16.gmra.mxu3 %vm2186_vm4, %v3693_v29 }
 0xaa7   : > { %5309 = vmatmul.msk.f32.gmra.mxu2 %vm1013_vm2, %v6401_v4 }
 0xaaf   : > { %5310 = vmatmul.msk.f32.gmra.mxu2 %vm1013_vm2, %v6411_v49 }
 0xab1   : > { %5303 = vmatmul.msk.bf16.gmra.mxu3 %vm2186_vm4, %v3694_v41  ;;  %v3883_v41 = vmul.f32 %v3882_v18, %v6489_v32 }
 0xab7   : > { %5311 = vmatmul.msk.f32.gmra.mxu2 %vm1013_vm2, %v6420_v24 }
 0xabe   : > { %v3614_v39 = vpop.f32.mrf.mxu0 }
 0xabf   : > { %5312 = vmatmul.msk.f32.gmra.mxu2 %vm1013_vm2, %v6427_v16 }
 0xac6   : > { %v3616_v6 = vpop.f32.mrf.mxu0 }
 0xaca   : > { %v6557_v43 = vpop.f32.mrf.mxu2 }
 0xace   : > { %v3619_v9 = vpop.f32.mrf.mxu0 }
 0xad2   : > { %v6559_v1 = vpop.f32.mrf.mxu2 }
 0xad6   : > { %v3621_v50 = vpop.f32.mrf.mxu0 }
 0xada   : > { %v6561_v52 = vpop.f32.mrf.mxu2 }
 0xadb   : > { %v3620_v22 = vadd.f32 %v3619_v9, %v6561_v52 }
 0xade   : > { %v6585_v26 = vpop.f32.mrf.mxu0 }
 0xae2   : > { %v6563_v4 = vpop.f32.mrf.mxu2 }
 0xae3   : > { %v3622_v52 = vadd.f32 %v3621_v50, %v6563_v4 }
 0xae6   : > { %v6587_v53 = vpop.f32.mrf.mxu0 }
 0xaea   : > { %v6565_v60 = vpop.f32.mrf.mxu2 }
 0xaeb   : > { %v3625_v4 = vadd.f32 %v6585_v26, %v6565_v60 }
 0xaee   : > { %v6600_v20 = vpop.f32.mrf.mxu0 }
 0xaf2   : > { %v6567_v47 = vpop.f32.mrf.mxu2 }
 0xaf3   : > { %v3627_v60 = vadd.f32 %v6587_v53, %v6567_v47 }
 0xaf6   : > { %v6602_v29 = vpop.f32.mrf.mxu0 }
 0xafa   : > { %v6569_v49 = vpop.f32.mrf.mxu2 }
 0xafb   : > { %v3630_v47 = vadd.f32 %v6600_v20, %v6569_v49 }
 0xaff   : > { %v4076_v62 = vpop.f32.mrf.mxu1 }
 0xb02   : > { %v6571_v3 = vpop.f32.mrf.mxu2 }
 0xb03   : > { %v3632_v49 = vadd.f32 %v6602_v29, %v6571_v3 }
 0xb04   : > { %v3716_v30 = vpop.f32.mrf.mxu3 }
 0xb07   : > { %v4079_v24 = vpop.f32.mrf.mxu1 }
 0xb08   : > { %v4100_v58 = vpack.c.bf16 %v4079_v24, %v4076_v62  ;;  %v3615_v62 = vadd.f32 %v3614_v39, %v6557_v43  ;;  %v6607_v24 = vperm.slane %v6489_v32, 0 }
 0xb0a   : > { %v3764_v27 = vpop.f32.mrf.mxu2  ;;  %v3736_v48 = vadd.f32 %v3716_v30, %v3615_v62 }
 0xb0c   : > { %v3718_v23 = vpop.f32.mrf.mxu3 }
 0xb0f   : > { %v4082_v16 = vpop.f32.mrf.mxu1 }
 0xb12   : > { %v3767_v5 = vpop.f32.mrf.mxu2 }
 0xb13   : > { %v3797_v31 = vpack.c.bf16 %v3767_v5, %v3764_v27 }
 0xb17   : > { %v4085_v25 = vpop.f32.mrf.mxu1 }
 0xb18   : > { %v4101_v8 = vpack.c.bf16 %v4085_v25, %v4082_v16  ;;  %v6609_v16 = vperm.slane %v3883_v41, 0  ;;  %v3904_v25 = vpop.permute.xlu1 %3903 }
 0xb1a   : > { %v3770_v10 = vpop.f32.mrf.mxu2  ;;  %4118 = vmatpush.bf16.msra.mxu1 %v4101_v8  ;;  %v3721_v8 = vpop.f32.mrf.mxu3 }
 0xb1e   : > { %4119 = vmatpush.bf16.msra.mxu1 %v4100_v58  ;;  %v3942_v58 = vmul.f32 %v6607_v24, %v3904_v25 }
 0xb20   : > { %v3919_v30 = vpop.permute.xlu1 %3918 }
 0xb22   : > { %v3773_v54 = vpop.f32.mrf.mxu2 }
 0xb23   : > { %v3798_v21 = vpack.c.bf16 %v3773_v54, %v3770_v10  ;;  %v3617_v54 = vadd.f32 %v3616_v6, %v6559_v1  ;;  %v3723_v1 = vpop.f32.mrf.mxu3 }
 0xb2a   : > { %v3776_v11 = vpop.f32.mrf.mxu2 }
 0xb2b   : > { %v3726_v38 = vpop.f32.mrf.mxu3 }
 0xb2c   : > { %v3740_v18 = vadd.f32 %v3726_v38, %v3625_v4 }
 0xb32   : > { %v3779_v12 = vpop.f32.mrf.mxu2 }
 0xb33   : > { %v3799_v0 = vpack.c.bf16 %v3779_v12, %v3776_v11  ;;  %v3737_v12 = vadd.f32 %v3718_v23, %v3617_v54  ;;  %v3945_v23 = vmul.f32 %v6607_v24, %v3919_v30  ;;  %v3728_v62 = vpop.f32.mrf.mxu3  ;;  %v5369_v30 = vld [vmem:[%s6908_s22 + $0x28] sm:$0xff] }
 0xb3a   : > { %v3782_v13 = vpop.f32.mrf.mxu2 }
 0xb42   : > { %v3785_v44 = vpop.f32.mrf.mxu2 }
 0xb43   : > { %v3800_v15 = vpack.c.bf16 %v3785_v44, %v3782_v13 }
 0xb45   : > { %3821 = vmatpush.bf16.msra.mxu0 %v3800_v15  ;;  %v3909_v15 = vpop.permute.xlu2 %3908 }
 0xb49   : > { %3822 = vmatpush.bf16.msra.mxu0 %v3799_v0 }
 0xb4d   : > { %3823 = vmatpush.bf16.msra.mxu0 %v3798_v21  ;;  %v3943_v21 = vmul.f32 %v6607_v24, %v3909_v15  ;;  %v3924_v25 = vpop.permute.xlu2 %3923 }
 0xb51   : > { %3824 = vmatpush.bf16.msra.mxu0 %v3797_v31  ;;  %v3738_v31 = vadd.f32 %v3721_v8, %v3620_v22 }
 0xb54   : > { %5321 = vmatmul.msk.bf16.vlgmr.msra.gmra.mxu0 %vm2186_vm4, %v3801_v37 }
 0xb55   : > { %4175 = vmatpush.msrb.mxu0 %v6590_v55 }
 0xb57   : > { %4176 = vmatpush.msrb.mxu0 %v6595_v14 }
 0xb64   : > { %5322 = vmatmul.msk.bf16.gmra.mxu0 %vm2186_vm4, %v3802_v36 }
 0xb74   : > { %5323 = vmatmul.msk.bf16.gmra.mxu0 %vm2186_vm4, %v3803_v45  ;;  %v3944_v45 = vmul.f32 %v6607_v24, %v3914_v17 }
 0xb84   : > { %5324 = vmatmul.msk.bf16.gmra.mxu0 %vm2186_vm4, %v3804_v46  ;;  %v3739_v46 = vadd.f32 %v3723_v1, %v3622_v52 }
 0xbd1   : > { %v3826_v27 = vpop.f32.mrf.mxu0 }
 0xbd2   : > { %v3846_v5 = vadd.f32 %v3826_v27, %v3736_v48 }
 0xbd4   : > { %v3885_v10 = vmul.f32 %v6609_v16, %v3846_v5 }
 0xbd6   : > { %v3950_v11 = vadd.f32 %v3942_v58, %v3885_v10  ;;  %v3946_v10 = vmul.f32 %v6607_v24, %v3924_v25  ;;  %v3741_v58 = vadd.f32 %v3728_v62, %v3627_v60 }
 0xbd8   : > { %v3958_v13 = vmax.f32 %v3950_v11, 0.0 }
 0xbd9   : > { %v3828_v43 = vpop.f32.mrf.mxu0 }
 0xbda   : > { %v6615_v32 = vmul.f32 %v6499_v40, %v3958_v13  ;;  %v3847_v44 = vadd.f32 %v3828_v43, %v3737_v12  ;;  %v3929_v43 = vpop.permute.xlu0 %3928 }
 0xbdc   : > { %v3886_v0 = vmul.f32 %v6609_v16, %v3847_v44  ;;  %5326 = vmatmul.msk.f32.vlgmr.msra.gmra.mxu3 %vm949_vm0, %v6615_v32  ;;  %5344 = vmatmul.msk.f32.vlgmr.msrb.gmra.mxu0 %vm949_vm0, %v6615_v32  ;;  %v3731_v44 = vpop.f32.mrf.mxu3 }
 0xbdd   : > { %4328 = vmatpush.msra.mxu3 %v5369_v30 }
 0xbde   : > { %v3951_v28 = vadd.f32 %v3943_v21, %v3886_v0  ;;  %v3947_v0 = vmul.f32 %v6607_v24, %v3929_v43  ;;  %v3742_v21 = vadd.f32 %v3731_v44, %v3630_v47  ;;  %v4310_v47 = vadd.f32 %v6590_v55, %v6471_v56 }
 0xbe0   : > { %v3959_v37 = vmax.f32 %v3951_v28, 0.0 }
 0xbe1   : > { %v3831_v33 = vpop.f32.mrf.mxu0 }
 0xbe2   : > { %v3848_v35 = vadd.f32 %v3831_v33, %v3738_v31  ;;  %v6625_v36 = vmul.f32 %v6499_v40, %v3959_v37  ;;  %v3934_v37 = vpop.permute.xlu1 %3933 }
 0xbe4   : > { %v3887_v61 = vmul.f32 %v6609_v16, %v3848_v35  ;;  %5327 = vmatmul.msk.f32.gmra.mxu3 %vm949_vm0, %v6625_v36  ;;  %5345 = vmatmul.msk.f32.gmra.mxu0 %vm949_vm0, %v6625_v36  ;;  %v3948_v35 = vmul.f32 %v6607_v24, %v3934_v37  ;;  %v3733_v17 = vpop.f32.mrf.mxu3  ;;  %v4089_v37 = vld [vmem:[%s6910_s1 + $0x8] sm:$0xff] }
 0xbe6   : > { %v3952_v63 = vadd.f32 %v3944_v45, %v3887_v61  ;;  %v3743_v61 = vadd.f32 %v3733_v17, %v3632_v49  ;;  %v5359_v17 = vld [vmem:[%s6910_s1 + $0x38] sm:$0xff] }
 0xbe8   : > { %v3960_v39 = vmax.f32 %v3952_v63, 0.0 }
 0xbe9   : > { %v3833_v6 = vpop.f32.mrf.mxu0 }
 0xbea   : > { %v3849_v9 = vadd.f32 %v3833_v6, %v3739_v46  ;;  %v6635_v19 = vmul.f32 %v6499_v40, %v3960_v39  ;;  %v3939_v46 = vpop.permute.xlu2 %3938 }
 0xbeb   : > { %v3949_v6 = vmul.f32 %v6607_v24, %v3939_v46  ;;  %v4092_v24 = vld [vmem:[%s6909_s0] sm:$0xff]  ;;  %v4309_v46 = vadd.f32 %v6595_v14, %v6476_v51  ;;  %v5362_v51 = vld [vmem:[%s6909_s0 + $0x30] sm:$0xff]  ;;  %v5363_v14 = vld [vmem:[%s6909_s0 + $0x38] sm:$0xff] }
 0xbec   : > { %v3888_v34 = vmul.f32 %v6609_v16, %v3849_v9  ;;  %5328 = vmatmul.msk.f32.gmra.mxu3 %vm949_vm0, %v6635_v19  ;;  %5346 = vmatmul.msk.f32.gmra.mxu0 %vm949_vm0, %v6635_v19 }
 0xbee   : > { %v3953_v50 = vadd.f32 %v3945_v23, %v3888_v34  ;;  %v6676_v34 = vld [vmem:[%s6908_s22 + $0x20] sm:$0xff] }
 0xbef   : > { %4329 = vmatpush.msra.mxu3 %v6676_v34 }
 0xbf0   : > { %v3961_v41 = vmax.f32 %v3953_v50, 0.0 }
 0xbf1   : > { %v3836_v48 = vpop.f32.mrf.mxu0 }
 0xbf2   : > { %v3850_v27 = vadd.f32 %v3836_v48, %v3740_v18  ;;  %v3971_v5 = vmul.f32 %v6499_v40, %v3961_v41  ;;  %v4095_v41 = vld [vmem:[%s6909_s0 + $0x18] sm:$0xff] }
 0xbf4   : > { %v3889_v8 = vmul.f32 %v6609_v16, %v3850_v27  ;;  %5329 = vmatmul.msk.f32.gmra.mxu3 %vm949_vm0, %v3971_v5  ;;  %5347 = vmatmul.msk.f32.gmra.mxu0 %vm949_vm0, %v3971_v5 }
 0xbf6   : > { %v3954_v26 = vadd.f32 %v3946_v10, %v3889_v8 }
 0xbf8   : > { %v3962_v54 = vmax.f32 %v3954_v26, 0.0 }
 0xbf9   : > { %v3838_v11 = vpop.f32.mrf.mxu0 }
 0xbfa   : > { %v3972_v12 = vmul.f32 %v6499_v40, %v3962_v54  ;;  %v3851_v13 = vadd.f32 %v3838_v11, %v3741_v58 }
 0xbfc   : > { %v3890_v15 = vmul.f32 %v6609_v16, %v3851_v13  ;;  %5330 = vmatmul.msk.f32.gmra.mxu3 %vm949_vm0, %v3972_v12  ;;  %5348 = vmatmul.msk.f32.gmra.mxu0 %vm949_vm0, %v3972_v12 }
 0xbfe   : > { %v3955_v53 = vadd.f32 %v3947_v0, %v3890_v15  ;;  %v5356_v15 = vld [vmem:[%s6910_s1 + $0x20] sm:$0xff]  ;;  %v5357_v0 = vld [vmem:[%s6910_s1 + $0x28] sm:$0xff] }
 0xc00   : > { %v3963_v1 = vmax.f32 %v3955_v53, 0.0 }
 0xc01   : > { %v3841_v22 = vpop.f32.mrf.mxu0 }
 0xc02   : > { %v3973_v28 = vmul.f32 %v6499_v40, %v3963_v1  ;;  %v3852_v31 = vadd.f32 %v3841_v22, %v3742_v21  ;;  %v4247_v1 = vpack.c.bf16 %v5357_v0, %v5356_v15 }
 0xc04   : > { %v3891_v33 = vmul.f32 %v6609_v16, %v3852_v31  ;;  %5331 = vmatmul.msk.f32.gmra.mxu3 %vm949_vm0, %v3973_v28  ;;  %5349 = vmatmul.msk.f32.gmra.mxu0 %vm949_vm0, %v3973_v28  ;;  %v4088_v31 = vld [vmem:[%s6910_s1] sm:$0xff] }
 0xc05   : > { %v4102_v56 = vpack.c.bf16 %v4089_v37, %v4088_v31  ;;  %v5388_v31 = vld [vmem:[%s6909_s0 + $0x50] sm:$0xff]  ;;  %v5389_v37 = vld [vmem:[%s6909_s0 + $0x58] sm:$0xff] }
 0xc06   : > { %v3956_v20 = vadd.f32 %v3948_v35, %v3891_v33  ;;  %v5358_v35 = vld [vmem:[%s6910_s1 + $0x30] sm:$0xff] }
 0xc08   : > { %v3964_v45 = vmax.f32 %v3956_v20, 0.0  ;;  %v4248_v20 = vpack.c.bf16 %v5359_v17, %v5358_v35 }
 0xc09   : > { %v3843_v52 = vpop.f32.mrf.mxu0 }
 0xc0a   : > { %v3974_v63 = vmul.f32 %v6499_v40, %v3964_v45  ;;  %v3853_v38 = vadd.f32 %v3843_v52, %v3743_v61  ;;  %v4090_v61 = vld [vmem:[%s6910_s1 + $0x10] sm:$0xff]  ;;  %v4091_v45 = vld [vmem:[%s6910_s1 + $0x18] sm:$0xff] }
 0xc0b   : > { %v4103_v52 = vpack.c.bf16 %v4091_v45, %v4090_v61  ;;  %v5400_v61 = vld [vmem:[%s5688_s19 + $0x18] sm:$0xff] }
 0xc0c   : > { %v3892_v39 = vmul.f32 %v6609_v16, %v3853_v38  ;;  %5332 = vmatmul.msk.f32.gmra.mxu3 %vm949_vm0, %v3974_v63  ;;  %5350 = vmatmul.msk.f32.gmra.mxu0 %vm949_vm0, %v3974_v63  ;;  %v4093_v16 = vld [vmem:[%s6909_s0 + $0x8] sm:$0xff] }
 0xc0d   : > { %v4104_v23 = vpack.c.bf16 %v4093_v16, %v4092_v24 }
 0xc0e   : > { %v3957_v9 = vadd.f32 %v3949_v6, %v3892_v39 }
 0xc0f   : > { %5338 = vmatmul.msk.bf16.vlgmr.msra.gmra.mxu1 %vm1436_vm3, %v4104_v23 }
 0xc10   : > { %v3965_v3 = vmax.f32 %v3957_v9, 0.0  ;;  %v4462_v9 = vadd.f32 %v6676_v34, %v4309_v46 }
 0xc12   : > { %v3975_v29 = vmul.f32 %v6499_v40, %v3965_v3  ;;  %v5360_v3 = vld [vmem:[%s6909_s0 + $0x20] sm:$0xff] }
 0xc14   : > { %5333 = vmatmul.msk.f32.gmra.mxu3 %vm949_vm0, %v3975_v29  ;;  %5351 = vmatmul.msk.f32.gmra.mxu0 %vm949_vm0, %v3975_v29 }
 0xc1c   : > { %5352 = vmatmul.msk.f32.vlgmr.msrb.gmra.mxu3 %vm949_vm0, %v6505_v2 }
 0xc24   : > { %5353 = vmatmul.msk.f32.gmra.mxu3 %vm949_vm0, %v6516_v59 }
 0xc2c   : > { %5354 = vmatmul.msk.f32.gmra.mxu3 %vm949_vm0, %v6527_v42 }
 0xc34   : > { %5355 = vmatmul.msk.f32.gmra.mxu3 %vm949_vm0, %v6537_v57 }
 0xc3c   : > { %5370 = vmatmul.msk.f32.vlgmr.msra.gmra.mxu3 %vm949_vm0, %v6615_v32 }
 0xc44   : > { %5371 = vmatmul.msk.f32.gmra.mxu3 %vm949_vm0, %v6625_v36  ;;  %v4094_v36 = vld [vmem:[%s6909_s0 + $0x10] sm:$0xff] }
 0xc45   : > { %v4105_v62 = vpack.c.bf16 %v4095_v41, %v4094_v36  ;;  %v5382_v36 = vld [vmem:[%s6910_s1 + $0x40] sm:$0xff]  ;;  %v5383_v41 = vld [vmem:[%s6910_s1 + $0x48] sm:$0xff] }
 0xc47   : > { %5339 = vmatmul.msk.bf16.gmra.mxu1 %vm1436_vm3, %v4105_v62 }
 0xc4c   : > { %5372 = vmatmul.msk.f32.gmra.mxu3 %vm949_vm0, %v6635_v19 }
 0xc54   : > { %5373 = vmatmul.msk.f32.gmra.mxu3 %vm949_vm0, %v3971_v5 }
 0xc59   : > { %v4178_v40 = vpop.f32.mrf.mxu0 }
 0xc5c   : > { %5374 = vmatmul.msk.f32.gmra.mxu3 %vm949_vm0, %v3972_v12 }
 0xc5f   : > { %v4023_v4 = vpop.f32.mrf.mxu3 }
 0xc61   : > { %v4181_v50 = vpop.f32.mrf.mxu0 }
 0xc62   : > { %v4241_v53 = vpack.c.bf16 %v4181_v50, %v4178_v40 }
 0xc64   : > { %5375 = vmatmul.msk.f32.gmra.mxu3 %vm949_vm0, %v3973_v28  ;;  %v4463_v28 = vadd.f32 %v5369_v30, %v4310_v47 }
 0xc67   : > { %v4026_v32 = vpop.f32.mrf.mxu3 }
 0xc68   : > { %v4096_v33 = vpack.c.bf16 %v4026_v32, %v4023_v4 }
 0xc69   : > { %v4184_v18 = vpop.f32.mrf.mxu0 }
 0xc6c   : > { %5376 = vmatmul.msk.f32.gmra.mxu3 %vm949_vm0, %v3974_v63 }
 0xc6f   : > { %v4029_v19 = vpop.f32.mrf.mxu3 }
 0xc71   : > { %v4187_v48 = vpop.f32.mrf.mxu0 }
 0xc72   : > { %v4242_v43 = vpack.c.bf16 %v4187_v48, %v4184_v18  ;;  %v5384_v48 = vld [vmem:[%s6910_s1 + $0x50] sm:$0xff] }
 0xc74   : > { %5377 = vmatmul.msk.f32.gmra.mxu3 %vm949_vm0, %v3975_v29  ;;  %v5361_v29 = vld [vmem:[%s6909_s0 + $0x28] sm:$0xff] }
 0xc77   : > { %v4032_v27 = vpop.f32.mrf.mxu3 }
 0xc78   : > { %v4097_v22 = vpack.c.bf16 %v4032_v27, %v4029_v19  ;;  %v4400_v19 = vpack.c.bf16 %v5383_v41, %v5382_v36  ;;  %v5385_v27 = vld [vmem:[%s6910_s1 + $0x58] sm:$0xff] }
 0xc79   : > { %v4190_v5 = vpop.f32.mrf.mxu0 }
 0xc7f   : > { %v4035_v25 = vpop.f32.mrf.mxu3 }
 0xc81   : > { %v4193_v8 = vpop.f32.mrf.mxu0 }
 0xc82   : > { %v4243_v11 = vpack.c.bf16 %v4193_v8, %v4190_v5  ;;  %v4401_v5 = vpack.c.bf16 %v5385_v27, %v5384_v48  ;;  %v5416_v48 = vld [vmem:[%s5688_s19 + $0x30] sm:$0xff] }
 0xc87   : > { %v4038_v10 = vpop.f32.mrf.mxu3 }
 0xc88   : > { %v4098_v44 = vpack.c.bf16 %v4038_v10, %v4035_v25 }
 0xc89   : > { %v4196_v60 = vpop.f32.mrf.mxu0 }
 0xc8f   : > { %v4041_v26 = vpop.f32.mrf.mxu3 }
 0xc91   : > { %v4199_v58 = vpop.f32.mrf.mxu0 }
 0xc92   : > { %v4244_v54 = vpack.c.bf16 %v4199_v58, %v4196_v60 }
 0xc94   : > { %4261 = vmatpush.bf16.msrb.mxu1 %v4244_v54 }
 0xc97   : > { %v4044_v12 = vpop.f32.mrf.mxu3 }
 0xc98   : > { %v4099_v13 = vpack.c.bf16 %v4044_v12, %v4041_v26  ;;  %4262 = vmatpush.bf16.msrb.mxu1 %v4243_v11 }
 0xc9a   : > { %4141 = vmatpush.bf16.msrb.mxu2 %v4099_v13 }
 0xc9c   : > { %4263 = vmatpush.bf16.msrb.mxu1 %v4242_v43 }
 0xc9e   : > { %4142 = vmatpush.bf16.msrb.mxu2 %v4098_v44 }
 0xc9f   : > { %v4219_v21 = vpop.f32.mrf.mxu3 }
 0xca0   : > { %4264 = vmatpush.bf16.msrb.mxu1 %v4241_v53 }
 0xca2   : > { %4143 = vmatpush.bf16.msrb.mxu2 %v4097_v22 }
 0xca3   : > { %5364 = vmatmul.msk.bf16.vlgmr.msrb.gmra.mxu1 %vm2186_vm4, %v4247_v1  ;;  %v5387_v1 = vld [vmem:[%s6909_s0 + $0x48] sm:$0xff] }
 0xca4   : > { %4369 = vmatpush.msra.mxu1 %v5369_v30  ;;  %v4249_v30 = vpack.c.bf16 %v5361_v29, %v5360_v3 }
 0xca6   : > { %4370 = vmatpush.msra.mxu1 %v6676_v34  ;;  %4144 = vmatpush.bf16.msrb.mxu2 %v4096_v33  ;;  %v4250_v34 = vpack.c.bf16 %v5363_v14, %v5362_v51  ;;  %v4403_v33 = vpack.c.bf16 %v5389_v37, %v5388_v31 }
 0xca7   : > { %v4222_v55 = vpop.f32.mrf.mxu3 }
 0xca8   : > { %4481 = vmatpush.msrb.mxu1 %v4463_v28  ;;  %v4245_v39 = vpack.c.bf16 %v4222_v55, %v4219_v21  ;;  %v5386_v21 = vld [vmem:[%s6909_s0 + $0x40] sm:$0xff]  ;;  %s4968_s0 = sshll.u32 %s6912_s16, 2 }
 0xca9   : > { %5340 = vmatmul.msk.bf16.vlgmr.msrb.gmra.mxu2 %vm2186_vm4, %v4102_v56  ;;  %v4402_v28 = vpack.c.bf16 %v5387_v1, %v5386_v21  ;;  %s939_s1 = scalar_lea.vmem %s5693_s6, %s4968_s0 }
 0xcaa   : > { %4482 = vmatpush.msrb.mxu1 %v4462_v9 }
 0xcaf   : > { %v4225_v49 = vpop.f32.mrf.mxu3 }
 0xcb3   : > { %5365 = vmatmul.msk.bf16.gmra.mxu1 %vm2186_vm4, %v4248_v20  ;;  %v4540_v20 = vld [vmem:[%s5688_s19 + $0x8] sm:$0xff] }
 0xcb7   : > { %v4228_v63 = vpop.f32.mrf.mxu3 }
 0xcb8   : > { %v4246_v38 = vpack.c.bf16 %v4228_v63, %v4225_v49  ;;  %v5409_v49 = vld [vmem:[%s5688_s19 + $0x28] sm:$0xff]  ;;  %v5399_v63 = vld [vmem:[%s5688_s19 + $0x10] sm:$0xff] }
 0xcb9   : > { %5341 = vmatmul.msk.bf16.gmra.mxu2 %vm2186_vm4, %v4103_v52  ;;  %4676 = vmatpush.msrb.mxu3 %v5409_v49  ;;  %v4539_v52 = vld [vmem:[%s5688_s19] sm:$0xff] }
 0xcba   : > { %4292 = vmatpush.bf16.msra.mxu2 %v4246_v38  ;;  %v5408_v38 = vld [vmem:[%s5688_s19 + $0x20] sm:$0xff]  ;;  %v4657_v14 = vadd.f32 %v5399_v63, %v4539_v52 }
 0xcbb   : > { %4677 = vmatpush.msrb.mxu3 %v5408_v38 }
 0xcbe   : > { %4293 = vmatpush.bf16.msra.mxu2 %v4245_v39 }
 0xcbf   : > { %v4331_v6 = vpop.f32.mrf.mxu3 }
 0xcc3   : > { %5378 = vmatmul.msk.f32.vlgmr.msra.gmra.mxu1 %vm949_vm0, %v6505_v2 }
 0xcc7   : > { %v4334_v40 = vpop.f32.mrf.mxu3 }
 0xcc9   : > { %5366 = vmatmul.msk.bf16.vlgmr.msra.gmra.mxu2 %vm1436_vm3, %v4249_v30 }
 0xccb   : > { %5379 = vmatmul.msk.f32.gmra.mxu1 %vm949_vm0, %v6516_v59 }
 0xccf   : > { %v4337_v24 = vpop.f32.mrf.mxu3 }
 0xcd3   : > { %5380 = vmatmul.msk.f32.gmra.mxu1 %vm949_vm0, %v6527_v42  ;;  %v6738_v42 = vpop.f32.mrf.mxu1 }
 0xcd7   : > { %v4340_v16 = vpop.f32.mrf.mxu3 }
 0xcd8   : > { %v4395_v18 = vpack.c.bf16 %v4340_v16, %v4337_v24 }
 0xcd9   : > { %5367 = vmatmul.msk.bf16.gmra.mxu2 %vm1436_vm3, %v4250_v34 }
 0xcdb   : > { %5381 = vmatmul.msk.f32.gmra.mxu1 %vm949_vm0, %v6537_v57  ;;  %v4394_v57 = vpack.c.bf16 %v4334_v40, %v4331_v6  ;;  %v6742_v62 = vpop.f32.mrf.mxu1 }
 0xcdf   : > { %v4343_v2 = vpop.f32.mrf.mxu3 }
 0xce3   : > { %5394 = vmatmul.msk.f32.vlgmr.msrb.gmra.mxu1 %vm949_vm0, %v6496_v7  ;;  %v6745_v7 = vpop.f32.mrf.mxu1 }
 0xce7   : > { %v4346_v59 = vpop.f32.mrf.mxu3 }
 0xce8   : > { %v4396_v32 = vpack.c.bf16 %v4346_v59, %v4343_v2 }
 0xceb   : > { %v4128_v25 = vpop.f32.mrf.mxu1 }
 0xcef   : > { %v4349_v23 = vpop.f32.mrf.mxu3 }
 0xcf7   : > { %v4352_v4 = vpop.f32.mrf.mxu3 }
 0xcf8   : > { %v4397_v50 = vpack.c.bf16 %v4352_v4, %v4349_v23  ;;  %v4658_v4 = vadd.f32 %v5400_v61, %v4540_v20 }
 0xcfa   : > { %4414 = vmatpush.bf16.msrb.mxu2 %v4397_v50 }
 0xcfe   : > { %4415 = vmatpush.bf16.msrb.mxu2 %v4396_v32  ;;  %v4713_v32 = vadd.f32 %v5408_v38, %v4657_v14 }
 0xd02   : > { %4416 = vmatpush.bf16.msrb.mxu2 %v4395_v18  ;;  %v4505_v18 = vpop.permute.xlu0 %4504 }
 0xd06   : > { %4417 = vmatpush.bf16.msrb.mxu2 %v4394_v57 }
 0xd09   : > { %5390 = vmatmul.msk.bf16.vlgmr.msrb.gmra.mxu2 %vm2186_vm4, %v4400_v19  ;;  %v4714_v19 = vadd.f32 %v5409_v49, %v4658_v4 }
 0xd0a   : > { %4567 = vmatpush.msra.mxu2 %v4540_v20 }
 0xd0c   : > { %4568 = vmatpush.msra.mxu2 %v4539_v52 }
 0xd19   : > { %5391 = vmatmul.msk.bf16.gmra.mxu2 %vm2186_vm4, %v4401_v5 }
 0xd20   : > { %v4266_v8 = vpop.f32.mrf.mxu1 }
 0xd28   : > { %v6750_v10 = vpop.f32.mrf.mxu1 }
 0xd2c   : > { %v4146_v60 = vpop.f32.mrf.mxu2 }
 0xd2d   : > { %v4147_v9 = vadd.f32 %v4146_v60, %v6738_v42 }
 0xd2f   : > { %v4276_v30 = vadd.f32 %v4266_v8, %v4147_v9  ;;  %v4769_v8 = vadd.f32 %v5416_v48, %v4713_v32 }
 0xd30   : > { %v6752_v26 = vpop.f32.mrf.mxu1 }
 0xd34   : > { %v4148_v58 = vpop.f32.mrf.mxu2 }
 0xd35   : > { %v4149_v34 = vadd.f32 %v4148_v58, %v6742_v62  ;;  %v5417_v62 = vld [vmem:[%s5688_s19 + $0x38] sm:$0xff]  ;;  %v6790_v58 = vld [vmem:[%s5688_s19 + $0x40] sm:$0xff] }
 0xd36   : > { %v4770_v60 = vadd.f32 %v5417_v62, %v4714_v19 }
 0xd37   : > { %v4277_v36 = vadd.f32 %v6750_v10, %v4149_v34 }
 0xd38   : > { %v4273_v54 = vpop.f32.mrf.mxu1 }
 0xd3c   : > { %v6754_v11 = vpop.f32.mrf.mxu2 }
 0xd40   : > { %v4372_v12 = vpop.f32.mrf.mxu1 }
 0xd44   : > { %v4153_v13 = vpop.f32.mrf.mxu2 }
 0xd45   : > { %v4154_v43 = vadd.f32 %v4153_v13, %v4128_v25  ;;  %v6787_v25 = vld [vmem:[%s5688_s19 + $0x48] sm:$0xff] }
 0xd47   : > { %v6756_v44 = vadd.f32 %v4273_v54, %v4154_v43  ;;  %v4152_v54 = vadd.f32 %v6754_v11, %v6745_v7  ;;  %v4826_v43 = vadd.f32 %v6787_v25, %v4770_v60  ;;  %v4582_v60 = vld [vmem:[%s5678_s24] sm:$0x7] }
 0xd48   : > { %v4375_v15 = vpop.f32.mrf.mxu1 }
 0xd49   : > { %v4398_v22 = vpack.c.bf16 %v4375_v15, %v4372_v12  ;;  %4844 = vmatpush.msra.mxu3 %v4826_v43  ;;  %v4278_v1 = vadd.f32 %v6752_v26, %v4152_v54  ;;  %v4585_v54 = vpack.c.bf16 %v4582_v60, %v4582_v60  ;;  %v5422_v43 = vld [vmem:[%s5678_s24 + $0xc] sm:$0x7] }
 0xd4c   : > { %v4295_v56 = vpop.f32.mrf.mxu2 }
 0xd4d   : > { %v4305_v24 = vadd.f32 %v4295_v56, %v4276_v30 }
 0xd50   : > { %v4378_v0 = vpop.f32.mrf.mxu1 }
 0xd54   : > { %v4297_v55 = vpop.f32.mrf.mxu2 }
 0xd55   : > { %v4306_v27 = vadd.f32 %v4297_v55, %v4277_v36  ;;  %v4515_v55 = vpop.permute.xlu2 %4514 }
 0xd58   : > { %v4381_v47 = vpop.f32.mrf.mxu1 }
 0xd59   : > { %v4399_v53 = vpack.c.bf16 %v4381_v47, %v4378_v0  ;;  %v4825_v47 = vadd.f32 %v6790_v58, %v4769_v8 }
 0xd5b   : > { %4445 = vmatpush.bf16.msra.mxu0 %v4399_v53  ;;  %v4510_v53 = vpop.permute.xlu1 %4509  ;;  %4845 = vmatpush.msra.mxu3 %v4825_v47  ;;  %v4751_v47 = vpack.c.bf16 %v5422_v43, %v5422_v43 }
 0xd5c   : > { %v6764_v35 = vpop.f32.mrf.mxu2 }
 0xd5d   : > { %v4307_v11 = vadd.f32 %v6764_v35, %v4278_v1 }
 0xd5f   : > { %4446 = vmatpush.bf16.msra.mxu0 %v4398_v22 }
 0xd60   : > { %v4484_v17 = vpop.f32.mrf.mxu1 }
 0xd61   : > { %v4489_v45 = vadd.f32 1e-08, %v4484_v17  ;;  %v4487_v3 = vmax.f32 %v4484_v17, 0.0 }
 0xd62   : > { %5392 = vmatmul.msk.bf16.vlgmr.msra.gmra.mxu0 %vm1436_vm3, %v4402_v28 }
 0xd63   : > { %4605 = vmatpush.msrb.mxu0 %v5400_v61  ;;  %5492 = vrcp.f32 %v4489_v45  ;;  %v6775_v40 = vmin.f32 %v4487_v3, 1.0 }
 0xd64   : > { %v6772_v46 = vpop.f32.mrf.mxu2 }
 0xd65   : > { %4606 = vmatpush.msrb.mxu0 %v5399_v63  ;;  %v6780_v16 = vperm.slane %v6775_v40, 0  ;;  %v4308_v20 = vadd.f32 %v6772_v46, %v6756_v44 }
 0xd67   : > { %v4523_v57 = vmul.f32 %v6780_v16, %v4505_v18  ;;  %4732 = vmatpush.msra.mxu0 %v5417_v62  ;;  %v4524_v7 = vmul.f32 %v6780_v16, %v4510_v53  ;;  %v4525_v49 = vmul.f32 %v6780_v16, %v4515_v55  ;;  %v5414_v62 = vld [vmem:[%s5678_s24 + $0x8] sm:$0x7] }
 0xd69   : > { %v5493_v39 = vpop.eup %5492  ;;  %4733 = vmatpush.msra.mxu0 %v5416_v48 }
 0xd6a   : > { %v4491_v29 = vmul.f32 3.0, %v5493_v39 }
 0xd6c   : > { %v4492_v51 = vmul.f32 %v4491_v29, %v6775_v40 }
 0xd6e   : > { %v4493_v50 = vperm.slane %v4492_v51, 0 }
 0xd72   : > { %5393 = vmatmul.msk.bf16.gmra.mxu0 %vm1436_vm3, %v4403_v33 }
 0xd8c   : > { %v4419_v6 = vpop.f32.mrf.mxu2 }
 0xd8d   : > { %v4429_v2 = vadd.f32 %v4419_v6, %v4305_v24  ;;  %v4520_v6 = vpop.permute.xlu0 %4519 }
 0xd8e   : > { %v4526_v3 = vmul.f32 %v6780_v16, %v4520_v6 }
 0xd94   : > { %v4421_v59 = vpop.f32.mrf.mxu2 }
 0xd95   : > { %v4430_v12 = vadd.f32 %v4421_v59, %v4306_v27 }
 0xd9c   : > { %v4424_v21 = vpop.f32.mrf.mxu2 }
 0xd9d   : > { %v4431_v31 = vadd.f32 %v4424_v21, %v4307_v11 }
 0xda4   : > { %v4426_v35 = vpop.f32.mrf.mxu2 }
 0xda5   : > { %v4432_v45 = vadd.f32 %v4426_v35, %v4308_v20 }
 0xddf   : > { %v4448_v23 = vpop.f32.mrf.mxu0 }
 0xde0   : > { %v4458_v42 = vadd.f32 %v4448_v23, %v4429_v2 }
 0xde2   : > { %v4494_v41 = vmul.f32 %v4493_v50, %v4458_v42 }
 0xde4   : > { %v4527_v5 = vadd.f32 %v4523_v57, %v4494_v41 }
 0xde6   : > { %v4531_v10 = vmax.f32 %v4527_v5, 0.0  ;;  %v4695_v5 = vpack.c.bf16 %v5414_v62, %v5414_v62 }
 0xde7   : > { %v4450_v13 = vpop.f32.mrf.mxu0 }
 0xde8   : > { %v6796_v15 = vmul.f32 %v4531_v10, %v6780_v16  ;;  %v4459_v0 = vadd.f32 %v4450_v13, %v4430_v12 }
 0xdea   : > { %v4495_v22 = vmul.f32 %v4493_v50, %v4459_v0  ;;  %5395 = vmatmul.msk.f32.vlgmr.msra.gmra.mxu2 %vm949_vm0, %v6796_v15  ;;  %5401 = vmatmul.msk.f32.vlgmr.msrb.gmra.mxu0 %vm949_vm0, %v6796_v15 }
 0xdeb   : > { %5410 = vmatmul.msk.f32.vlgmr.msrb.gmra.mxu3 %vm949_vm0, %v6796_v15 }
 0xdec   : > { %v4528_v28 = vadd.f32 %v4524_v7, %v4495_v22 }
 0xdee   : > { %v4532_v37 = vmax.f32 %v4528_v28, 0.0 }
 0xdef   : > { %v4453_v33 = vpop.f32.mrf.mxu0 }
 0xdf0   : > { %v6809_v26 = vmul.f32 %v4532_v37, %v6780_v16  ;;  %v4460_v56 = vadd.f32 %v4453_v33, %v4431_v31 }
 0xdf2   : > { %v4496_v17 = vmul.f32 %v4493_v50, %v4460_v56  ;;  %5396 = vmatmul.msk.f32.gmra.mxu2 %vm949_vm0, %v6809_v26  ;;  %5402 = vmatmul.msk.f32.gmra.mxu0 %vm949_vm0, %v6809_v26 }
 0xdf3   : > { %5411 = vmatmul.msk.f32.gmra.mxu3 %vm949_vm0, %v6809_v26 }
 0xdf4   : > { %v4529_v61 = vadd.f32 %v4525_v49, %v4496_v17  ;;  %v5430_v17 = vld [vmem:[%s5678_s24 + $0x10] sm:$0x7] }
 0xdf5   : > { %v4807_v35 = vpack.c.bf16 %v5430_v17, %v5430_v17 }
 0xdf6   : > { %v4533_v52 = vmax.f32 %v4529_v61, 0.0 }
 0xdf7   : > { %v4455_v63 = vpop.f32.mrf.mxu0 }
 0xdf8   : > { %v6821_v38 = vmul.f32 %v4533_v52, %v6780_v16  ;;  %v4461_v39 = vadd.f32 %v4455_v63, %v4432_v45 }
 0xdfa   : > { %v4497_v9 = vmul.f32 %v4493_v50, %v4461_v39  ;;  %5397 = vmatmul.msk.f32.gmra.mxu2 %vm949_vm0, %v6821_v38  ;;  %5403 = vmatmul.msk.f32.gmra.mxu0 %vm949_vm0, %v6821_v38  ;;  %v5405_v50 = vld [vmem:[%s5678_s24 + $0x4] sm:$0x7] }
 0xdfb   : > { %5412 = vmatmul.msk.f32.gmra.mxu3 %vm949_vm0, %v6821_v38  ;;  %v4624_v18 = vpack.c.bf16 %v5405_v50, %v5405_v50 }
 0xdfc   : > { %v4530_v44 = vadd.f32 %v4526_v3, %v4497_v9 }
 0xdfe   : > { %v4534_v46 = vmax.f32 %v4530_v44, 0.0 }
 0xe00   : > { %v4538_v29 = vmul.f32 %v4534_v46, %v6780_v16  ;;  %v4862_v46 = vpop.permute.xlu1 %4861 }
 0xe02   : > { %5398 = vmatmul.msk.f32.gmra.mxu2 %vm949_vm0, %v4538_v29  ;;  %5404 = vmatmul.msk.f32.gmra.mxu0 %vm949_vm0, %v4538_v29 }
 0xe03   : > { %5413 = vmatmul.msk.f32.gmra.mxu3 %vm949_vm0, %v4538_v29 }
 0xe0a   : > { %5418 = vmatmul.msk.f32.vlgmr.msra.gmra.mxu0 %vm949_vm0, %v6796_v15 }
 0xe0b   : > { %5432 = vmatmul.msk.f32.vlgmr.msra.gmra.mxu3 %vm949_vm0, %v6775_v40 }
 0xe12   : > { %5419 = vmatmul.msk.f32.gmra.mxu0 %vm949_vm0, %v6809_v26 }
 0xe1a   : > { %5420 = vmatmul.msk.f32.gmra.mxu0 %vm949_vm0, %v6821_v38 }
 0xe22   : > { %5421 = vmatmul.msk.f32.gmra.mxu0 %vm949_vm0, %v4538_v29 }
 0xe67   : > { %v4608_v30 = vpop.f32.mrf.mxu0 }
 0xe6d   : > { %v4570_v24 = vpop.f32.mrf.mxu2 }
 0xe6e   : > { %v4679_v51 = vpop.f32.mrf.mxu3 }
 0xe6f   : > { %v4611_v14 = vpop.f32.mrf.mxu0 }
 0xe70   : > { %v4622_v42 = vpack.c.bf16 %v4611_v14, %v4608_v30 }
 0xe75   : > { %v4573_v34 = vpop.f32.mrf.mxu2 }
 0xe76   : > { %v4682_v16 = vpop.f32.mrf.mxu3  ;;  %v4583_v48 = vpack.c.bf16 %v4573_v34, %v4570_v24 }
 0xe77   : > { %v4614_v2 = vpop.f32.mrf.mxu0  ;;  %v4693_v27 = vpack.c.bf16 %v4682_v16, %v4679_v51 }
 0xe7d   : > { %v4576_v59 = vpop.f32.mrf.mxu2 }
 0xe7e   : > { %v4685_v23 = vpop.f32.mrf.mxu3 }
 0xe7f   : > { %v4617_v40 = vpop.f32.mrf.mxu0 }
 0xe80   : > { %v4623_v4 = vpack.c.bf16 %v4617_v40, %v4614_v2 }
 0xe82   : > { %4634 = vmatpush.bf16.msra.mxu1 %v4623_v4 }
 0xe85   : > { %v4579_v32 = vpop.f32.mrf.mxu2 }
 0xe86   : > { %v4584_v36 = vpack.c.bf16 %v4579_v32, %v4576_v59  ;;  %v4688_v41 = vpop.f32.mrf.mxu3  ;;  %4635 = vmatpush.bf16.msra.mxu1 %v4622_v42 }
 0xe87   : > { %v4694_v57 = vpack.c.bf16 %v4688_v41, %v4685_v23  ;;  %v4735_v19 = vpop.f32.mrf.mxu0 }
 0xe89   : > { %4705 = vmatpush.bf16.msrb.mxu2 %v4694_v57  ;;  %5406 = vmatmul.msk.bf16.vlgmr.msra.gmra.mxu1 %vm1436_vm3, %v4624_v18 }
 0xe8a   : > { %4650 = vmatpush.bf16.msrb.mxu1 %v4584_v36 }
 0xe8d   : > { %4706 = vmatpush.bf16.msrb.mxu2 %v4693_v27 }
 0xe8e   : > { %4651 = vmatpush.bf16.msrb.mxu1 %v4583_v48  ;;  %v4847_v20 = vpop.f32.mrf.mxu3 }
 0xe8f   : > { %v4738_v8 = vpop.f32.mrf.mxu0  ;;  %v4852_v61 = vadd.f32 1e-08, %v4847_v20  ;;  %v4850_v52 = vmax.f32 %v4847_v20, 0.0 }
 0xe90   : > { %5415 = vmatmul.msk.bf16.vlgmr.msrb.gmra.mxu2 %vm1436_vm3, %v4695_v5  ;;  %v4749_v0 = vpack.c.bf16 %v4738_v8, %v4735_v19 }
 0xe91   : > { %4788 = vmatpush.msra.mxu2 %v6787_v25  ;;  %5494 = vrcp.f32 %v4852_v61 }
 0xe93   : > { %4789 = vmatpush.msra.mxu2 %v6790_v58 }
 0xe97   : > { %v4741_v12 = vpop.f32.mrf.mxu0  ;;  %v5495_v45 = vpop.eup %5494 }
 0xe98   : > { %v4854_v63 = vmul.f32 5.0, %v5495_v45 }
 0xe99   : > { %5407 = vmatmul.msk.bf16.vlgmr.msrb.gmra.mxu1 %vm1436_vm3, %v4585_v54 }
 0xe9f   : > { %v4744_v10 = vpop.f32.mrf.mxu0 }
 0xea0   : > { %v4750_v13 = vpack.c.bf16 %v4744_v10, %v4741_v12  ;;  %5426 = vmatmul.msk.f32.vlgmr.msra.gmra.mxu2 %vm949_vm0, %v6796_v15 }
 0xea2   : > { %4761 = vmatpush.bf16.msra.mxu1 %v4750_v13 }
 0xea6   : > { %4762 = vmatpush.bf16.msra.mxu1 %v4749_v0 }
 0xea8   : > { %5427 = vmatmul.msk.f32.gmra.mxu2 %vm949_vm0, %v6809_v26 }
 0xea9   : > { %5423 = vmatmul.msk.bf16.vlgmr.msra.gmra.mxu1 %vm1436_vm3, %v4751_v47 }
 0xeb0   : > { %5428 = vmatmul.msk.f32.gmra.mxu2 %vm949_vm0, %v6821_v38  ;;  %v4851_v38 = vmin.f32 %v4850_v52, 1.0 }
 0xeb2   : > { %v4855_v39 = vmul.f32 %v4854_v63, %v4851_v38  ;;  %v4864_v6 = vperm.slane %v4851_v38, 0 }
 0xeb4   : > { %v4856_v3 = vperm.slane %v4855_v39, 0 }
 0xeb8   : > { %5429 = vmatmul.msk.f32.gmra.mxu2 %vm949_vm0, %v4538_v29  ;;  %v4865_v29 = vmul.f32 %v4864_v6, %v4862_v46 }
 0xf06   : > { %v4637_v25 = vpop.f32.mrf.mxu1 }
 0xf0e   : > { %v4639_v58 = vpop.f32.mrf.mxu1 }
 0xf13   : > { %v4708_v53 = vpop.f32.mrf.mxu2 }
 0xf16   : > { %v4653_v15 = vpop.f32.mrf.mxu1 }
 0xf17   : > { %v4654_v21 = vadd.f32 %v4653_v15, %v4637_v25 }
 0xf19   : > { %v4712_v1 = vadd.f32 %v4708_v53, %v4654_v21 }
 0xf1b   : > { %v4710_v22 = vpop.f32.mrf.mxu2 }
 0xf1e   : > { %v4655_v7 = vpop.f32.mrf.mxu1 }
 0xf23   : > { %v4791_v11 = vpop.f32.mrf.mxu2 }
 0xf26   : > { %v4764_v28 = vpop.f32.mrf.mxu1 }
 0xf27   : > { %v4768_v31 = vadd.f32 %v4764_v28, %v4712_v1 }
 0xf2b   : > { %v4794_v37 = vpop.f32.mrf.mxu2 }
 0xf2c   : > { %v4805_v49 = vpack.c.bf16 %v4794_v37, %v4791_v11 }
 0xf2e   : > { %v4766_v33 = vpop.f32.mrf.mxu1 }
 0xf33   : > { %v4797_v26 = vpop.f32.mrf.mxu2 }
 0xf3b   : > { %v4800_v56 = vpop.f32.mrf.mxu2 }
 0xf3c   : > { %v4806_v55 = vpack.c.bf16 %v4800_v56, %v4797_v26 }
 0xf3e   : > { %4817 = vmatpush.bf16.msrb.mxu1 %v4806_v55 }
 0xf42   : > { %4818 = vmatpush.bf16.msrb.mxu1 %v4805_v49 }
 0xf45   : > { %5431 = vmatmul.msk.bf16.vlgmr.msrb.gmra.mxu1 %vm1436_vm3, %v4807_v35 }
 0xfc2   : > { %v4820_v9 = vpop.f32.mrf.mxu1 }
 0xfc3   : > { %v4824_v44 = vadd.f32 %v4820_v9, %v4768_v31 }
 0xfc5   : > { %v4857_v30 = vmul.f32 %v4856_v3, %v4824_v44 }
 0xfc7   : > { %v4866_v24 = vadd.f32 %v4865_v29, %v4857_v30 }
 0xfc9   : > { %v4867_v51 = vmax.f32 %v4866_v24, 0.0 }
 0xfca   : > { %v4822_v14 = vpop.f32.mrf.mxu1 }
 0xfcb   : > { %4869 = vst.msk [vmem:[%s939_s1] sm:$0x7] %vm4868_vm5, %v4867_v51 }
 0xfcc PF: > { %s71_s15 = sadd.s32 1, %s5502_s15  }
 0xfcd   : > { %p68_p4 = scmp.ge.s32.totalorder %s71_s15, 4  }
 0xfcf   :  { %70 = sbr.rel (!%p68_p4) target bundleno = 45 (0x2d), region = 251 }

</bundles_post_ra>
